<compile_context>
chip_gen: v7x
topology: tpu7x:2x2x1
jax: 0.10.0
libtpu: 0.0.40
codegen_flags: <defaults>
</compile_context>

<pallas_src>
import functools
import math

import jax
import jax.numpy as jnp
from jax import lax
from jax.experimental import pallas as pl
from jax.experimental.pallas import tpu as pltpu


def _layernorm(x, w, b, eps=1e-5):
    mu = jnp.mean(x, axis=-1, keepdims=True)
    var = jnp.mean((x - mu) ** 2, axis=-1, keepdims=True)
    return (x - mu) * lax.rsqrt(var + eps) * w + b


def transformer_block_kernel(
    xq_ref, xf_ref,
    wq_ref, bq_ref, wk_ref, bk_ref, wv_ref, bv_ref,
    wo_ref, bo_ref,
    ln1_w_ref, ln1_b_ref,
    w1_ref, b1_ref, w2_ref, b2_ref,
    ln2_w_ref, ln2_b_ref,
    o_ref,
    k_sc, v_sc,
    *, num_heads, scale,
):
    q_idx = pl.program_id(1)

    # ---- K/V projections: once per batch, cached in VMEM scratch ----------
    # (q axis is "arbitrary", so for each batch the q_idx == 0 step always
    #  runs first on its core; scratch persists across grid steps.)
    @pl.when(q_idx == 0)
    def _project_kv():
        xf = xf_ref[0]                                     # (S, E) bf16
        for h in range(num_heads):                         # static, unrolled
            k_h = jnp.dot(xf, wk_ref[h],
                          preferred_element_type=jnp.float32) + bk_ref[h]
            v_h = jnp.dot(xf, wv_ref[h],
                          preferred_element_type=jnp.float32) + bv_ref[h]
            k_sc[h] = k_h.astype(jnp.bfloat16)             # (S, Dh)
            v_sc[h] = v_h.astype(jnp.bfloat16)             # (S, Dh)

    xq = xq_ref[0]                                         # (TQ, E) f32 (residual)
    xq_b = xq.astype(jnp.bfloat16)

    # ---- attention: all heads in this grid step ----------------------------
    ctx_parts = []
    for h in range(num_heads):                             # static, unrolled
        q_h = (jnp.dot(xq_b, wq_ref[h],
                       preferred_element_type=jnp.float32) + bq_ref[h]) * scale  # (TQ, Dh)
        s = lax.dot_general(q_h.astype(jnp.bfloat16), k_sc[h],
                            (((1,), (1,)), ((), ())),
                            preferred_element_type=jnp.float32)                   # (TQ, S)
        s = s - jnp.max(s, axis=-1, keepdims=True)
        p = jnp.exp(s)
        p = p * pl.reciprocal(jnp.sum(p, axis=-1, keepdims=True), approx=True)
        ctx_parts.append(jnp.dot(p.astype(jnp.bfloat16), v_sc[h],
                                 preferred_element_type=jnp.float32))             # (TQ, Dh)

    # Head-concatenated context -> single out-projection with contraction = E.
    ctx = jnp.concatenate(ctx_parts, axis=-1).astype(jnp.bfloat16)                # (TQ, E)
    attn_out = jnp.dot(ctx, wo_ref[...],
                       preferred_element_type=jnp.float32) + bo_ref[...]          # (TQ, E)

    # ---- residual + LN1 + FFN + residual + LN2 (dropouts = identity) -------
    out1 = _layernorm(xq + attn_out, ln1_w_ref[...], ln1_b_ref[...])
    h1 = jnp.dot(out1.astype(jnp.bfloat16), w1_ref[...],
                 preferred_element_type=jnp.float32) + b1_ref[...]
    h1 = jnp.maximum(h1, 0.0)
    ffn = jnp.dot(h1.astype(jnp.bfloat16), w2_ref[...],
                  preferred_element_type=jnp.float32) + b2_ref[...]
    out2 = _layernorm(out1 + ffn, ln2_w_ref[...], ln2_b_ref[...])
    o_ref[0] = out2.astype(o_ref.dtype)


def _pick_tq(S, cap):
    """Largest divisor of S that is a multiple of 8 and <= cap (else S)."""
    for t in range(min(S, cap), 7, -1):
        if S % t == 0 and t % 8 == 0:
            return t
    return S


def _vmem_budget(S, E, F, tq, num_heads, hd):
    dbl = 2  # default double-buffering of pipelined blocks
    blocks = dbl * (tq * E * 4 + S * E * 2 + tq * E * 4)        # xq f32, x bf16, out f32
    weights = dbl * (4 * E * E * 2                              # wq/wk/wv/wo bf16
                     + 2 * E * F * 2                            # w1/w2 bf16
                     + (3 * E + 5 * E + F) * 4)                 # biases + LN params f32
    scratch = 2 * num_heads * S * hd * 2                        # K/V cache bf16
    temps = 3 * tq * S * 4 + 2 * tq * F * 4 + 8 * tq * E * 4    # scores/exp/p, FFN act, misc
    return blocks + weights + scratch + temps + (2 << 20)


def transformer_block(x, params, num_heads, max_q_block=256):
    """x: (S, B, E) float32, matching PyTorch nn.MultiheadAttention default."""
    S, B, E = x.shape
    F = params["w1"].shape[0]
    assert E % num_heads == 0
    hd = E // num_heads
    scale = 1.0 / math.sqrt(hd)

    xb = jnp.transpose(x, (1, 0, 2))                        # (B, S, E) f32 (residual / Q)
    xb16 = xb.astype(jnp.bfloat16)                          # (B, S, E) bf16 (K/V path)

    tq = _pick_tq(S, max_q_block)
    assert S % tq == 0

    # ---- weight prep (PyTorch Linear stores (out, in); y = x @ W.T + b) ----
    ipw, ipb = params["in_proj_weight"], params["in_proj_bias"]
    Wq, Wk, Wv = ipw[:E], ipw[E:2 * E], ipw[2 * E:]
    bq, bk, bv = ipb[:E], ipb[E:2 * E], ipb[2 * E:]

    def head_major(W):                                      # (E_out, E_in) -> (H, E_in, Dh)
        return jnp.transpose(W.reshape(num_heads, hd, E), (0, 2, 1))

    wq = head_major(Wq).astype(jnp.bfloat16)
    wk = head_major(Wk).astype(jnp.bfloat16)
    wv = head_major(Wv).astype(jnp.bfloat16)
    bqh = bq.reshape(num_heads, 1, hd).astype(jnp.float32)
    bkh = bk.reshape(num_heads, 1, hd).astype(jnp.float32)
    bvh = bv.reshape(num_heads, 1, hd).astype(jnp.float32)

    wo = params["out_proj_weight"].T.astype(jnp.bfloat16)   # (E_in concat, E_out)
    bo = params["out_proj_bias"][None, :].astype(jnp.float32)

    ln1_w = params["ln1_w"][None, :].astype(jnp.float32)
    ln1_b = params["ln1_b"][None, :].astype(jnp.float32)
    w1 = params["w1"].T.astype(jnp.bfloat16)                # (E, F)
    b1 = params["b1"][None, :].astype(jnp.float32)
    w2 = params["w2"].T.astype(jnp.bfloat16)                # (F, E)
    b2 = params["b2"][None, :].astype(jnp.float32)
    ln2_w = params["ln2_w"][None, :].astype(jnp.float32)
    ln2_b = params["ln2_b"][None, :].astype(jnp.float32)

    # ---- block specs --------------------------------------------------------
    def const_spec(shape):   # fully-resident tensor, constant index_map
        nd = len(shape)
        return pl.BlockSpec(shape, lambda b_, q_: (0,) * nd)

    in_specs = [
        pl.BlockSpec((1, tq, E), lambda b_, q_: (b_, q_, 0)),   # x query rows, f32
        pl.BlockSpec((1, S, E), lambda b_, q_: (b_, 0, 0)),     # x full seq, bf16
        const_spec(wq.shape), const_spec(bqh.shape),
        const_spec(wk.shape), const_spec(bkh.shape),
        const_spec(wv.shape), const_spec(bvh.shape),
        const_spec(wo.shape), const_spec(bo.shape),
        const_spec(ln1_w.shape), const_spec(ln1_b.shape),
        const_spec(w1.shape), const_spec(b1.shape),
        const_spec(w2.shape), const_spec(b2.shape),
        const_spec(ln2_w.shape), const_spec(ln2_b.shape),
    ]
    out_specs = pl.BlockSpec((1, tq, E), lambda b_, q_: (b_, q_, 0))

    # ---- VMEM budget, capped by the physical capacity of this generation ----
    try:
        vmem_cap = int(getattr(pltpu.get_tpu_info(), "vmem_capacity_bytes", 64 << 20))
    except Exception:
        vmem_cap = 64 << 20
    need = _vmem_budget(S, E, F, tq, num_heads, hd)
    vmem_limit = int(min(int(vmem_cap * 0.9), max(32 << 20, need)))

    kernel = functools.partial(transformer_block_kernel,
                               num_heads=num_heads, scale=scale)

    out = pl.pallas_call(
        kernel,
        out_shape=jax.ShapeDtypeStruct((B, S, E), x.dtype),
        grid_spec=pltpu.PrefetchScalarGridSpec(
            num_scalar_prefetch=0,
            grid=(B, S // tq),
            in_specs=in_specs,
            out_specs=out_specs,
            scratch_shapes=[
                pltpu.VMEM((num_heads, S, hd), jnp.bfloat16),   # K cache
                pltpu.VMEM((num_heads, S, hd), jnp.bfloat16),   # V cache
            ],
        ),
        compiler_params=pltpu.CompilerParams(
            # q axis must be "arbitrary": the K/V scratch is filled at q==0 and
            # reused by the following q blocks of the same batch.
            dimension_semantics=("parallel", "arbitrary"),
            vmem_limit_bytes=vmem_limit,
        ),
    )(xb, xb16, wq, bqh, wk, bkh, wv, bvh, wo, bo,
      ln1_w, ln1_b, w1, b1, w2, b2, ln2_w, ln2_b)

    return jnp.transpose(out, (1, 0, 2))                    # back to (S, B, E)


def reference(x, p, num_heads):
    """Pure-JAX f32 reference mirroring PyTorch semantics (eval mode)."""
    S, B, E = x.shape
    Dh = E // num_heads
    qkv = x @ p["in_proj_weight"].T + p["in_proj_bias"]     # (S, B, 3E)
    q, k, v = jnp.split(qkv, 3, axis=-1)

    def split_heads(t):                                     # (S,B,E)->(B,H,S,Dh)
        return jnp.transpose(t.reshape(S, B, num_heads, Dh), (1, 2, 0, 3))

    qh, kh, vh = split_heads(q), split_heads(k), split_heads(v)
    s = jnp.einsum("bhqd,bhkd->bhqk", qh, kh) / jnp.sqrt(jnp.float32(Dh))
    pattn = jax.nn.softmax(s, axis=-1)
    o = jnp.einsum("bhqk,bhkd->bhqd", pattn, vh)
    o = jnp.transpose(o, (2, 0, 1, 3)).reshape(S, B, E)
    attn_out = o @ p["out_proj_weight"].T + p["out_proj_bias"]

    def ln(t, w, b, eps=1e-5):
        mu = t.mean(-1, keepdims=True)
        var = ((t - mu) ** 2).mean(-1, keepdims=True)
        return (t - mu) / jnp.sqrt(var + eps) * w + b

    out1 = ln(x + attn_out, p["ln1_w"], p["ln1_b"])
    ffn = jnp.maximum(out1 @ p["w1"].T + p["b1"], 0.0) @ p["w2"].T + p["b2"]
    return ln(out1 + ffn, p["ln2_w"], p["ln2_b"])


if __name__ == "__main__":
    # Small, tile-friendly demo shapes: E (lane dim) multiple of 128,
    # S multiple of 8, FF multiple of 128.
    S, B, E, H, FF = 128, 2, 128, 4, 256

    key = jax.random.PRNGKey(0)
    keys = jax.random.split(key, 16)
    std = 0.1
    params = {
        "in_proj_weight": std * jax.random.normal(keys[0], (3 * E, E), jnp.float32),
        "in_proj_bias":   std * jax.random.normal(keys[1], (3 * E,), jnp.float32),
        "out_proj_weight": std * jax.random.normal(keys[2], (E, E), jnp.float32),
        "out_proj_bias":   std * jax.random.normal(keys[3], (E,), jnp.float32),
        "ln1_w": 1.0 + std * jax.random.normal(keys[4], (E,), jnp.float32),
        "ln1_b": std * jax.random.normal(keys[5], (E,), jnp.float32),
        "w1": std * jax.random.normal(keys[6], (FF, E), jnp.float32),
        "b1": std * jax.random.normal(keys[7], (FF,), jnp.float32),
        "w2": std * jax.random.normal(keys[8], (E, FF), jnp.float32),
        "b2": std * jax.random.normal(keys[9], (E,), jnp.float32),
        "ln2_w": 1.0 + std * jax.random.normal(keys[10], (E,), jnp.float32),
        "ln2_b": std * jax.random.normal(keys[11], (E,), jnp.float32),
    }

    x = jax.random.normal(keys[12], (S, B, E), jnp.float32)
    ref = jax.block_until_ready(reference(x, params, num_heads=H))

    # Run 1: default q-block (single 128-row block per batch).
    out = jax.block_until_ready(transformer_block(x, params, num_heads=H))
    assert out.shape == (S, B, E)
    err = float(jnp.max(jnp.abs(out - ref)))
    # Tolerance reflects bf16 MXU inputs (f32 accumulation) + approx EUP
    # reciprocal vs the f32 reference.
    assert jnp.allclose(out, ref, rtol=4e-2, atol=4e-2), f"max abs err = {err}"

    # Run 2: force several q-blocks to exercise the cached-K/V reuse path.
    out2 = jax.block_until_ready(
        transformer_block(x, params, num_heads=H, max_q_block=32))
    err2 = float(jnp.max(jnp.abs(out2 - ref)))
    assert jnp.allclose(out2, ref, rtol=4e-2, atol=4e-2), f"max abs err = {err2}"

    print("KERNEL_OK")
</pallas_src>

<mosaic_0001>
module attributes {stable_mosaic.version = 11 : i64} {
  func.func @transformer_block_kernel(%arg0: i32, %arg1: i32, %arg2: memref<1x128x128xf32, #tpu.memory_space<vmem>>, %arg3: memref<1x128x128xbf16, #tpu.memory_space<vmem>>, %arg4: memref<4x128x32xbf16, #tpu.memory_space<vmem>>, %arg5: memref<4x1x32xf32, #tpu.memory_space<vmem>>, %arg6: memref<4x128x32xbf16, #tpu.memory_space<vmem>>, %arg7: memref<4x1x32xf32, #tpu.memory_space<vmem>>, %arg8: memref<4x128x32xbf16, #tpu.memory_space<vmem>>, %arg9: memref<4x1x32xf32, #tpu.memory_space<vmem>>, %arg10: memref<128x128xbf16, #tpu.memory_space<vmem>>, %arg11: memref<1x128xf32, #tpu.memory_space<vmem>>, %arg12: memref<1x128xf32, #tpu.memory_space<vmem>>, %arg13: memref<1x128xf32, #tpu.memory_space<vmem>>, %arg14: memref<128x256xbf16, #tpu.memory_space<vmem>>, %arg15: memref<1x256xf32, #tpu.memory_space<vmem>>, %arg16: memref<256x128xbf16, #tpu.memory_space<vmem>>, %arg17: memref<1x128xf32, #tpu.memory_space<vmem>>, %arg18: memref<1x128xf32, #tpu.memory_space<vmem>>, %arg19: memref<1x128xf32, #tpu.memory_space<vmem>>, %arg20: memref<1x128x128xf32, #tpu.memory_space<vmem>>, %arg21: memref<4x128x32xbf16, #tpu.memory_space<vmem>>, %arg22: memref<4x128x32xbf16, #tpu.memory_space<vmem>>) attributes {dimension_semantics = [#tpu.dimension_semantics<parallel>, #tpu.dimension_semantics<arbitrary>], iteration_bounds = array<i64: 2, 1>, scalar_prefetch = 0 : i64, scratch_operands = 2 : i64, tpu.core_type = #tpu.core_type<tc>, window_params = [{transform_indices = @transform_0, window_bounds = array<i64: 1, 128, 128>}, {transform_indices = @transform_1, window_bounds = array<i64: 1, 128, 128>}, {pipeline_mode = #tpu.pipeline_mode<synchronous>, transform_indices = @transform_2, window_bounds = array<i64: 4, 128, 32>}, {pipeline_mode = #tpu.pipeline_mode<synchronous>, transform_indices = @transform_3, window_bounds = array<i64: 4, 1, 32>}, {pipeline_mode = #tpu.pipeline_mode<synchronous>, transform_indices = @transform_4, window_bounds = array<i64: 4, 128, 32>}, {pipeline_mode = #tpu.pipeline_mode<synchronous>, transform_indices = @transform_5, window_bounds = array<i64: 4, 1, 32>}, {pipeline_mode = #tpu.pipeline_mode<synchronous>, transform_indices = @transform_6, window_bounds = array<i64: 4, 128, 32>}, {pipeline_mode = #tpu.pipeline_mode<synchronous>, transform_indices = @transform_7, window_bounds = array<i64: 4, 1, 32>}, {pipeline_mode = #tpu.pipeline_mode<synchronous>, transform_indices = @transform_8, window_bounds = array<i64: 128, 128>}, {pipeline_mode = #tpu.pipeline_mode<synchronous>, transform_indices = @transform_9, window_bounds = array<i64: 1, 128>}, {pipeline_mode = #tpu.pipeline_mode<synchronous>, transform_indices = @transform_10, window_bounds = array<i64: 1, 128>}, {pipeline_mode = #tpu.pipeline_mode<synchronous>, transform_indices = @transform_11, window_bounds = array<i64: 1, 128>}, {pipeline_mode = #tpu.pipeline_mode<synchronous>, transform_indices = @transform_12, window_bounds = array<i64: 128, 256>}, {pipeline_mode = #tpu.pipeline_mode<synchronous>, transform_indices = @transform_13, window_bounds = array<i64: 1, 256>}, {pipeline_mode = #tpu.pipeline_mode<synchronous>, transform_indices = @transform_14, window_bounds = array<i64: 256, 128>}, {pipeline_mode = #tpu.pipeline_mode<synchronous>, transform_indices = @transform_15, window_bounds = array<i64: 1, 128>}, {pipeline_mode = #tpu.pipeline_mode<synchronous>, transform_indices = @transform_16, window_bounds = array<i64: 1, 128>}, {pipeline_mode = #tpu.pipeline_mode<synchronous>, transform_indices = @transform_17, window_bounds = array<i64: 1, 128>}, {transform_indices = @transform_18, window_bounds = array<i64: 1, 128, 128>}]} {
    %c0_i32 = arith.constant 0 : i32
    %0 = arith.cmpi eq, %arg1, %c0_i32 : i32
    %1 = arith.extui %0 : i1 to i32
    %c0_i32_0 = arith.constant 0 : i32
    %2 = arith.cmpi ne, %1, %c0_i32_0 : i32
    scf.if %2 {
      %c0_108 = arith.constant 0 : index
      %c0_109 = arith.constant 0 : index
      %c0_110 = arith.constant 0 : index
      %188 = vector.load %arg3[%c0_108, %c0_109, %c0_110] : memref<1x128x128xbf16, #tpu.memory_space<vmem>>, vector<1x128x128xbf16>
      %189 = vector.shape_cast %188 : vector<1x128x128xbf16> to vector<128x128xbf16>
      %c0_111 = arith.constant 0 : index
      %c0_112 = arith.constant 0 : index
      %c0_113 = arith.constant 0 : index
      %190 = vector.load %arg6[%c0_111, %c0_112, %c0_113] : memref<4x128x32xbf16, #tpu.memory_space<vmem>>, vector<1x128x32xbf16>
      %191 = vector.shape_cast %190 : vector<1x128x32xbf16> to vector<128x32xbf16>
      %cst_114 = arith.constant dense<0.000000e+00> : vector<128x32xf32>
      %192 = tpu.matmul %189, %191, %cst_114 {dimension_numbers = #tpu.dot_dimension_numbers<[1], [0], [0], [1], [0, 0, 1, 1], [], []>} : vector<128x128xbf16>, vector<128x32xbf16>, vector<128x32xf32> -> vector<128x32xf32>
      %c0_115 = arith.constant 0 : index
      %c0_116 = arith.constant 0 : index
      %c0_117 = arith.constant 0 : index
      %193 = vector.load %arg7[%c0_115, %c0_116, %c0_117] : memref<4x1x32xf32, #tpu.memory_space<vmem>>, vector<1x1x32xf32>
      %194 = vector.shape_cast %193 : vector<1x1x32xf32> to vector<1x32xf32>
      %195 = vector.broadcast %194 : vector<1x32xf32> to vector<128x32xf32>
      %196 = arith.addf %192, %195 : vector<128x32xf32>
      %c0_118 = arith.constant 0 : index
      %c0_119 = arith.constant 0 : index
      %c0_120 = arith.constant 0 : index
      %197 = vector.load %arg8[%c0_118, %c0_119, %c0_120] : memref<4x128x32xbf16, #tpu.memory_space<vmem>>, vector<1x128x32xbf16>
      %198 = vector.shape_cast %197 : vector<1x128x32xbf16> to vector<128x32xbf16>
      %cst_121 = arith.constant dense<0.000000e+00> : vector<128x32xf32>
      %199 = tpu.matmul %189, %198, %cst_121 {dimension_numbers = #tpu.dot_dimension_numbers<[1], [0], [0], [1], [0, 0, 1, 1], [], []>} : vector<128x128xbf16>, vector<128x32xbf16>, vector<128x32xf32> -> vector<128x32xf32>
      %c0_122 = arith.constant 0 : index
      %c0_123 = arith.constant 0 : index
      %c0_124 = arith.constant 0 : index
      %200 = vector.load %arg9[%c0_122, %c0_123, %c0_124] : memref<4x1x32xf32, #tpu.memory_space<vmem>>, vector<1x1x32xf32>
      %201 = vector.shape_cast %200 : vector<1x1x32xf32> to vector<1x32xf32>
      %202 = vector.broadcast %201 : vector<1x32xf32> to vector<128x32xf32>
      %203 = arith.addf %199, %202 : vector<128x32xf32>
      %204 = arith.truncf %196 : vector<128x32xf32> to vector<128x32xbf16>
      %c0_125 = arith.constant 0 : index
      %c0_126 = arith.constant 0 : index
      %c0_127 = arith.constant 0 : index
      %205 = vector.load %arg21[%c0_125, %c0_126, %c0_127] : memref<4x128x32xbf16, #tpu.memory_space<vmem>>, vector<1x128x32xbf16>
      %206 = vector.shape_cast %205 : vector<1x128x32xbf16> to vector<128x32xbf16>
      %207 = vector.shape_cast %204 : vector<128x32xbf16> to vector<1x128x32xbf16>
      tpu.vector_store %arg21[%c0_125, %c0_126, %c0_127], %207 {strides = array<i32>} : memref<4x128x32xbf16, #tpu.memory_space<vmem>>, vector<1x128x32xbf16>,
      %208 = arith.truncf %203 : vector<128x32xf32> to vector<128x32xbf16>
      %c0_128 = arith.constant 0 : index
      %c0_129 = arith.constant 0 : index
      %c0_130 = arith.constant 0 : index
      %209 = vector.load %arg22[%c0_128, %c0_129, %c0_130] : memref<4x128x32xbf16, #tpu.memory_space<vmem>>, vector<1x128x32xbf16>
      %210 = vector.shape_cast %209 : vector<1x128x32xbf16> to vector<128x32xbf16>
      %211 = vector.shape_cast %208 : vector<128x32xbf16> to vector<1x128x32xbf16>
      tpu.vector_store %arg22[%c0_128, %c0_129, %c0_130], %211 {strides = array<i32>} : memref<4x128x32xbf16, #tpu.memory_space<vmem>>, vector<1x128x32xbf16>,
      %c1_131 = arith.constant 1 : index
      %c0_132 = arith.constant 0 : index
      %c0_133 = arith.constant 0 : index
      %212 = vector.load %arg6[%c1_131, %c0_132, %c0_133] : memref<4x128x32xbf16, #tpu.memory_space<vmem>>, vector<1x128x32xbf16>
      %213 = vector.shape_cast %212 : vector<1x128x32xbf16> to vector<128x32xbf16>
      %cst_134 = arith.constant dense<0.000000e+00> : vector<128x32xf32>
      %214 = tpu.matmul %189, %213, %cst_134 {dimension_numbers = #tpu.dot_dimension_numbers<[1], [0], [0], [1], [0, 0, 1, 1], [], []>} : vector<128x128xbf16>, vector<128x32xbf16>, vector<128x32xf32> -> vector<128x32xf32>
      %c1_135 = arith.constant 1 : index
      %c0_136 = arith.constant 0 : index
      %c0_137 = arith.constant 0 : index
      %215 = vector.load %arg7[%c1_135, %c0_136, %c0_137] : memref<4x1x32xf32, #tpu.memory_space<vmem>>, vector<1x1x32xf32>
      %216 = vector.shape_cast %215 : vector<1x1x32xf32> to vector<1x32xf32>
      %217 = vector.broadcast %216 : vector<1x32xf32> to vector<128x32xf32>
      %218 = arith.addf %214, %217 : vector<128x32xf32>
      %c1_138 = arith.constant 1 : index
      %c0_139 = arith.constant 0 : index
      %c0_140 = arith.constant 0 : index
      %219 = vector.load %arg8[%c1_138, %c0_139, %c0_140] : memref<4x128x32xbf16, #tpu.memory_space<vmem>>, vector<1x128x32xbf16>
      %220 = vector.shape_cast %219 : vector<1x128x32xbf16> to vector<128x32xbf16>
      %cst_141 = arith.constant dense<0.000000e+00> : vector<128x32xf32>
      %221 = tpu.matmul %189, %220, %cst_141 {dimension_numbers = #tpu.dot_dimension_numbers<[1], [0], [0], [1], [0, 0, 1, 1], [], []>} : vector<128x128xbf16>, vector<128x32xbf16>, vector<128x32xf32> -> vector<128x32xf32>
      %c1_142 = arith.constant 1 : index
      %c0_143 = arith.constant 0 : index
      %c0_144 = arith.constant 0 : index
      %222 = vector.load %arg9[%c1_142, %c0_143, %c0_144] : memref<4x1x32xf32, #tpu.memory_space<vmem>>, vector<1x1x32xf32>
      %223 = vector.shape_cast %222 : vector<1x1x32xf32> to vector<1x32xf32>
      %224 = vector.broadcast %223 : vector<1x32xf32> to vector<128x32xf32>
      %225 = arith.addf %221, %224 : vector<128x32xf32>
      %226 = arith.truncf %218 : vector<128x32xf32> to vector<128x32xbf16>
      %c1_145 = arith.constant 1 : index
      %c0_146 = arith.constant 0 : index
      %c0_147 = arith.constant 0 : index
      %227 = vector.load %arg21[%c1_145, %c0_146, %c0_147] : memref<4x128x32xbf16, #tpu.memory_space<vmem>>, vector<1x128x32xbf16>
      %228 = vector.shape_cast %227 : vector<1x128x32xbf16> to vector<128x32xbf16>
      %229 = vector.shape_cast %226 : vector<128x32xbf16> to vector<1x128x32xbf16>
      tpu.vector_store %arg21[%c1_145, %c0_146, %c0_147], %229 {strides = array<i32>} : memref<4x128x32xbf16, #tpu.memory_space<vmem>>, vector<1x128x32xbf16>,
      %230 = arith.truncf %225 : vector<128x32xf32> to vector<128x32xbf16>
      %c1_148 = arith.constant 1 : index
      %c0_149 = arith.constant 0 : index
      %c0_150 = arith.constant 0 : index
      %231 = vector.load %arg22[%c1_148, %c0_149, %c0_150] : memref<4x128x32xbf16, #tpu.memory_space<vmem>>, vector<1x128x32xbf16>
      %232 = vector.shape_cast %231 : vector<1x128x32xbf16> to vector<128x32xbf16>
      %233 = vector.shape_cast %230 : vector<128x32xbf16> to vector<1x128x32xbf16>
      tpu.vector_store %arg22[%c1_148, %c0_149, %c0_150], %233 {strides = array<i32>} : memref<4x128x32xbf16, #tpu.memory_space<vmem>>, vector<1x128x32xbf16>,
      %c2_151 = arith.constant 2 : index
      %c0_152 = arith.constant 0 : index
      %c0_153 = arith.constant 0 : index
      %234 = vector.load %arg6[%c2_151, %c0_152, %c0_153] : memref<4x128x32xbf16, #tpu.memory_space<vmem>>, vector<1x128x32xbf16>
      %235 = vector.shape_cast %234 : vector<1x128x32xbf16> to vector<128x32xbf16>
      %cst_154 = arith.constant dense<0.000000e+00> : vector<128x32xf32>
      %236 = tpu.matmul %189, %235, %cst_154 {dimension_numbers = #tpu.dot_dimension_numbers<[1], [0], [0], [1], [0, 0, 1, 1], [], []>} : vector<128x128xbf16>, vector<128x32xbf16>, vector<128x32xf32> -> vector<128x32xf32>
      %c2_155 = arith.constant 2 : index
      %c0_156 = arith.constant 0 : index
      %c0_157 = arith.constant 0 : index
      %237 = vector.load %arg7[%c2_155, %c0_156, %c0_157] : memref<4x1x32xf32, #tpu.memory_space<vmem>>, vector<1x1x32xf32>
      %238 = vector.shape_cast %237 : vector<1x1x32xf32> to vector<1x32xf32>
      %239 = vector.broadcast %238 : vector<1x32xf32> to vector<128x32xf32>
      %240 = arith.addf %236, %239 : vector<128x32xf32>
      %c2_158 = arith.constant 2 : index
      %c0_159 = arith.constant 0 : index
      %c0_160 = arith.constant 0 : index
      %241 = vector.load %arg8[%c2_158, %c0_159, %c0_160] : memref<4x128x32xbf16, #tpu.memory_space<vmem>>, vector<1x128x32xbf16>
      %242 = vector.shape_cast %241 : vector<1x128x32xbf16> to vector<128x32xbf16>
      %cst_161 = arith.constant dense<0.000000e+00> : vector<128x32xf32>
      %243 = tpu.matmul %189, %242, %cst_161 {dimension_numbers = #tpu.dot_dimension_numbers<[1], [0], [0], [1], [0, 0, 1, 1], [], []>} : vector<128x128xbf16>, vector<128x32xbf16>, vector<128x32xf32> -> vector<128x32xf32>
      %c2_162 = arith.constant 2 : index
      %c0_163 = arith.constant 0 : index
      %c0_164 = arith.constant 0 : index
      %244 = vector.load %arg9[%c2_162, %c0_163, %c0_164] : memref<4x1x32xf32, #tpu.memory_space<vmem>>, vector<1x1x32xf32>
      %245 = vector.shape_cast %244 : vector<1x1x32xf32> to vector<1x32xf32>
      %246 = vector.broadcast %245 : vector<1x32xf32> to vector<128x32xf32>
      %247 = arith.addf %243, %246 : vector<128x32xf32>
      %248 = arith.truncf %240 : vector<128x32xf32> to vector<128x32xbf16>
      %c2_165 = arith.constant 2 : index
      %c0_166 = arith.constant 0 : index
      %c0_167 = arith.constant 0 : index
      %249 = vector.load %arg21[%c2_165, %c0_166, %c0_167] : memref<4x128x32xbf16, #tpu.memory_space<vmem>>, vector<1x128x32xbf16>
      %250 = vector.shape_cast %249 : vector<1x128x32xbf16> to vector<128x32xbf16>
      %251 = vector.shape_cast %248 : vector<128x32xbf16> to vector<1x128x32xbf16>
      tpu.vector_store %arg21[%c2_165, %c0_166, %c0_167], %251 {strides = array<i32>} : memref<4x128x32xbf16, #tpu.memory_space<vmem>>, vector<1x128x32xbf16>,
      %252 = arith.truncf %247 : vector<128x32xf32> to vector<128x32xbf16>
      %c2_168 = arith.constant 2 : index
      %c0_169 = arith.constant 0 : index
      %c0_170 = arith.constant 0 : index
      %253 = vector.load %arg22[%c2_168, %c0_169, %c0_170] : memref<4x128x32xbf16, #tpu.memory_space<vmem>>, vector<1x128x32xbf16>
      %254 = vector.shape_cast %253 : vector<1x128x32xbf16> to vector<128x32xbf16>
      %255 = vector.shape_cast %252 : vector<128x32xbf16> to vector<1x128x32xbf16>
      tpu.vector_store %arg22[%c2_168, %c0_169, %c0_170], %255 {strides = array<i32>} : memref<4x128x32xbf16, #tpu.memory_space<vmem>>, vector<1x128x32xbf16>,
      %c3_171 = arith.constant 3 : index
      %c0_172 = arith.constant 0 : index
      %c0_173 = arith.constant 0 : index
      %256 = vector.load %arg6[%c3_171, %c0_172, %c0_173] : memref<4x128x32xbf16, #tpu.memory_space<vmem>>, vector<1x128x32xbf16>
      %257 = vector.shape_cast %256 : vector<1x128x32xbf16> to vector<128x32xbf16>
      %cst_174 = arith.constant dense<0.000000e+00> : vector<128x32xf32>
      %258 = tpu.matmul %189, %257, %cst_174 {dimension_numbers = #tpu.dot_dimension_numbers<[1], [0], [0], [1], [0, 0, 1, 1], [], []>} : vector<128x128xbf16>, vector<128x32xbf16>, vector<128x32xf32> -> vector<128x32xf32>
      %c3_175 = arith.constant 3 : index
      %c0_176 = arith.constant 0 : index
      %c0_177 = arith.constant 0 : index
      %259 = vector.load %arg7[%c3_175, %c0_176, %c0_177] : memref<4x1x32xf32, #tpu.memory_space<vmem>>, vector<1x1x32xf32>
      %260 = vector.shape_cast %259 : vector<1x1x32xf32> to vector<1x32xf32>
      %261 = vector.broadcast %260 : vector<1x32xf32> to vector<128x32xf32>
      %262 = arith.addf %258, %261 : vector<128x32xf32>
      %c3_178 = arith.constant 3 : index
      %c0_179 = arith.constant 0 : index
      %c0_180 = arith.constant 0 : index
      %263 = vector.load %arg8[%c3_178, %c0_179, %c0_180] : memref<4x128x32xbf16, #tpu.memory_space<vmem>>, vector<1x128x32xbf16>
      %264 = vector.shape_cast %263 : vector<1x128x32xbf16> to vector<128x32xbf16>
      %cst_181 = arith.constant dense<0.000000e+00> : vector<128x32xf32>
      %265 = tpu.matmul %189, %264, %cst_181 {dimension_numbers = #tpu.dot_dimension_numbers<[1], [0], [0], [1], [0, 0, 1, 1], [], []>} : vector<128x128xbf16>, vector<128x32xbf16>, vector<128x32xf32> -> vector<128x32xf32>
      %c3_182 = arith.constant 3 : index
      %c0_183 = arith.constant 0 : index
      %c0_184 = arith.constant 0 : index
      %266 = vector.load %arg9[%c3_182, %c0_183, %c0_184] : memref<4x1x32xf32, #tpu.memory_space<vmem>>, vector<1x1x32xf32>
      %267 = vector.shape_cast %266 : vector<1x1x32xf32> to vector<1x32xf32>
      %268 = vector.broadcast %267 : vector<1x32xf32> to vector<128x32xf32>
      %269 = arith.addf %265, %268 : vector<128x32xf32>
      %270 = arith.truncf %262 : vector<128x32xf32> to vector<128x32xbf16>
      %c3_185 = arith.constant 3 : index
      %c0_186 = arith.constant 0 : index
      %c0_187 = arith.constant 0 : index
      %271 = vector.load %arg21[%c3_185, %c0_186, %c0_187] : memref<4x128x32xbf16, #tpu.memory_space<vmem>>, vector<1x128x32xbf16>
      %272 = vector.shape_cast %271 : vector<1x128x32xbf16> to vector<128x32xbf16>
      %273 = vector.shape_cast %270 : vector<128x32xbf16> to vector<1x128x32xbf16>
      tpu.vector_store %arg21[%c3_185, %c0_186, %c0_187], %273 {strides = array<i32>} : memref<4x128x32xbf16, #tpu.memory_space<vmem>>, vector<1x128x32xbf16>,
      %274 = arith.truncf %269 : vector<128x32xf32> to vector<128x32xbf16>
      %c3_188 = arith.constant 3 : index
      %c0_189 = arith.constant 0 : index
      %c0_190 = arith.constant 0 : index
      %275 = vector.load %arg22[%c3_188, %c0_189, %c0_190] : memref<4x128x32xbf16, #tpu.memory_space<vmem>>, vector<1x128x32xbf16>
      %276 = vector.shape_cast %275 : vector<1x128x32xbf16> to vector<128x32xbf16>
      %277 = vector.shape_cast %274 : vector<128x32xbf16> to vector<1x128x32xbf16>
      tpu.vector_store %arg22[%c3_188, %c0_189, %c0_190], %277 {strides = array<i32>} : memref<4x128x32xbf16, #tpu.memory_space<vmem>>, vector<1x128x32xbf16>,
    } else {
    }
    %c0 = arith.constant 0 : index
    %c0_1 = arith.constant 0 : index
    %c0_2 = arith.constant 0 : index
    %3 = vector.load %arg2[%c0, %c0_1, %c0_2] : memref<1x128x128xf32, #tpu.memory_space<vmem>>, vector<1x128x128xf32>
    %4 = vector.shape_cast %3 : vector<1x128x128xf32> to vector<128x128xf32>
    %5 = arith.truncf %4 : vector<128x128xf32> to vector<128x128xbf16>
    %c0_3 = arith.constant 0 : index
    %c0_4 = arith.constant 0 : index
    %c0_5 = arith.constant 0 : index
    %6 = vector.load %arg4[%c0_3, %c0_4, %c0_5] : memref<4x128x32xbf16, #tpu.memory_space<vmem>>, vector<1x128x32xbf16>
    %7 = vector.shape_cast %6 : vector<1x128x32xbf16> to vector<128x32xbf16>
    %cst = arith.constant dense<0.000000e+00> : vector<128x32xf32>
    %8 = tpu.matmul %5, %7, %cst {dimension_numbers = #tpu.dot_dimension_numbers<[1], [0], [0], [1], [0, 0, 1, 1], [], []>} : vector<128x128xbf16>, vector<128x32xbf16>, vector<128x32xf32> -> vector<128x32xf32>
    %c0_6 = arith.constant 0 : index
    %c0_7 = arith.constant 0 : index
    %c0_8 = arith.constant 0 : index
    %9 = vector.load %arg5[%c0_6, %c0_7, %c0_8] : memref<4x1x32xf32, #tpu.memory_space<vmem>>, vector<1x1x32xf32>
    %10 = vector.shape_cast %9 : vector<1x1x32xf32> to vector<1x32xf32>
    %11 = vector.broadcast %10 : vector<1x32xf32> to vector<128x32xf32>
    %12 = arith.addf %8, %11 : vector<128x32xf32>
    %cst_9 = arith.constant 0.176776692 : f32
    %13 = vector.broadcast %cst_9 : f32 to vector<128x32xf32>
    %14 = arith.mulf %12, %13 : vector<128x32xf32>
    %15 = arith.truncf %14 : vector<128x32xf32> to vector<128x32xbf16>
    %c0_10 = arith.constant 0 : index
    %c0_11 = arith.constant 0 : index
    %c0_12 = arith.constant 0 : index
    %16 = vector.load %arg21[%c0_10, %c0_11, %c0_12] : memref<4x128x32xbf16, #tpu.memory_space<vmem>>, vector<1x128x32xbf16>
    %17 = vector.shape_cast %16 : vector<1x128x32xbf16> to vector<128x32xbf16>
    %cst_13 = arith.constant dense<0.000000e+00> : vector<128x128xf32>
    %18 = tpu.matmul %15, %17, %cst_13 {dimension_numbers = #tpu.dot_dimension_numbers<[1], [1], [0], [0], [0, 0, 1, 0], [], []>} : vector<128x32xbf16>, vector<128x32xbf16>, vector<128x128xf32> -> vector<128x128xf32>
    %cst_14 = arith.constant dense<0xFF800000> : vector<128xf32>
    %19 = vector.multi_reduction <maximumf>, %18, %cst_14 [1] : vector<128x128xf32> to vector<128xf32>
    %20 = vector.shape_cast %19 : vector<128xf32> to vector<128x1xf32>
    %21 = vector.broadcast %20 : vector<128x1xf32> to vector<128x128xf32>
    %22 = arith.subf %18, %21 : vector<128x128xf32>
    %23 = math.exp %22 : vector<128x128xf32>
    %cst_15 = arith.constant dense<0.000000e+00> : vector<128xf32>
    %24 = vector.multi_reduction <add>, %23, %cst_15 [1] : vector<128x128xf32> to vector<128xf32>
    %25 = vector.shape_cast %24 : vector<128xf32> to vector<128x1xf32>
    %26 = tpu.reciprocal %25 {approx = true} : vector<128x1xf32> -> vector<128x1xf32>
    %27 = vector.broadcast %26 : vector<128x1xf32> to vector<128x128xf32>
    %28 = arith.mulf %23, %27 : vector<128x128xf32>
    %29 = arith.truncf %28 : vector<128x128xf32> to vector<128x128xbf16>
    %c0_16 = arith.constant 0 : index
    %c0_17 = arith.constant 0 : index
    %c0_18 = arith.constant 0 : index
    %30 = vector.load %arg22[%c0_16, %c0_17, %c0_18] : memref<4x128x32xbf16, #tpu.memory_space<vmem>>, vector<1x128x32xbf16>
    %31 = vector.shape_cast %30 : vector<1x128x32xbf16> to vector<128x32xbf16>
    %cst_19 = arith.constant dense<0.000000e+00> : vector<128x32xf32>
    %32 = tpu.matmul %29, %31, %cst_19 {dimension_numbers = #tpu.dot_dimension_numbers<[1], [0], [0], [1], [0, 0, 1, 1], [], []>} : vector<128x128xbf16>, vector<128x32xbf16>, vector<128x32xf32> -> vector<128x32xf32>
    %c1 = arith.constant 1 : index
    %c0_20 = arith.constant 0 : index
    %c0_21 = arith.constant 0 : index
    %33 = vector.load %arg4[%c1, %c0_20, %c0_21] : memref<4x128x32xbf16, #tpu.memory_space<vmem>>, vector<1x128x32xbf16>
    %34 = vector.shape_cast %33 : vector<1x128x32xbf16> to vector<128x32xbf16>
    %cst_22 = arith.constant dense<0.000000e+00> : vector<128x32xf32>
    %35 = tpu.matmul %5, %34, %cst_22 {dimension_numbers = #tpu.dot_dimension_numbers<[1], [0], [0], [1], [0, 0, 1, 1], [], []>} : vector<128x128xbf16>, vector<128x32xbf16>, vector<128x32xf32> -> vector<128x32xf32>
    %c1_23 = arith.constant 1 : index
    %c0_24 = arith.constant 0 : index
    %c0_25 = arith.constant 0 : index
    %36 = vector.load %arg5[%c1_23, %c0_24, %c0_25] : memref<4x1x32xf32, #tpu.memory_space<vmem>>, vector<1x1x32xf32>
    %37 = vector.shape_cast %36 : vector<1x1x32xf32> to vector<1x32xf32>
    %38 = vector.broadcast %37 : vector<1x32xf32> to vector<128x32xf32>
    %39 = arith.addf %35, %38 : vector<128x32xf32>
    %cst_26 = arith.constant 0.176776692 : f32
    %40 = vector.broadcast %cst_26 : f32 to vector<128x32xf32>
    %41 = arith.mulf %39, %40 : vector<128x32xf32>
    %42 = arith.truncf %41 : vector<128x32xf32> to vector<128x32xbf16>
    %c1_27 = arith.constant 1 : index
    %c0_28 = arith.constant 0 : index
    %c0_29 = arith.constant 0 : index
    %43 = vector.load %arg21[%c1_27, %c0_28, %c0_29] : memref<4x128x32xbf16, #tpu.memory_space<vmem>>, vector<1x128x32xbf16>
    %44 = vector.shape_cast %43 : vector<1x128x32xbf16> to vector<128x32xbf16>
    %cst_30 = arith.constant dense<0.000000e+00> : vector<128x128xf32>
    %45 = tpu.matmul %42, %44, %cst_30 {dimension_numbers = #tpu.dot_dimension_numbers<[1], [1], [0], [0], [0, 0, 1, 0], [], []>} : vector<128x32xbf16>, vector<128x32xbf16>, vector<128x128xf32> -> vector<128x128xf32>
    %cst_31 = arith.constant dense<0xFF800000> : vector<128xf32>
    %46 = vector.multi_reduction <maximumf>, %45, %cst_31 [1] : vector<128x128xf32> to vector<128xf32>
    %47 = vector.shape_cast %46 : vector<128xf32> to vector<128x1xf32>
    %48 = vector.broadcast %47 : vector<128x1xf32> to vector<128x128xf32>
    %49 = arith.subf %45, %48 : vector<128x128xf32>
    %50 = math.exp %49 : vector<128x128xf32>
    %cst_32 = arith.constant dense<0.000000e+00> : vector<128xf32>
    %51 = vector.multi_reduction <add>, %50, %cst_32 [1] : vector<128x128xf32> to vector<128xf32>
    %52 = vector.shape_cast %51 : vector<128xf32> to vector<128x1xf32>
    %53 = tpu.reciprocal %52 {approx = true} : vector<128x1xf32> -> vector<128x1xf32>
    %54 = vector.broadcast %53 : vector<128x1xf32> to vector<128x128xf32>
    %55 = arith.mulf %50, %54 : vector<128x128xf32>
    %56 = arith.truncf %55 : vector<128x128xf32> to vector<128x128xbf16>
    %c1_33 = arith.constant 1 : index
    %c0_34 = arith.constant 0 : index
    %c0_35 = arith.constant 0 : index
    %57 = vector.load %arg22[%c1_33, %c0_34, %c0_35] : memref<4x128x32xbf16, #tpu.memory_space<vmem>>, vector<1x128x32xbf16>
    %58 = vector.shape_cast %57 : vector<1x128x32xbf16> to vector<128x32xbf16>
    %cst_36 = arith.constant dense<0.000000e+00> : vector<128x32xf32>
    %59 = tpu.matmul %56, %58, %cst_36 {dimension_numbers = #tpu.dot_dimension_numbers<[1], [0], [0], [1], [0, 0, 1, 1], [], []>} : vector<128x128xbf16>, vector<128x32xbf16>, vector<128x32xf32> -> vector<128x32xf32>
    %c2 = arith.constant 2 : index
    %c0_37 = arith.constant 0 : index
    %c0_38 = arith.constant 0 : index
    %60 = vector.load %arg4[%c2, %c0_37, %c0_38] : memref<4x128x32xbf16, #tpu.memory_space<vmem>>, vector<1x128x32xbf16>
    %61 = vector.shape_cast %60 : vector<1x128x32xbf16> to vector<128x32xbf16>
    %cst_39 = arith.constant dense<0.000000e+00> : vector<128x32xf32>
    %62 = tpu.matmul %5, %61, %cst_39 {dimension_numbers = #tpu.dot_dimension_numbers<[1], [0], [0], [1], [0, 0, 1, 1], [], []>} : vector<128x128xbf16>, vector<128x32xbf16>, vector<128x32xf32> -> vector<128x32xf32>
    %c2_40 = arith.constant 2 : index
    %c0_41 = arith.constant 0 : index
    %c0_42 = arith.constant 0 : index
    %63 = vector.load %arg5[%c2_40, %c0_41, %c0_42] : memref<4x1x32xf32, #tpu.memory_space<vmem>>, vector<1x1x32xf32>
    %64 = vector.shape_cast %63 : vector<1x1x32xf32> to vector<1x32xf32>
    %65 = vector.broadcast %64 : vector<1x32xf32> to vector<128x32xf32>
    %66 = arith.addf %62, %65 : vector<128x32xf32>
    %cst_43 = arith.constant 0.176776692 : f32
    %67 = vector.broadcast %cst_43 : f32 to vector<128x32xf32>
    %68 = arith.mulf %66, %67 : vector<128x32xf32>
    %69 = arith.truncf %68 : vector<128x32xf32> to vector<128x32xbf16>
    %c2_44 = arith.constant 2 : index
    %c0_45 = arith.constant 0 : index
    %c0_46 = arith.constant 0 : index
    %70 = vector.load %arg21[%c2_44, %c0_45, %c0_46] : memref<4x128x32xbf16, #tpu.memory_space<vmem>>, vector<1x128x32xbf16>
    %71 = vector.shape_cast %70 : vector<1x128x32xbf16> to vector<128x32xbf16>
    %cst_47 = arith.constant dense<0.000000e+00> : vector<128x128xf32>
    %72 = tpu.matmul %69, %71, %cst_47 {dimension_numbers = #tpu.dot_dimension_numbers<[1], [1], [0], [0], [0, 0, 1, 0], [], []>} : vector<128x32xbf16>, vector<128x32xbf16>, vector<128x128xf32> -> vector<128x128xf32>
    %cst_48 = arith.constant dense<0xFF800000> : vector<128xf32>
    %73 = vector.multi_reduction <maximumf>, %72, %cst_48 [1] : vector<128x128xf32> to vector<128xf32>
    %74 = vector.shape_cast %73 : vector<128xf32> to vector<128x1xf32>
    %75 = vector.broadcast %74 : vector<128x1xf32> to vector<128x128xf32>
    %76 = arith.subf %72, %75 : vector<128x128xf32>
    %77 = math.exp %76 : vector<128x128xf32>
    %cst_49 = arith.constant dense<0.000000e+00> : vector<128xf32>
    %78 = vector.multi_reduction <add>, %77, %cst_49 [1] : vector<128x128xf32> to vector<128xf32>
    %79 = vector.shape_cast %78 : vector<128xf32> to vector<128x1xf32>
    %80 = tpu.reciprocal %79 {approx = true} : vector<128x1xf32> -> vector<128x1xf32>
    %81 = vector.broadcast %80 : vector<128x1xf32> to vector<128x128xf32>
    %82 = arith.mulf %77, %81 : vector<128x128xf32>
    %83 = arith.truncf %82 : vector<128x128xf32> to vector<128x128xbf16>
    %c2_50 = arith.constant 2 : index
    %c0_51 = arith.constant 0 : index
    %c0_52 = arith.constant 0 : index
    %84 = vector.load %arg22[%c2_50, %c0_51, %c0_52] : memref<4x128x32xbf16, #tpu.memory_space<vmem>>, vector<1x128x32xbf16>
    %85 = vector.shape_cast %84 : vector<1x128x32xbf16> to vector<128x32xbf16>
    %cst_53 = arith.constant dense<0.000000e+00> : vector<128x32xf32>
    %86 = tpu.matmul %83, %85, %cst_53 {dimension_numbers = #tpu.dot_dimension_numbers<[1], [0], [0], [1], [0, 0, 1, 1], [], []>} : vector<128x128xbf16>, vector<128x32xbf16>, vector<128x32xf32> -> vector<128x32xf32>
    %c3 = arith.constant 3 : index
    %c0_54 = arith.constant 0 : index
    %c0_55 = arith.constant 0 : index
    %87 = vector.load %arg4[%c3, %c0_54, %c0_55] : memref<4x128x32xbf16, #tpu.memory_space<vmem>>, vector<1x128x32xbf16>
    %88 = vector.shape_cast %87 : vector<1x128x32xbf16> to vector<128x32xbf16>
    %cst_56 = arith.constant dense<0.000000e+00> : vector<128x32xf32>
    %89 = tpu.matmul %5, %88, %cst_56 {dimension_numbers = #tpu.dot_dimension_numbers<[1], [0], [0], [1], [0, 0, 1, 1], [], []>} : vector<128x128xbf16>, vector<128x32xbf16>, vector<128x32xf32> -> vector<128x32xf32>
    %c3_57 = arith.constant 3 : index
    %c0_58 = arith.constant 0 : index
    %c0_59 = arith.constant 0 : index
    %90 = vector.load %arg5[%c3_57, %c0_58, %c0_59] : memref<4x1x32xf32, #tpu.memory_space<vmem>>, vector<1x1x32xf32>
    %91 = vector.shape_cast %90 : vector<1x1x32xf32> to vector<1x32xf32>
    %92 = vector.broadcast %91 : vector<1x32xf32> to vector<128x32xf32>
    %93 = arith.addf %89, %92 : vector<128x32xf32>
    %cst_60 = arith.constant 0.176776692 : f32
    %94 = vector.broadcast %cst_60 : f32 to vector<128x32xf32>
    %95 = arith.mulf %93, %94 : vector<128x32xf32>
    %96 = arith.truncf %95 : vector<128x32xf32> to vector<128x32xbf16>
    %c3_61 = arith.constant 3 : index
    %c0_62 = arith.constant 0 : index
    %c0_63 = arith.constant 0 : index
    %97 = vector.load %arg21[%c3_61, %c0_62, %c0_63] : memref<4x128x32xbf16, #tpu.memory_space<vmem>>, vector<1x128x32xbf16>
    %98 = vector.shape_cast %97 : vector<1x128x32xbf16> to vector<128x32xbf16>
    %cst_64 = arith.constant dense<0.000000e+00> : vector<128x128xf32>
    %99 = tpu.matmul %96, %98, %cst_64 {dimension_numbers = #tpu.dot_dimension_numbers<[1], [1], [0], [0], [0, 0, 1, 0], [], []>} : vector<128x32xbf16>, vector<128x32xbf16>, vector<128x128xf32> -> vector<128x128xf32>
    %cst_65 = arith.constant dense<0xFF800000> : vector<128xf32>
    %100 = vector.multi_reduction <maximumf>, %99, %cst_65 [1] : vector<128x128xf32> to vector<128xf32>
    %101 = vector.shape_cast %100 : vector<128xf32> to vector<128x1xf32>
    %102 = vector.broadcast %101 : vector<128x1xf32> to vector<128x128xf32>
    %103 = arith.subf %99, %102 : vector<128x128xf32>
    %104 = math.exp %103 : vector<128x128xf32>
    %cst_66 = arith.constant dense<0.000000e+00> : vector<128xf32>
    %105 = vector.multi_reduction <add>, %104, %cst_66 [1] : vector<128x128xf32> to vector<128xf32>
    %106 = vector.shape_cast %105 : vector<128xf32> to vector<128x1xf32>
    %107 = tpu.reciprocal %106 {approx = true} : vector<128x1xf32> -> vector<128x1xf32>
    %108 = vector.broadcast %107 : vector<128x1xf32> to vector<128x128xf32>
    %109 = arith.mulf %104, %108 : vector<128x128xf32>
    %110 = arith.truncf %109 : vector<128x128xf32> to vector<128x128xbf16>
    %c3_67 = arith.constant 3 : index
    %c0_68 = arith.constant 0 : index
    %c0_69 = arith.constant 0 : index
    %111 = vector.load %arg22[%c3_67, %c0_68, %c0_69] : memref<4x128x32xbf16, #tpu.memory_space<vmem>>, vector<1x128x32xbf16>
    %112 = vector.shape_cast %111 : vector<1x128x32xbf16> to vector<128x32xbf16>
    %cst_70 = arith.constant dense<0.000000e+00> : vector<128x32xf32>
    %113 = tpu.matmul %110, %112, %cst_70 {dimension_numbers = #tpu.dot_dimension_numbers<[1], [0], [0], [1], [0, 0, 1, 1], [], []>} : vector<128x128xbf16>, vector<128x32xbf16>, vector<128x32xf32> -> vector<128x32xf32>
    %114 = tpu.concatenate %32, %59, %86, %113 in 1 : vector<128x32xf32>, vector<128x32xf32>, vector<128x32xf32>, vector<128x32xf32> -> vector<128x128xf32>
    %115 = arith.truncf %114 : vector<128x128xf32> to vector<128x128xbf16>
    %c0_71 = arith.constant 0 : index
    %c0_72 = arith.constant 0 : index
    %116 = vector.load %arg10[%c0_71, %c0_72] : memref<128x128xbf16, #tpu.memory_space<vmem>>, vector<128x128xbf16>
    %cst_73 = arith.constant dense<0.000000e+00> : vector<128x128xf32>
    %117 = tpu.matmul %115, %116, %cst_73 {dimension_numbers = #tpu.dot_dimension_numbers<[1], [0], [0], [1], [0, 0, 1, 1], [], []>} : vector<128x128xbf16>, vector<128x128xbf16>, vector<128x128xf32> -> vector<128x128xf32>
    %c0_74 = arith.constant 0 : index
    %c0_75 = arith.constant 0 : index
    %118 = vector.load %arg11[%c0_74, %c0_75] : memref<1x128xf32, #tpu.memory_space<vmem>>, vector<1x128xf32>
    %119 = vector.broadcast %118 : vector<1x128xf32> to vector<128x128xf32>
    %120 = arith.addf %117, %119 : vector<128x128xf32>
    %121 = arith.addf %4, %120 : vector<128x128xf32>
    %c0_76 = arith.constant 0 : index
    %c0_77 = arith.constant 0 : index
    %122 = vector.load %arg12[%c0_76, %c0_77] : memref<1x128xf32, #tpu.memory_space<vmem>>, vector<1x128xf32>
    %c0_78 = arith.constant 0 : index
    %c0_79 = arith.constant 0 : index
    %123 = vector.load %arg13[%c0_78, %c0_79] : memref<1x128xf32, #tpu.memory_space<vmem>>, vector<1x128xf32>
    %cst_80 = arith.constant dense<0.000000e+00> : vector<128xf32>
    %124 = vector.multi_reduction <add>, %121, %cst_80 [1] : vector<128x128xf32> to vector<128xf32>
    %125 = vector.shape_cast %124 : vector<128xf32> to vector<128x1xf32>
    %cst_81 = arith.constant 1.280000e+02 : f32
    %126 = vector.broadcast %cst_81 : f32 to vector<128x1xf32>
    %127 = arith.divf %125, %126 : vector<128x1xf32>
    %128 = vector.broadcast %127 : vector<128x1xf32> to vector<128x128xf32>
    %129 = arith.subf %121, %128 : vector<128x128xf32>
    %130 = arith.mulf %129, %129 : vector<128x128xf32>
    %cst_82 = arith.constant dense<0.000000e+00> : vector<128xf32>
    %131 = vector.multi_reduction <add>, %130, %cst_82 [1] : vector<128x128xf32> to vector<128xf32>
    %132 = vector.shape_cast %131 : vector<128xf32> to vector<128x1xf32>
    %cst_83 = arith.constant 1.280000e+02 : f32
    %133 = vector.broadcast %cst_83 : f32 to vector<128x1xf32>
    %134 = arith.divf %132, %133 : vector<128x1xf32>
    %135 = vector.broadcast %127 : vector<128x1xf32> to vector<128x128xf32>
    %136 = arith.subf %121, %135 : vector<128x128xf32>
    %cst_84 = arith.constant 9.99999974E-6 : f32
    %137 = vector.broadcast %cst_84 : f32 to vector<128x1xf32>
    %138 = arith.addf %134, %137 : vector<128x1xf32>
    %139 = math.rsqrt %138 : vector<128x1xf32>
    %140 = vector.broadcast %139 : vector<128x1xf32> to vector<128x128xf32>
    %141 = arith.mulf %136, %140 : vector<128x128xf32>
    %142 = vector.broadcast %122 : vector<1x128xf32> to vector<128x128xf32>
    %143 = arith.mulf %141, %142 : vector<128x128xf32>
    %144 = vector.broadcast %123 : vector<1x128xf32> to vector<128x128xf32>
    %145 = arith.addf %143, %144 : vector<128x128xf32>
    %146 = arith.truncf %145 : vector<128x128xf32> to vector<128x128xbf16>
    %c0_85 = arith.constant 0 : index
    %c0_86 = arith.constant 0 : index
    %147 = vector.load %arg14[%c0_85, %c0_86] : memref<128x256xbf16, #tpu.memory_space<vmem>>, vector<128x256xbf16>
    %cst_87 = arith.constant dense<0.000000e+00> : vector<128x256xf32>
    %148 = tpu.matmul %146, %147, %cst_87 {dimension_numbers = #tpu.dot_dimension_numbers<[1], [0], [0], [1], [0, 0, 1, 1], [], []>} : vector<128x128xbf16>, vector<128x256xbf16>, vector<128x256xf32> -> vector<128x256xf32>
    %c0_88 = arith.constant 0 : index
    %c0_89 = arith.constant 0 : index
    %149 = vector.load %arg15[%c0_88, %c0_89] : memref<1x256xf32, #tpu.memory_space<vmem>>, vector<1x256xf32>
    %150 = vector.broadcast %149 : vector<1x256xf32> to vector<128x256xf32>
    %151 = arith.addf %148, %150 : vector<128x256xf32>
    %cst_90 = arith.constant 0.000000e+00 : f32
    %152 = vector.broadcast %cst_90 : f32 to vector<128x256xf32>
    %153 = arith.maximumf %151, %152 : vector<128x256xf32>
    %154 = arith.truncf %153 : vector<128x256xf32> to vector<128x256xbf16>
    %c0_91 = arith.constant 0 : index
    %c0_92 = arith.constant 0 : index
    %155 = vector.load %arg16[%c0_91, %c0_92] : memref<256x128xbf16, #tpu.memory_space<vmem>>, vector<256x128xbf16>
    %cst_93 = arith.constant dense<0.000000e+00> : vector<128x128xf32>
    %156 = tpu.matmul %154, %155, %cst_93 {dimension_numbers = #tpu.dot_dimension_numbers<[1], [0], [0], [1], [0, 0, 1, 1], [], []>} : vector<128x256xbf16>, vector<256x128xbf16>, vector<128x128xf32> -> vector<128x128xf32>
    %c0_94 = arith.constant 0 : index
    %c0_95 = arith.constant 0 : index
    %157 = vector.load %arg17[%c0_94, %c0_95] : memref<1x128xf32, #tpu.memory_space<vmem>>, vector<1x128xf32>
    %158 = vector.broadcast %157 : vector<1x128xf32> to vector<128x128xf32>
    %159 = arith.addf %156, %158 : vector<128x128xf32>
    %160 = arith.addf %145, %159 : vector<128x128xf32>
    %c0_96 = arith.constant 0 : index
    %c0_97 = arith.constant 0 : index
    %161 = vector.load %arg18[%c0_96, %c0_97] : memref<1x128xf32, #tpu.memory_space<vmem>>, vector<1x128xf32>
    %c0_98 = arith.constant 0 : index
    %c0_99 = arith.constant 0 : index
    %162 = vector.load %arg19[%c0_98, %c0_99] : memref<1x128xf32, #tpu.memory_space<vmem>>, vector<1x128xf32>
    %cst_100 = arith.constant dense<0.000000e+00> : vector<128xf32>
    %163 = vector.multi_reduction <add>, %160, %cst_100 [1] : vector<128x128xf32> to vector<128xf32>
    %164 = vector.shape_cast %163 : vector<128xf32> to vector<128x1xf32>
    %cst_101 = arith.constant 1.280000e+02 : f32
    %165 = vector.broadcast %cst_101 : f32 to vector<128x1xf32>
    %166 = arith.divf %164, %165 : vector<128x1xf32>
    %167 = vector.broadcast %166 : vector<128x1xf32> to vector<128x128xf32>
    %168 = arith.subf %160, %167 : vector<128x128xf32>
    %169 = arith.mulf %168, %168 : vector<128x128xf32>
    %cst_102 = arith.constant dense<0.000000e+00> : vector<128xf32>
    %170 = vector.multi_reduction <add>, %169, %cst_102 [1] : vector<128x128xf32> to vector<128xf32>
    %171 = vector.shape_cast %170 : vector<128xf32> to vector<128x1xf32>
    %cst_103 = arith.constant 1.280000e+02 : f32
    %172 = vector.broadcast %cst_103 : f32 to vector<128x1xf32>
    %173 = arith.divf %171, %172 : vector<128x1xf32>
    %174 = vector.broadcast %166 : vector<128x1xf32> to vector<128x128xf32>
    %175 = arith.subf %160, %174 : vector<128x128xf32>
    %cst_104 = arith.constant 9.99999974E-6 : f32
    %176 = vector.broadcast %cst_104 : f32 to vector<128x1xf32>
    %177 = arith.addf %173, %176 : vector<128x1xf32>
    %178 = math.rsqrt %177 : vector<128x1xf32>
    %179 = vector.broadcast %178 : vector<128x1xf32> to vector<128x128xf32>
    %180 = arith.mulf %175, %179 : vector<128x128xf32>
    %181 = vector.broadcast %161 : vector<1x128xf32> to vector<128x128xf32>
    %182 = arith.mulf %180, %181 : vector<128x128xf32>
    %183 = vector.broadcast %162 : vector<1x128xf32> to vector<128x128xf32>
    %184 = arith.addf %182, %183 : vector<128x128xf32>
    %c0_105 = arith.constant 0 : index
    %c0_106 = arith.constant 0 : index
    %c0_107 = arith.constant 0 : index
    %185 = vector.load %arg20[%c0_105, %c0_106, %c0_107] : memref<1x128x128xf32, #tpu.memory_space<vmem>>, vector<1x128x128xf32>
    %186 = vector.shape_cast %185 : vector<1x128x128xf32> to vector<128x128xf32>
    %187 = vector.shape_cast %184 : vector<128x128xf32> to vector<1x128x128xf32>
    tpu.vector_store %arg20[%c0_105, %c0_106, %c0_107], %187 {strides = array<i32>} : memref<1x128x128xf32, #tpu.memory_space<vmem>>, vector<1x128x128xf32>,
    return
  }
  func.func @transform_0(%arg0: i32, %arg1: i32) -> (i32, i32, i32) {
    %c0_i32 = arith.constant 0 : i32
    %c0_i32_0 = arith.constant 0 : i32
    return %arg0, %arg1, %c0_i32 : i32, i32, i32
  }
  func.func @transform_1(%arg0: i32, %arg1: i32) -> (i32, i32, i32) {
    %c0_i32 = arith.constant 0 : i32
    %c0_i32_0 = arith.constant 0 : i32
    %c0_i32_1 = arith.constant 0 : i32
    return %arg0, %c0_i32, %c0_i32_0 : i32, i32, i32
  }
  func.func @transform_2(%arg0: i32, %arg1: i32) -> (i32, i32, i32) {
    %c0_i32 = arith.constant 0 : i32
    %c0_i32_0 = arith.constant 0 : i32
    %c0_i32_1 = arith.constant 0 : i32
    %c0_i32_2 = arith.constant 0 : i32
    return %c0_i32, %c0_i32_0, %c0_i32_1 : i32, i32, i32
  }
  func.func @transform_3(%arg0: i32, %arg1: i32) -> (i32, i32, i32) {
    %c0_i32 = arith.constant 0 : i32
    %c0_i32_0 = arith.constant 0 : i32
    %c0_i32_1 = arith.constant 0 : i32
    %c0_i32_2 = arith.constant 0 : i32
    return %c0_i32, %c0_i32_0, %c0_i32_1 : i32, i32, i32
  }
  func.func @transform_4(%arg0: i32, %arg1: i32) -> (i32, i32, i32) {
    %c0_i32 = arith.constant 0 : i32
    %c0_i32_0 = arith.constant 0 : i32
    %c0_i32_1 = arith.constant 0 : i32
    %c0_i32_2 = arith.constant 0 : i32
    return %c0_i32, %c0_i32_0, %c0_i32_1 : i32, i32, i32
  }
  func.func @transform_5(%arg0: i32, %arg1: i32) -> (i32, i32, i32) {
    %c0_i32 = arith.constant 0 : i32
    %c0_i32_0 = arith.constant 0 : i32
    %c0_i32_1 = arith.constant 0 : i32
    %c0_i32_2 = arith.constant 0 : i32
    return %c0_i32, %c0_i32_0, %c0_i32_1 : i32, i32, i32
  }
  func.func @transform_6(%arg0: i32, %arg1: i32) -> (i32, i32, i32) {
    %c0_i32 = arith.constant 0 : i32
    %c0_i32_0 = arith.constant 0 : i32
    %c0_i32_1 = arith.constant 0 : i32
    %c0_i32_2 = arith.constant 0 : i32
    return %c0_i32, %c0_i32_0, %c0_i32_1 : i32, i32, i32
  }
  func.func @transform_7(%arg0: i32, %arg1: i32) -> (i32, i32, i32) {
    %c0_i32 = arith.constant 0 : i32
    %c0_i32_0 = arith.constant 0 : i32
    %c0_i32_1 = arith.constant 0 : i32
    %c0_i32_2 = arith.constant 0 : i32
    return %c0_i32, %c0_i32_0, %c0_i32_1 : i32, i32, i32
  }
  func.func @transform_8(%arg0: i32, %arg1: i32) -> (i32, i32) {
    %c0_i32 = arith.constant 0 : i32
    %c0_i32_0 = arith.constant 0 : i32
    %c0_i32_1 = arith.constant 0 : i32
    return %c0_i32, %c0_i32_0 : i32, i32
  }
  func.func @transform_9(%arg0: i32, %arg1: i32) -> (i32, i32) {
    %c0_i32 = arith.constant 0 : i32
    %c0_i32_0 = arith.constant 0 : i32
    %c0_i32_1 = arith.constant 0 : i32
    return %c0_i32, %c0_i32_0 : i32, i32
  }
  func.func @transform_10(%arg0: i32, %arg1: i32) -> (i32, i32) {
    %c0_i32 = arith.constant 0 : i32
    %c0_i32_0 = arith.constant 0 : i32
    %c0_i32_1 = arith.constant 0 : i32
    return %c0_i32, %c0_i32_0 : i32, i32
  }
  func.func @transform_11(%arg0: i32, %arg1: i32) -> (i32, i32) {
    %c0_i32 = arith.constant 0 : i32
    %c0_i32_0 = arith.constant 0 : i32
    %c0_i32_1 = arith.constant 0 : i32
    return %c0_i32, %c0_i32_0 : i32, i32
  }
  func.func @transform_12(%arg0: i32, %arg1: i32) -> (i32, i32) {
    %c0_i32 = arith.constant 0 : i32
    %c0_i32_0 = arith.constant 0 : i32
    %c0_i32_1 = arith.constant 0 : i32
    return %c0_i32, %c0_i32_0 : i32, i32
  }
  func.func @transform_13(%arg0: i32, %arg1: i32) -> (i32, i32) {
    %c0_i32 = arith.constant 0 : i32
    %c0_i32_0 = arith.constant 0 : i32
    %c0_i32_1 = arith.constant 0 : i32
    return %c0_i32, %c0_i32_0 : i32, i32
  }
  func.func @transform_14(%arg0: i32, %arg1: i32) -> (i32, i32) {
    %c0_i32 = arith.constant 0 : i32
    %c0_i32_0 = arith.constant 0 : i32
    %c0_i32_1 = arith.constant 0 : i32
    return %c0_i32, %c0_i32_0 : i32, i32
  }
  func.func @transform_15(%arg0: i32, %arg1: i32) -> (i32, i32) {
    %c0_i32 = arith.constant 0 : i32
    %c0_i32_0 = arith.constant 0 : i32
    %c0_i32_1 = arith.constant 0 : i32
    return %c0_i32, %c0_i32_0 : i32, i32
  }
  func.func @transform_16(%arg0: i32, %arg1: i32) -> (i32, i32) {
    %c0_i32 = arith.constant 0 : i32
    %c0_i32_0 = arith.constant 0 : i32
    %c0_i32_1 = arith.constant 0 : i32
    return %c0_i32, %c0_i32_0 : i32, i32
  }
  func.func @transform_17(%arg0: i32, %arg1: i32) -> (i32, i32) {
    %c0_i32 = arith.constant 0 : i32
    %c0_i32_0 = arith.constant 0 : i32
    %c0_i32_1 = arith.constant 0 : i32
    return %c0_i32, %c0_i32_0 : i32, i32
  }
  func.func @transform_18(%arg0: i32, %arg1: i32) -> (i32, i32, i32) {
    %c0_i32 = arith.constant 0 : i32
    %c0_i32_0 = arith.constant 0 : i32
    return %arg0, %arg1, %c0_i32 : i32, i32, i32
  }
}

</mosaic_0001>

<bundles_post_ra>
// kernel: tpu_custom_call.1
= control target key start
LH: loop header
LB: loop body
LE: loop exit
PB: predicated region body
PF: predicated region fallthrough
CT: control target
= control target key end

     0   :  { %s10788_s0 = inlined_call_operand.vmem [shape: f32[2,128,128], index: 0, kind: input, shape index: {}]   ;;  %s10789_s1 = inlined_call_operand.vmem [shape: bf16[2,128,128], index: 1, kind: input, shape index: {}]   ;;  %s10790_s2 = inlined_call_operand.vmem [shape: bf16[4,128,32], index: 2, kind: input, shape index: {}]   ;;  %s10791_s3 = inlined_call_operand.vmem [shape: f32[4,1,32], index: 3, kind: input, shape index: {}]   ;;  %s10792_s4 = inlined_call_operand.vmem [shape: bf16[4,128,32], index: 4, kind: input, shape index: {}]   ;;  %s10793_s5 = inlined_call_operand.vmem [shape: f32[4,1,32], index: 5, kind: input, shape index: {}]   ;;  %s10794_s6 = inlined_call_operand.vmem [shape: bf16[4,128,32], index: 6, kind: input, shape index: {}]   ;;  %s10795_s7 = inlined_call_operand.vmem [shape: f32[4,1,32], index: 7, kind: input, shape index: {}]   ;;  %s10796_s8 = inlined_call_operand.vmem [shape: bf16[128,128], index: 8, kind: input, shape index: {}]   ;;  %s10797_s9 = inlined_call_operand.vmem [shape: f32[1,128], index: 9, kind: input, shape index: {}]   ;;  %s10798_s10 = inlined_call_operand.vmem [shape: f32[1,128], index: 10, kind: input, shape index: {}]   ;;  %s10799_s11 = inlined_call_operand.vmem [shape: f32[1,128], index: 11, kind: input, shape index: {}]   ;;  %s10800_s12 = inlined_call_operand.vmem [shape: bf16[128,256], index: 12, kind: input, shape index: {}]   ;;  %s10801_s13 = inlined_call_operand.vmem [shape: f32[1,256], index: 13, kind: input, shape index: {}]   ;;  %s10802_s14 = inlined_call_operand.vmem [shape: bf16[256,128], index: 14, kind: input, shape index: {}]   ;;  %s10803_s15 = inlined_call_operand.vmem [shape: f32[1,128], index: 15, kind: input, shape index: {}]   ;;  %s10804_s16 = inlined_call_operand.vmem [shape: f32[1,128], index: 16, kind: input, shape index: {}]   ;;  %s10805_s17 = inlined_call_operand.vmem [shape: f32[1,128], index: 17, kind: input, shape index: {}]   ;;  %s10806_s18 = inlined_call_operand.hbm [shape: f32[2,128,128], index: 18, kind: output, shape index: {}]  }
   0x1   :  { %10814 = sst [smem:[#allocation30_spill]] %s10788_s0 }
   0x2   :  { %10815 = sst [smem:[#allocation31_spill]] %s10789_s1 }
   0x3   :  { %10816 = sst [smem:[#allocation32_spill]] %s10790_s2 }
   0x4   :  { %10817 = sst [smem:[#allocation33_spill]] %s10792_s4 }
   0x5   :  { %23 = vsyncpa [#allocation5], 0 }
   0x6   :  { %25 = vsyncpa [#allocation5 + $0x1], 0  ;;  %s8494_s27 = smov 0   ;;  %s8496_s28 = smov 0  }
   0x7   :  { %s8498_s29 = smov 0   ;;  %s8500_s30 = smov 0  }
   0x8   :  { %s8502_s0 = smov 0   ;;  %s8504_s19 = smov 0  }
   0x9 LB: > { %10818 = sst [smem:[#allocation7_spill]] %s8370_s27  ;;  %s6157_s1 = sadd.s32 4294967295, %s8390_s19   ;;  %s8390_s19 = sphi %s8504_s19, %s31_s19   ;;  %s8386_s0 = sphi %s8502_s0, %s10885_s0   ;;  %s8382_s30 = sphi %s8500_s30, %s10884_s30   ;;  %s8378_s29 = sphi %s8498_s29, %s10883_s29   ;;  %s8374_s28 = sphi %s8496_s28, %s10887_s28   ;;  %s8370_s27 = sphi %s8494_s27, %s10886_s27  }
   0xa   : > { %10819 = sst [smem:[#allocation8_spill]] %s8378_s29  ;;  %s6158_s20 = sadd.s32 4294967294, %s8390_s19  }
   0xb   : > { %10820 = sst [smem:[#allocation9_spill]] %s8386_s0  ;;  %s43_s21 = sadd.s32 1, %s8386_s0 }
   0xc   : > { %s442_s22 = sadd.s32 1, %s8378_s29  ;;  %p45_p0 = scmp.ge.s32.totalorder %s43_s21, 2 }
   0xd   : > { %p452_p1 = scmp.ne.s32.totalorder %s8378_s29, %s8374_s28  ;;  %p453_p2 = scmp.eq.s32.totalorder %s6157_s1, 1 }
   0xe   : > { %p458_p3 = scmp.ne.s32.totalorder %s8374_s28, %s8370_s27  ;;  %s10889_s21 = smov (%p45_p0, %s43_s21), 0 }
   0xf   : > { %10821 = sst [smem:[#allocation10_spill]] %s10889_s21  ;;  %p8534_p4 = por %p453_p2, %p452_p1 }
  0x10   : > { %p459_p5 = scmp.eq.s32.totalorder %s6158_s20, 1  ;;  %s437_s23 = ssub.s32 %s8386_s0, %s10889_s21 }
  0x11   : > { %p6161_p6 = scmp.ge.s32.totalorder %s8390_s19, 1  ;;  %p440_p7 = scmp.eq.s32.totalorder %s437_s23, 0 }
  0x12   : > { %p8541_p8 = por %p459_p5, %p458_p3  ;;  %p546_p9 = scmp.lt.s32.totalorder %s8390_s19, 3 }
  0x13   : > { %s8547_s25 = scalar_select %p440_p7, %s8378_s29, %s442_s22  }
  0x14   : > { %s10823_s24 = scalar_select %p8541_p8, 1, 0 }
  0x15   : > { %10825 = sst [smem:[#allocation12_spill]] %s8547_s25  ;;  %p547_p10 = pnand %p6161_p6, %p546_p9 }
  0x16   : > { %10824 = sst [smem:[#allocation11_spill]] %s10823_s24 }
  0x17   : > { %550 = sbr.rel (%p547_p10) target bundleno = 5010 (0x1392), region = 92 }
  0x1e   : > { %s10826_s4 = sld [smem:[#allocation33_spill]]  ;;  %p610_p11 = scmp.lt.s32.totalorder %s8382_s30, 1  ;;  %v7863_v17 = vld [vmem:[%s10794_s6] sm:$0xff]   ;;  %v7865_v18 = vld [vmem:[%s10794_s6 + $0x8] sm:$0xff]   ;;  %v7867_v20 = vld [vmem:[%s10794_s6 + $0x10] sm:$0xff]   ;;  %vm1038_vm0 = vcmask 261120  }
  0x1f   : > { %s10827_s29 = sld [smem:[#allocation31_spill]]  ;;  %6954 = vmatprep.subr.bf16.mxu1 %v7863_v17  ;;  %v7869_v24 = vld [vmem:[%s10794_s6 + $0x18] sm:$0xff]   ;;  %v7871_v26 = vld [vmem:[%s10794_s6 + $0x20] sm:$0xff]   ;;  %v7873_v29 = vld [vmem:[%s10794_s6 + $0x28] sm:$0xff]   ;;  %s10828_s21 = sld [smem:[#allocation32_spill]]  ;;  %vm4838_vm1 = vcmask 523264  }
  0x20   : > { %s8557_s23 = scalar_select %p610_p11, %s8382_s30, 1  ;;  %6955 = vmatpush3.bf16.msra.mxu1 %v7863_v17  ;;  %v7875_v31 = vld [vmem:[%s10794_s6 + $0x30] sm:$0xff]   ;;  %v7877_v33 = vld [vmem:[%s10794_s6 + $0x38] sm:$0xff]   ;;  %v7879_v35 = vld [vmem:[%s10794_s6 + $0x40] sm:$0xff]   ;;  %vm4855_vm2 = vcmask 785408  }
  0x21   : > { %6956 = vmatprep.subr.bf16.mxu1 %v7865_v18  ;;  %v7880_v37 = vld [vmem:[%s10794_s6 + $0x48] sm:$0xff]   ;;  %v7881_v39 = vld [vmem:[%s10794_s6 + $0x50] sm:$0xff]   ;;  %v7882_v41 = vld [vmem:[%s10794_s6 + $0x58] sm:$0xff]   ;;  %s10829_s0 = sld [smem:[#allocation30_spill]]  ;;  %s8392_s1 = smov 32  }
  0x22   : > { %s6520_s25 = sshll.u32 %s8557_s23, 6  ;;  %v7883_v43 = vld [vmem:[%s10794_s6 + $0x60] sm:$0xff]   ;;  %v7884_v45 = vld [vmem:[%s10794_s6 + $0x68] sm:$0xff]   ;;  %v7885_v47 = vld [vmem:[%s10794_s6 + $0x70] sm:$0xff]   ;;  %s6519_s22 = sshll.u32 %s8557_s23, 7 }
  0x23   : > { %v7886_v49 = vld [vmem:[%s10794_s6 + $0x78] sm:$0xff]   ;;  %v7887_v51 = vld [vmem:[%s10794_s6 + $0x80] sm:$0xff]   ;;  %v7888_v53 = vld [vmem:[%s10794_s6 + $0x88] sm:$0xff]   ;;  %s8393_s20 = smov 64  }
  0x24   : > { %v7823_v0 = vld [vmem:[%s10826_s4] sm:$0xff]   ;;  %v7824_v1 = vld [vmem:[%s10826_s4 + $0x8] sm:$0xff]   ;;  %v7825_v2 = vld [vmem:[%s10826_s4 + $0x10] sm:$0xff]   ;;  %6957 = vmatpush3.bf16.msra.mxu1 %v7865_v18 }
  0x25   : > { %6922 = vmatprep.subr.bf16.mxu0 %v7823_v0  ;;  %s8566_s24 = scalar_lea.vmem %s10827_s29, %s6520_s25  ;;  %v7826_v3 = vld [vmem:[%s10826_s4 + $0x18] sm:$0xff]   ;;  %v7827_v5 = vld [vmem:[%s10826_s4 + $0x20] sm:$0xff]   ;;  %v7828_v6 = vld [vmem:[%s10826_s4 + $0x28] sm:$0xff]   ;;  %6958 = vmatprep.subr.bf16.mxu1 %v7867_v20  ;;  %s6521_s25 = sshll.u32 %s8382_s30, 11 }
  0x26   : > { %6923 = vmatpush3.bf16.msra.mxu0 %v7823_v0  ;;  %v8572_v4 = vld [vmem:[%s8566_s24] sm:$0xff]   ;;  %v7829_v7 = vld [vmem:[%s10826_s4 + $0x30] sm:$0xff]   ;;  %v7830_v8 = vld [vmem:[%s10826_s4 + $0x38] sm:$0xff]  }
  0x27   : > { %6924 = vmatprep.subr.bf16.mxu0 %v7824_v1  ;;  %6938 = vmatprep.mubr.bf16.mxu0 %v8572_v4  ;;  %v7833_v9 = vld [vmem:[%s10826_s4 + $0x40] sm:$0xff]   ;;  %v8592_v10 = vld [vmem:[%s8566_s24 + $0x8] sm:$0xff]   ;;  %v8595_v11 = vld [vmem:[%s8566_s24 + $0x10] sm:$0xff]   ;;  %s8830_s27 = scalar_lea.vmem %s10829_s0, %s6519_s22  ;;  %s8394_s0 = smov 96  }
  0x28   : > { %6970 = vmatprep.mubr.bf16.mxu1 %v8572_v4  ;;  %v7834_v12 = vld [vmem:[%s10826_s4 + $0x48] sm:$0xff]   ;;  %v7837_v13 = vld [vmem:[%s10826_s4 + $0x50] sm:$0xff]   ;;  %v8606_v14 = vld [vmem:[%s8566_s24 + $0x18] sm:$0xff]   ;;  %6959 = vmatpush3.bf16.msra.mxu1 %v7867_v20  ;;  %s10733_s22 = scalar_lea.hbm %s10806_s18, %s6521_s25 }
  0x29   : > { %v7838_v15 = vld [vmem:[%s10826_s4 + $0x58] sm:$0xff]   ;;  %v8612_v16 = vld [vmem:[%s8566_s24 + $0x20] sm:$0xff]   ;;  %v8629_v21 = vld [vmem:[%s8566_s24 + $0x28] sm:$0xff]   ;;  %6960 = vmatprep.subr.bf16.mxu1 %v7869_v24 }
  0x2a   : > { %6925 = vmatpush3.bf16.msra.mxu0 %v7824_v1  ;;  %v7841_v19 = vld [vmem:[%s10826_s4 + $0x60] sm:$0xff]   ;;  %v8632_v22 = vld [vmem:[%s8566_s24 + $0x30] sm:$0xff]   ;;  %v7842_v23 = vld [vmem:[%s10826_s4 + $0x68] sm:$0xff]  }
  0x2b   : > { %6926 = vmatprep.subr.bf16.mxu0 %v7825_v2  ;;  %v7845_v25 = vld [vmem:[%s10826_s4 + $0x70] sm:$0xff]   ;;  %v8649_v27 = vld [vmem:[%s8566_s24 + $0x38] sm:$0xff]   ;;  %v7847_v30 = vld [vmem:[%s10826_s4 + $0x80] sm:$0xff]  }
  0x2c   : > { %v7846_v28 = vld [vmem:[%s10826_s4 + $0x78] sm:$0xff]   ;;  %6961 = vmatpush3.bf16.msra.mxu1 %v7869_v24  ;;  %v7848_v32 = vld [vmem:[%s10826_s4 + $0x88] sm:$0xff]   ;;  %v7849_v34 = vld [vmem:[%s10826_s4 + $0x90] sm:$0xff]  }
  0x2d   : > { %6962 = vmatprep.subr.bf16.mxu1 %v7871_v26  ;;  %v7850_v36 = vld [vmem:[%s10826_s4 + $0x98] sm:$0xff]   ;;  %v7851_v38 = vld [vmem:[%s10826_s4 + $0xa0] sm:$0xff]   ;;  %v7852_v40 = vld [vmem:[%s10826_s4 + $0xa8] sm:$0xff]  }
  0x2e   : > { %6927 = vmatpush3.bf16.msra.mxu0 %v7825_v2  ;;  %v7853_v42 = vld [vmem:[%s10826_s4 + $0xb0] sm:$0xff]   ;;  %v7854_v44 = vld [vmem:[%s10826_s4 + $0xb8] sm:$0xff]   ;;  %v7855_v46 = vld [vmem:[%s10826_s4 + $0xc0] sm:$0xff]  }
  0x2f   : > { %6928 = vmatprep.subr.bf16.mxu0 %v7826_v3  ;;  %v7856_v48 = vld [vmem:[%s10826_s4 + $0xc8] sm:$0xff]   ;;  %v7857_v50 = vld [vmem:[%s10826_s4 + $0xd0] sm:$0xff]   ;;  %v7858_v52 = vld [vmem:[%s10826_s4 + $0xd8] sm:$0xff]  }
  0x30   : > { %6963 = vmatpush3.bf16.msra.mxu1 %v7871_v26  ;;  %v7859_v54 = vld [vmem:[%s10826_s4 + $0xe0] sm:$0xff]   ;;  %v7889_v55 = vld [vmem:[%s10794_s6 + $0x90] sm:$0xff]   ;;  %v7860_v56 = vld [vmem:[%s10826_s4 + $0xe8] sm:$0xff]  }
  0x31   : > { %6964 = vmatprep.subr.bf16.mxu1 %v7873_v29  ;;  %v7890_v57 = vld [vmem:[%s10794_s6 + $0x98] sm:$0xff]   ;;  %v7861_v58 = vld [vmem:[%s10826_s4 + $0xf0] sm:$0xff]   ;;  %v7891_v60 = vld [vmem:[%s10794_s6 + $0xa0] sm:$0xff]  }
  0x32   : > { %6929 = vmatpush3.bf16.msra.mxu0 %v7826_v3  ;;  %v7862_v59 = vld [vmem:[%s10826_s4 + $0xf8] sm:$0xff]   ;;  %v7892_v61 = vld [vmem:[%s10794_s6 + $0xa8] sm:$0xff]   ;;  %v7864_v62 = vld [vmem:[%s10828_s21] sm:$0xff]  }
  0x33   : > { %6930 = vmatprep.subr.bf16.mxu0 %v7827_v5  ;;  %v7893_v63 = vld [vmem:[%s10794_s6 + $0xb0] sm:$0xff]   ;;  %v7866_v0 = vld [vmem:[%s10828_s21 + $0x8] sm:$0xff]   ;;  %v7894_v1 = vld [vmem:[%s10794_s6 + $0xb8] sm:$0xff]  }
  0x34   : > { %6965 = vmatpush3.bf16.msra.mxu1 %v7873_v29  ;;  %v7868_v2 = vld [vmem:[%s10828_s21 + $0x10] sm:$0xff]   ;;  %v7895_v3 = vld [vmem:[%s10794_s6 + $0xc0] sm:$0xff]   ;;  %v7900_v20 = vld [vmem:[%s10794_s6 + $0xe8] sm:$0xff]  }
  0x35   : > { %6966 = vmatprep.subr.bf16.mxu1 %v7875_v31  ;;  %v7899_v17 = vld [vmem:[%s10794_s6 + $0xe0] sm:$0xff]   ;;  %v2188_v24 = vld [vmem:[%s8830_s27 + $0x18] sm:$0xff]  ;;  %v2190_v26 = vld [vmem:[%s8830_s27 + $0x28] sm:$0xff] }
  0x36   : > { %6931 = vmatpush3.bf16.msra.mxu0 %v7827_v5  ;;  %v7870_v5 = vld [vmem:[%s10828_s21 + $0x18] sm:$0xff]   ;;  %v7901_v29 = vld [vmem:[%s10794_s6 + $0xf0] sm:$0xff]  }
  0x37   : > { %6932 = vmatprep.subr.bf16.mxu0 %v7828_v6 }
  0x38   : > { %6967 = vmatpush3.bf16.msra.mxu1 %v7875_v31  ;;  %v7902_v31 = vld [vmem:[%s10794_s6 + $0xf8] sm:$0xff]  }
  0x39   : > { %6968 = vmatprep.subr.bf16.mxu1 %v7877_v33 }
  0x3a   : > { %6933 = vmatpush3.bf16.msra.mxu0 %v7828_v6  ;;  %v7872_v6 = vld [vmem:[%s10828_s21 + $0x20] sm:$0xff]  }
  0x3b   : > { %6934 = vmatprep.subr.bf16.mxu0 %v7829_v7 }
  0x3c   : > { %6969 = vmatpush3.bf16.msra.mxu1 %v7877_v33  ;;  %v2192_v33 = vld [vmem:[%s8830_s27 + $0x38] sm:$0xff] }
  0x3d   : > { %7018 = vmatprep.subr.bf16.mxu1 %v7879_v35 }
  0x3e   : > { %6935 = vmatpush3.bf16.msra.mxu0 %v7829_v7  ;;  %v7897_v7 = vld [vmem:[%s10794_s6 + $0xd0] sm:$0xff]  }
  0x3f   : > { %6936 = vmatprep.subr.bf16.mxu0 %v7830_v8  ;;  %6971 = vmatmul.mubr.bf16.vlgmr.msra.gmra.mrb[0].mxu1 %v8592_v10 }
  0x40   : > { %7019 = vmatpush3.bf16.msra.mxu1 %v7879_v35  ;;  %6974 = vmatprep.mubr.bf16.mxu1 %v8595_v11  ;;  %v2194_v35 = vld [vmem:[%s8830_s27 + $0x48] sm:$0xff] }
  0x41   : > { %7020 = vmatprep.subr.bf16.mxu1 %v7880_v37 }
  0x42   : > { %6937 = vmatpush3.bf16.msra.mxu0 %v7830_v8  ;;  %v7874_v8 = vld [vmem:[%s10828_s21 + $0x28] sm:$0xff]  }
  0x43   : > { %6986 = vmatprep.subr.bf16.mxu0 %v7833_v9 }
  0x44   : > { %7021 = vmatpush3.bf16.msra.mxu1 %v7880_v37 }
  0x45   : > { %6939 = vmatmul.mubr.bf16.vlgmr.msra.gmra.mrb[0].mxu0 %v8592_v10  ;;  %7022 = vmatprep.subr.bf16.mxu1 %v7881_v39 }
  0x46   : > { %6987 = vmatpush3.bf16.msra.mxu0 %v7833_v9  ;;  %6942 = vmatprep.mubr.bf16.mxu0 %v8595_v11  ;;  %v7898_v9 = vld [vmem:[%s10794_s6 + $0xd8] sm:$0xff]  }
  0x47   : > { %6988 = vmatprep.subr.bf16.mxu0 %v7834_v12  ;;  %6975 = vmatmul.mubr.bf16.gmra.mrb[4].mxu1 %v8606_v14 }
  0x48   : > { %7023 = vmatpush3.bf16.msra.mxu1 %v7881_v39  ;;  %6978 = vmatprep.mubr.bf16.mxu1 %v8612_v16  ;;  %v2195_v39 = vld [vmem:[%s8830_s27 + $0x50] sm:$0xff] }
  0x49   : > { %7024 = vmatprep.subr.bf16.mxu1 %v7882_v41 }
  0x4a   : > { %6989 = vmatpush3.bf16.msra.mxu0 %v7834_v12  ;;  %v7876_v12 = vld [vmem:[%s10828_s21 + $0x30] sm:$0xff]  }
  0x4b   : > { %6990 = vmatprep.subr.bf16.mxu0 %v7837_v13 }
  0x4c   : > { %7025 = vmatpush3.bf16.msra.mxu1 %v7882_v41  ;;  %v2197_v41 = vld [vmem:[%s8830_s27 + $0x60] sm:$0xff] }
  0x4d   : > { %6943 = vmatmul.mubr.bf16.gmra.mrb[4].mxu0 %v8606_v14  ;;  %7026 = vmatprep.subr.bf16.mxu1 %v7883_v43 }
  0x4e   : > { %6991 = vmatpush3.bf16.msra.mxu0 %v7837_v13  ;;  %6946 = vmatprep.mubr.bf16.mxu0 %v8612_v16  ;;  %v2185_v13 = vld [vmem:[%s8830_s27] sm:$0xff] }
  0x4f   : > { %6992 = vmatprep.subr.bf16.mxu0 %v7838_v15  ;;  %6979 = vmatmul.mubr.bf16.gmra.mrb[8].mxu1 %v8629_v21 }
  0x50   : > { %7027 = vmatpush3.bf16.msra.mxu1 %v7883_v43  ;;  %6982 = vmatprep.mubr.bf16.mxu1 %v8632_v22 }
  0x51   : > { %7028 = vmatprep.subr.bf16.mxu1 %v7884_v45 }
  0x52   : > { %6993 = vmatpush3.bf16.msra.mxu0 %v7838_v15  ;;  %v2186_v15 = vld [vmem:[%s8830_s27 + $0x8] sm:$0xff] }
  0x53   : > { %6994 = vmatprep.subr.bf16.mxu0 %v7841_v19  ;;  %v8847_v18 = vpack.c.bf16 %v2186_v15, %v2185_v13 }
  0x54   : > { %7029 = vmatpush3.bf16.msra.mxu1 %v7884_v45  ;;  %v2199_v45 = vld [vmem:[%s8830_s27 + $0x70] sm:$0xff] }
  0x55   : > { %6947 = vmatmul.mubr.bf16.gmra.mrb[8].mxu0 %v8629_v21  ;;  %7030 = vmatprep.subr.bf16.mxu1 %v7885_v47 }
  0x56   : > { %6995 = vmatpush3.bf16.msra.mxu0 %v7841_v19  ;;  %6950 = vmatprep.mubr.bf16.mxu0 %v8632_v22  ;;  %v7878_v19 = vld [vmem:[%s10828_s21 + $0x38] sm:$0xff]  }
  0x57   : > { %6996 = vmatprep.subr.bf16.mxu0 %v7842_v23  ;;  %6983 = vmatmul.mubr.bf16.gmra.mrb[12].mxu1 %v8649_v27 }
  0x58   : > { %7031 = vmatpush3.bf16.msra.mxu1 %v7885_v47  ;;  %7034 = vmatprep.mubr.bf16.mxu1 %v8572_v4 }
  0x59   : > { %7032 = vmatprep.subr.bf16.mxu1 %v7886_v49 }
  0x5a   : > { %6997 = vmatpush3.bf16.msra.mxu0 %v7842_v23  ;;  %v2187_v23 = vld [vmem:[%s8830_s27 + $0x10] sm:$0xff] }
  0x5b   : > { %6998 = vmatprep.subr.bf16.mxu0 %v7845_v25 }
  0x5c   : > { %7033 = vmatpush3.bf16.msra.mxu1 %v7886_v49 }
  0x5d   : > { %6951 = vmatmul.mubr.bf16.gmra.mrb[12].mxu0 %v8649_v27  ;;  %7082 = vmatprep.subr.bf16.mxu1 %v7887_v51 }
  0x5e   : > { %6999 = vmatpush3.bf16.msra.mxu0 %v7845_v25  ;;  %7002 = vmatprep.mubr.bf16.mxu0 %v8572_v4  ;;  %v2189_v25 = vld [vmem:[%s8830_s27 + $0x20] sm:$0xff] }
  0x5f   : > { %7000 = vmatprep.subr.bf16.mxu0 %v7846_v28  ;;  %7035 = vmatmul.mubr.bf16.vlgmr.msra.gmra.mrb[16].mxu1 %v8592_v10 }
  0x60   : > { %7083 = vmatpush3.bf16.msra.mxu1 %v7887_v51  ;;  %7038 = vmatprep.mubr.bf16.mxu1 %v8595_v11 }
  0x61   : > { %7084 = vmatprep.subr.bf16.mxu1 %v7888_v53 }
  0x62   : > { %7001 = vmatpush3.bf16.msra.mxu0 %v7846_v28  ;;  %v8863_v28 = vpack.c.bf16 %v2188_v24, %v2187_v23 }
  0x63   : > { %7050 = vmatprep.subr.bf16.mxu0 %v7847_v30 }
  0x64   : > { %7085 = vmatpush3.bf16.msra.mxu1 %v7888_v53 }
  0x65   : > { %7003 = vmatmul.mubr.bf16.vlgmr.msra.gmra.mrb[16].mxu0 %v8592_v10  ;;  %7086 = vmatprep.subr.bf16.mxu1 %v7889_v55 }
  0x66   : > { %7051 = vmatpush3.bf16.msra.mxu0 %v7847_v30  ;;  %7006 = vmatprep.mubr.bf16.mxu0 %v8595_v11  ;;  %v8868_v30 = vpack.c.bf16 %v2190_v26, %v2189_v25 }
  0x67   : > { %7052 = vmatprep.subr.bf16.mxu0 %v7848_v32  ;;  %7039 = vmatmul.mubr.bf16.gmra.mrb[20].mxu1 %v8606_v14 }
  0x68   : > { %7087 = vmatpush3.bf16.msra.mxu1 %v7889_v55  ;;  %7042 = vmatprep.mubr.bf16.mxu1 %v8612_v16 }
  0x69   : > { %7088 = vmatprep.subr.bf16.mxu1 %v7890_v57 }
  0x6a   : > { %7053 = vmatpush3.bf16.msra.mxu0 %v7848_v32  ;;  %v2191_v32 = vld [vmem:[%s8830_s27 + $0x30] sm:$0xff] }
  0x6b   : > { %7054 = vmatprep.subr.bf16.mxu0 %v7849_v34  ;;  %v8881_v37 = vpack.c.bf16 %v2192_v33, %v2191_v32 }
  0x6c   : > { %7089 = vmatpush3.bf16.msra.mxu1 %v7890_v57 }
  0x6d   : > { %7007 = vmatmul.mubr.bf16.gmra.mrb[20].mxu0 %v8606_v14  ;;  %7090 = vmatprep.subr.bf16.mxu1 %v7891_v60 }
  0x6e   : > { %7055 = vmatpush3.bf16.msra.mxu0 %v7849_v34  ;;  %7010 = vmatprep.mubr.bf16.mxu0 %v8612_v16  ;;  %v2193_v34 = vld [vmem:[%s8830_s27 + $0x40] sm:$0xff] }
  0x6f   : > { %7056 = vmatprep.subr.bf16.mxu0 %v7850_v36  ;;  %7043 = vmatmul.mubr.bf16.gmra.mrb[24].mxu1 %v8629_v21 }
  0x70   : > { %7091 = vmatpush3.bf16.msra.mxu1 %v7891_v60  ;;  %7046 = vmatprep.mubr.bf16.mxu1 %v8632_v22 }
  0x71   : > { %7092 = vmatprep.subr.bf16.mxu1 %v7892_v61 }
  0x72   : > { %7057 = vmatpush3.bf16.msra.mxu0 %v7850_v36  ;;  %v8295_v36 = vld [vmem:[%s8566_s24] sm:$0xff]  }
  0x73   : > { %7058 = vmatprep.subr.bf16.mxu0 %v7851_v38 }
  0x74   : > { %7093 = vmatpush3.bf16.msra.mxu1 %v7892_v61 }
  0x75   : > { %7011 = vmatmul.mubr.bf16.gmra.mrb[24].mxu0 %v8629_v21  ;;  %7094 = vmatprep.subr.bf16.mxu1 %v7893_v63 }
  0x76   : > { %7059 = vmatpush3.bf16.msra.mxu0 %v7851_v38  ;;  %7014 = vmatprep.mubr.bf16.mxu0 %v8632_v22  ;;  %v8883_v38 = vpack.c.bf16 %v2194_v35, %v2193_v34  ;;  %v8928_v34 = vld [vmem:[%s10793_s5 + $0x1] ss:$0 sm:$0xff] }
  0x77   : > { %7060 = vmatprep.subr.bf16.mxu0 %v7852_v40  ;;  %7047 = vmatmul.mubr.bf16.gmra.mrb[28].mxu1 %v8649_v27 }
  0x78   : > { %7095 = vmatpush3.bf16.msra.mxu1 %v7893_v63  ;;  %7098 = vmatprep.mubr.bf16.mxu1 %v8572_v4 }
  0x79   : > { %7096 = vmatprep.subr.bf16.mxu1 %v7894_v1 }
  0x7a   : > { %7061 = vmatpush3.bf16.msra.mxu0 %v7852_v40  ;;  %v2196_v40 = vld [vmem:[%s8830_s27 + $0x58] sm:$0xff] }
  0x7b   : > { %7062 = vmatprep.subr.bf16.mxu0 %v7853_v42  ;;  %v8893_v43 = vpack.c.bf16 %v2196_v40, %v2195_v39 }
  0x7c   : > { %7097 = vmatpush3.bf16.msra.mxu1 %v7894_v1 }
  0x7d   : > { %7015 = vmatmul.mubr.bf16.gmra.mrb[28].mxu0 %v8649_v27  ;;  %7146 = vmatprep.subr.bf16.mxu1 %v7895_v3 }
  0x7e   : > { %7063 = vmatpush3.bf16.msra.mxu0 %v7853_v42  ;;  %7066 = vmatprep.mubr.bf16.mxu0 %v8572_v4  ;;  %v2198_v42 = vld [vmem:[%s8830_s27 + $0x68] sm:$0xff] }
  0x7f   : > { %7064 = vmatprep.subr.bf16.mxu0 %v7854_v44  ;;  %7099 = vmatmul.mubr.bf16.vlgmr.msra.gmra.mrb[32].mxu1 %v8592_v10 }
  0x80   : > { %7147 = vmatpush3.bf16.msra.mxu1 %v7895_v3  ;;  %7102 = vmatprep.mubr.bf16.mxu1 %v8595_v11 }
  0x82   : > { %7065 = vmatpush3.bf16.msra.mxu0 %v7854_v44  ;;  %v8895_v44 = vpack.c.bf16 %v2198_v42, %v2197_v41 }
  0x83   : > { %7114 = vmatprep.subr.bf16.mxu0 %v7855_v46 }
  0x85   : > { %7067 = vmatmul.mubr.bf16.vlgmr.msra.gmra.mrb[32].mxu0 %v8592_v10 }
  0x86   : > { %7115 = vmatpush3.bf16.msra.mxu0 %v7855_v46  ;;  %7070 = vmatprep.mubr.bf16.mxu0 %v8595_v11  ;;  %v2200_v46 = vld [vmem:[%s8830_s27 + $0x78] sm:$0xff] }
  0x87   : > { %7116 = vmatprep.subr.bf16.mxu0 %v7856_v48  ;;  %7103 = vmatmul.mubr.bf16.gmra.mrb[36].mxu1 %v8606_v14  ;;  %v8903_v47 = vpack.c.bf16 %v2200_v46, %v2199_v45 }
  0x88   : > { %7106 = vmatprep.mubr.bf16.mxu1 %v8612_v16 }
  0x8a   : > { %7117 = vmatpush3.bf16.msra.mxu0 %v7856_v48 }
  0x8b   : > { %7118 = vmatprep.subr.bf16.mxu0 %v7857_v50 }
  0x8d   : > { %7071 = vmatmul.mubr.bf16.gmra.mrb[36].mxu0 %v8606_v14 }
  0x8e   : > { %7119 = vmatpush3.bf16.msra.mxu0 %v7857_v50  ;;  %7074 = vmatprep.mubr.bf16.mxu0 %v8612_v16 }
  0x8f   : > { %7120 = vmatprep.subr.bf16.mxu0 %v7858_v52  ;;  %7107 = vmatmul.mubr.bf16.gmra.mrb[40].mxu1 %v8629_v21 }
  0x90   : > { %7110 = vmatprep.mubr.bf16.mxu1 %v8632_v22 }
  0x92   : > { %7121 = vmatpush3.bf16.msra.mxu0 %v7858_v52 }
  0x93   : > { %7122 = vmatprep.subr.bf16.mxu0 %v7859_v54 }
  0x95   : > { %7075 = vmatmul.mubr.bf16.gmra.mrb[40].mxu0 %v8629_v21 }
  0x96   : > { %7123 = vmatpush3.bf16.msra.mxu0 %v7859_v54  ;;  %7078 = vmatprep.mubr.bf16.mxu0 %v8632_v22 }
  0x97   : > { %7124 = vmatprep.subr.bf16.mxu0 %v7860_v56  ;;  %7111 = vmatmul.mubr.bf16.gmra.mrb[44].mxu1 %v8649_v27 }
  0x98   : > { %7162 = vmatprep.mubr.bf16.mxu1 %v8295_v36 }
  0x9a   : > { %7125 = vmatpush3.bf16.msra.mxu0 %v7860_v56 }
  0x9b   : > { %7126 = vmatprep.subr.bf16.mxu0 %v7861_v58 }
  0x9d   : > { %7079 = vmatmul.mubr.bf16.gmra.mrb[44].mxu0 %v8649_v27 }
  0x9e   : > { %7127 = vmatpush3.bf16.msra.mxu0 %v7861_v58  ;;  %7130 = vmatprep.mubr.bf16.mxu0 %v8572_v4  ;;  %v7896_v4 = vld [vmem:[%s10794_s6 + $0xc8] sm:$0xff]  }
  0x9f   : > { %7128 = vmatprep.subr.bf16.mxu0 %v7862_v59  ;;  %7148 = vmatprep.subr.bf16.mxu1 %v7896_v4 }
  0xa0   : > { %7149 = vmatpush3.bf16.msra.mxu1 %v7896_v4 }
  0xa1   : > { %7150 = vmatprep.subr.bf16.mxu1 %v7897_v7 }
  0xa2   : > { %7129 = vmatpush3.bf16.msra.mxu0 %v7862_v59 }
  0xa3   : > { %7178 = vmatprep.subr.bf16.mxu0 %v7864_v62 }
  0xa4   : > { %7151 = vmatpush3.bf16.msra.mxu1 %v7897_v7 }
  0xa5   : > { %7131 = vmatmul.mubr.bf16.vlgmr.msra.gmra.mrb[48].mxu0 %v8592_v10  ;;  %7152 = vmatprep.subr.bf16.mxu1 %v7898_v9 }
  0xa6   : > { %7179 = vmatpush3.bf16.msra.mxu0 %v7864_v62  ;;  %7134 = vmatprep.mubr.bf16.mxu0 %v8595_v11 }
  0xa7   : > { %7180 = vmatprep.subr.bf16.mxu0 %v7866_v0 }
  0xa8   : > { %7153 = vmatpush3.bf16.msra.mxu1 %v7898_v9 }
  0xa9   : > { %7154 = vmatprep.subr.bf16.mxu1 %v7899_v17 }
  0xaa   : > { %7181 = vmatpush3.bf16.msra.mxu0 %v7866_v0 }
  0xab   : > { %7182 = vmatprep.subr.bf16.mxu0 %v7868_v2 }
  0xac   : > { %7155 = vmatpush3.bf16.msra.mxu1 %v7899_v17 }
  0xad   : > { %7135 = vmatmul.mubr.bf16.gmra.mrb[52].mxu0 %v8606_v14  ;;  %7156 = vmatprep.subr.bf16.mxu1 %v7900_v20 }
  0xae   : > { %7183 = vmatpush3.bf16.msra.mxu0 %v7868_v2  ;;  %7138 = vmatprep.mubr.bf16.mxu0 %v8612_v16 }
  0xaf   : > { %7184 = vmatprep.subr.bf16.mxu0 %v7870_v5 }
  0xb0   : > { %7157 = vmatpush3.bf16.msra.mxu1 %v7900_v20 }
  0xb1   : > { %7158 = vmatprep.subr.bf16.mxu1 %v7901_v29 }
  0xb2   : > { %7185 = vmatpush3.bf16.msra.mxu0 %v7870_v5 }
  0xb3   : > { %7186 = vmatprep.subr.bf16.mxu0 %v7872_v6 }
  0xb4   : > { %7159 = vmatpush3.bf16.msra.mxu1 %v7901_v29 }
  0xb5   : > { %7139 = vmatmul.mubr.bf16.gmra.mrb[56].mxu0 %v8629_v21  ;;  %7160 = vmatprep.subr.bf16.mxu1 %v7902_v31 }
  0xb6   : > { %7187 = vmatpush3.bf16.msra.mxu0 %v7872_v6  ;;  %7142 = vmatprep.mubr.bf16.mxu0 %v8632_v22 }
  0xb7   : > { %7188 = vmatprep.subr.bf16.mxu0 %v7874_v8 }
  0xb8   : > { %7161 = vmatpush3.bf16.msra.mxu1 %v7902_v31 }
  0xba   : > { %7189 = vmatpush3.bf16.msra.mxu0 %v7874_v8 }
  0xbb   : > { %7190 = vmatprep.subr.bf16.mxu0 %v7876_v12  ;;  %7163 = vmatmul.mubr.bf16.vlgmr.msra.gmra.mrb[48].mxu1 %v8592_v10 }
  0xbc   : > { %7166 = vmatprep.mubr.bf16.mxu1 %v8595_v11  ;;  %v6167_v11 = vld [vmem:[%s10793_s5] ss:$0 sm:$0xff] }
  0xbd   : > { %7143 = vmatmul.mubr.bf16.gmra.mrb[60].mxu0 %v8649_v27 }
  0xbe   : > { %7191 = vmatpush3.bf16.msra.mxu0 %v7876_v12  ;;  %7194 = vmatprep.mubr.bf16.mxu0 %v8847_v18 }
  0xbf   : > { %7192 = vmatprep.subr.bf16.mxu0 %v7878_v19 }
  0xc2   : > { %7193 = vmatpush3.bf16.msra.mxu0 %v7878_v19 }
  0xc3   : > { %7167 = vmatmul.mubr.bf16.gmra.mrb[52].mxu1 %v8606_v14 }
  0xc4   : > { %7170 = vmatprep.mubr.bf16.mxu1 %v8612_v16 }
  0xc5   : > { %7195 = vmatmul.mubr.bf16.vlgmr.msra.gmra.mrb[64].mxu0 %v8863_v28 }
  0xc6   : > { %7198 = vmatprep.mubr.bf16.mxu0 %v8868_v30 }
  0xcb   : > { %7171 = vmatmul.mubr.bf16.gmra.mrb[56].mxu1 %v8629_v21 }
  0xcc   : > { %7174 = vmatprep.mubr.bf16.mxu1 %v8632_v22 }
  0xcd   : > { %7199 = vmatmul.mubr.bf16.gmra.mrb[68].mxu0 %v8881_v37 }
  0xce   : > { %7202 = vmatprep.mubr.bf16.mxu0 %v8883_v38 }
  0xd3   : > { %7175 = vmatmul.mubr.bf16.gmra.mrb[60].mxu1 %v8649_v27 }
  0xd5   : > { %7203 = vmatmul.mubr.bf16.gmra.mrb[72].mxu0 %v8893_v43 }
  0xd6   : > { %7206 = vmatprep.mubr.bf16.mxu0 %v8895_v44 }
  0xdd   : > { %7207 = vmatmul.mubr.bf16.gmra.mrb[76].mxu0 %v8903_v47 }
 0x118   : > { %v6940_v10 = vpop.f32.mrb[0].mxu0 }
 0x119   : > { %v799_v48 = vpop.f32.mrb[1].mxu0  ;;  %v808_v14 = vadd.f32 %v6940_v10, %v6167_v11 }
 0x11a   : > { %v6941_v49 = vpop.f32.mrb[2].mxu0  ;;  %v800_v51 = vadd.f32 %v6167_v11, %v799_v48 }
 0x11b   : > { %v811_v50 = vadd.f32 %v6941_v49, %v6167_v11  ;;  %v802_v16 = vpop.f32.mrb[3].mxu0 }
 0x11c   : > { %v803_v52 = vadd.f32 %v6167_v11, %v802_v16 }
 0x11d   : > { %v1031_v53 = vpack.c.bf16 %v811_v50, %v808_v14 }
 0x11e   : > { %v1030_v54 = vpack.c.bf16 %v803_v52, %v800_v51 }
 0x11f   : > { %1040 = vst.msk [vmem:[#allocation2 + $0x8] sm:$0xff] %vm1038_vm0, %v1031_v53 }
 0x120   : > { %1039 = vst.msk [vmem:[#allocation2] sm:$0xff] %vm1038_vm0, %v1030_v54  ;;  %v6944_v21 = vpop.f32.mrb[4].mxu0 }
 0x121   : > { %v815_v22 = vpop.f32.mrb[5].mxu0  ;;  %v824_v55 = vadd.f32 %v6944_v21, %v6167_v11 }
 0x122   : > { %v6945_v27 = vpop.f32.mrb[6].mxu0  ;;  %v816_v58 = vadd.f32 %v6167_v11, %v815_v22 }
 0x123   : > { %v827_v56 = vadd.f32 %v6945_v27, %v6167_v11  ;;  %v818_v57 = vpop.f32.mrb[7].mxu0 }
 0x124   : > { %v819_v59 = vadd.f32 %v6167_v11, %v818_v57 }
 0x125   : > { %v1033_v60 = vpack.c.bf16 %v827_v56, %v824_v55  ;;  %v6972_v55 = vpop.f32.mrb[0].mxu1 }
 0x126   : > { %v1032_v61 = vpack.c.bf16 %v819_v59, %v816_v58  ;;  %v2402_v2 = vld [vmem:[#allocation2 + $0x8] sm:$0xff] }
 0x127   : > { %1042 = vst.msk [vmem:[#allocation2 + $0x18] sm:$0xff] %vm1038_vm0, %v1033_v60  ;;  %v2401_v62 = vld [vmem:[#allocation2] sm:$0xff]  ;;  %v2438_v15 = vsel %vm1038_vm0, %v2402_v2, 0 }
 0x128   : > { %1041 = vst.msk [vmem:[#allocation2 + $0x10] sm:$0xff] %vm1038_vm0, %v1032_v61  ;;  %v6948_v63 = vpop.f32.mrb[8].mxu0  ;;  %7610 = vmatprep.subr.msk.bf16.mxu1 %vm1038_vm0, %v2401_v62  ;;  %v2435_v0 = vsel %vm1038_vm0, %v2401_v62, 0  ;;  %v8951_v62 = vld [vmem:[%s10795_s7] ss:$0 sm:$0xff] }
 0x129   : > { %v831_v1 = vpop.f32.mrb[9].mxu0  ;;  %7211 = vmatpush3.bf16.xpose.msra.mxu1 %v2435_v0  ;;  %v840_v5 = vadd.f32 %v6948_v63, %v6167_v11 }
 0x12a   : > { %v6949_v3 = vpop.f32.mrb[10].mxu0  ;;  %7611 = vmatprep.subr.msk.bf16.mxu1 %vm1038_vm0, %v2402_v2  ;;  %v832_v7 = vadd.f32 %v6167_v11, %v831_v1 }
 0x12b   : > { %v843_v4 = vadd.f32 %v6949_v3, %v6167_v11  ;;  %v834_v6 = vpop.f32.mrb[11].mxu0 }
 0x12c   : > { %v835_v8 = vadd.f32 %v6167_v11, %v834_v6 }
 0x12d   : > { %v1035_v9 = vpack.c.bf16 %v843_v4, %v840_v5  ;;  %v976_v5 = vadd.f32 %v6972_v55, %v8951_v62  ;;  %v967_v4 = vpop.f32.mrb[1].mxu1 }
 0x12e   : > { %v1034_v12 = vpack.c.bf16 %v835_v8, %v832_v7  ;;  %v2404_v39 = vld [vmem:[#allocation2 + $0x18] sm:$0xff]  ;;  %v968_v7 = vadd.f32 %v8951_v62, %v967_v4  ;;  %v6973_v8 = vpop.f32.mrb[2].mxu1 }
 0x12f   : > { %1044 = vst.msk [vmem:[#allocation2 + $0x28] sm:$0xff] %vm1038_vm0, %v1035_v9  ;;  %v2403_v19 = vld [vmem:[#allocation2 + $0x10] sm:$0xff]  ;;  %v2444_v14 = vsel %vm1038_vm0, %v2404_v39, 0 }
 0x130   : > { %1043 = vst.msk [vmem:[#allocation2 + $0x20] sm:$0xff] %vm1038_vm0, %v1034_v12  ;;  %v6952_v13 = vpop.f32.mrb[12].mxu0  ;;  %v2441_v35 = vsel %vm1038_vm0, %v2403_v19, 0  ;;  %v979_v12 = vadd.f32 %v6973_v8, %v8951_v62 }
 0x131   : > { %v847_v17 = vpop.f32.mrb[13].mxu0  ;;  %7213 = vmatpush3.bf16.xpose.msra.mxu1 %v2438_v15  ;;  %v856_v23 = vadd.f32 %v6952_v13, %v6167_v11  ;;  %v970_v13 = vpop.f32.mrb[3].mxu1 }
 0x132   : > { %v6953_v20 = vpop.f32.mrb[14].mxu0  ;;  %7612 = vmatprep.subr.msk.bf16.mxu1 %vm1038_vm0, %v2403_v19  ;;  %v848_v26 = vadd.f32 %v6167_v11, %v847_v17  ;;  %v971_v15 = vadd.f32 %v8951_v62, %v970_v13  ;;  %v6976_v17 = vpop.f32.mrb[4].mxu1 }
 0x133   : > { %v859_v24 = vadd.f32 %v6953_v20, %v6167_v11  ;;  %v850_v25 = vpop.f32.mrb[15].mxu0 }
 0x134   : > { %v851_v29 = vadd.f32 %v6167_v11, %v850_v25 }
 0x135   : > { %v1037_v31 = vpack.c.bf16 %v859_v24, %v856_v23  ;;  %v1048_v23 = vpack.c.bf16 %v979_v12, %v976_v5 }
 0x136   : > { %v1036_v32 = vpack.c.bf16 %v851_v29, %v848_v26  ;;  %v2406_v60 = vld [vmem:[#allocation2 + $0x28] sm:$0xff]  ;;  %v1047_v26 = vpack.c.bf16 %v971_v15, %v968_v7 }
 0x137   : > { %1046 = vst.msk [vmem:[#allocation2 + $0x38] sm:$0xff] %vm1038_vm0, %v1037_v31  ;;  %v2405_v16 = vld [vmem:[#allocation2 + $0x20] sm:$0xff]  ;;  %v2450_v20 = vsel %vm1038_vm0, %v2406_v60, 0  ;;  %1056 = vst.msk [vmem:[#allocation3 + $0x8] sm:$0xff] %vm1038_vm0, %v1048_v23 }
 0x138   : > { %1045 = vst.msk [vmem:[#allocation2 + $0x30] sm:$0xff] %vm1038_vm0, %v1036_v32  ;;  %v7004_v33 = vpop.f32.mrb[16].mxu0  ;;  %v2447_v58 = vsel %vm1038_vm0, %v2405_v16, 0  ;;  %1055 = vst.msk [vmem:[#allocation3] sm:$0xff] %vm1038_vm0, %v1047_v26  ;;  %v9004_v23 = vld [vmem:[%s10795_s7 + $0x1] ss:$0 sm:$0xff] }
 0x139   : > { %v1170_v36 = vpop.f32.mrb[17].mxu0  ;;  %7215 = vmatpush3.bf16.xpose.msra.mxu1 %v2441_v35  ;;  %v1179_v41 = vadd.f32 %v7004_v33, %v8928_v34 }
 0x13a   : > { %v7005_v40 = vpop.f32.mrb[18].mxu0  ;;  %7613 = vmatprep.subr.msk.bf16.mxu1 %vm1038_vm0, %v2404_v39  ;;  %v1171_v46 = vadd.f32 %v8928_v34, %v1170_v36  ;;  %v992_v39 = vadd.f32 %v6976_v17, %v8951_v62 }
 0x13b   : > { %v1182_v42 = vadd.f32 %v7005_v40, %v8928_v34  ;;  %v1173_v45 = vpop.f32.mrb[19].mxu0  ;;  %v983_v40 = vpop.f32.mrb[5].mxu1 }
 0x13c   : > { %v1174_v10 = vadd.f32 %v8928_v34, %v1173_v45  ;;  %v6977_v45 = vpop.f32.mrb[6].mxu1 }
 0x13d   : > { %v1404_v11 = vpack.c.bf16 %v1182_v42, %v1179_v41  ;;  %v984_v42 = vadd.f32 %v8951_v62, %v983_v40 }
 0x13e   : > { %v1403_v48 = vpack.c.bf16 %v1174_v10, %v1171_v46  ;;  %v995_v10 = vadd.f32 %v6977_v45, %v8951_v62 }
 0x13f   : > { %1413 = vst.msk [vmem:[#allocation2 + $0x48] sm:$0xff] %vm1038_vm0, %v1404_v11  ;;  %v2407_v25 = vld [vmem:[#allocation2 + $0x30] sm:$0xff]  ;;  %v986_v11 = vpop.f32.mrb[7].mxu1 }
 0x140   : > { %1412 = vst.msk [vmem:[#allocation2 + $0x40] sm:$0xff] %vm1038_vm0, %v1403_v48  ;;  %v7008_v49 = vpop.f32.mrb[20].mxu0  ;;  %v987_v48 = vadd.f32 %v8951_v62, %v986_v11 }
 0x141   : > { %v1186_v50 = vpop.f32.mrb[21].mxu0  ;;  %7217 = vmatpush3.bf16.xpose.msra.mxu1 %v2444_v14  ;;  %v1195_v52 = vadd.f32 %v7008_v49, %v8928_v34  ;;  %v6980_v49 = vpop.f32.mrb[8].mxu1 }
 0x142   : > { %v7009_v51 = vpop.f32.mrb[22].mxu0  ;;  %7614 = vmatprep.subr.msk.bf16.mxu1 %vm1038_vm0, %v2405_v16  ;;  %v1187_v21 = vadd.f32 %v8928_v34, %v1186_v50  ;;  %v2453_v50 = vsel %vm1038_vm0, %v2407_v25, 0  ;;  %v1050_v16 = vpack.c.bf16 %v995_v10, %v992_v39 }
 0x143   : > { %v1198_v53 = vadd.f32 %v7009_v51, %v8928_v34  ;;  %v1189_v54 = vpop.f32.mrb[23].mxu0 }
 0x144   : > { %v1190_v22 = vadd.f32 %v8928_v34, %v1189_v54  ;;  %1058 = vst.msk [vmem:[#allocation3 + $0x18] sm:$0xff] %vm1038_vm0, %v1050_v16 }
 0x145   : > { %v1406_v27 = vpack.c.bf16 %v1198_v53, %v1195_v52  ;;  %v2408_v52 = vld [vmem:[#allocation2 + $0x38] sm:$0xff]  ;;  %v1049_v53 = vpack.c.bf16 %v987_v48, %v984_v42 }
 0x146   : > { %v1405_v56 = vpack.c.bf16 %v1190_v22, %v1187_v21  ;;  %v2707_v21 = vld [vmem:[#allocation3] sm:$0xff]  ;;  %v2456_v7 = vsel %vm1038_vm0, %v2408_v52, 0 }
 0x147   : > { %1415 = vst.msk [vmem:[#allocation2 + $0x58] sm:$0xff] %vm1038_vm0, %v1406_v27  ;;  %1057 = vst.msk [vmem:[#allocation3 + $0x10] sm:$0xff] %vm1038_vm0, %v1049_v53  ;;  %7242 = vmatprep.subr.bf16.mxu0 %v2707_v21  ;;  %v8998_v15 = vld [vmem:[#allocation2 + $0x40] sm:$0xff] }
 0x148   : > { %1414 = vst.msk [vmem:[#allocation2 + $0x50] sm:$0xff] %vm1038_vm0, %v1405_v56  ;;  %v7012_v57 = vpop.f32.mrb[24].mxu0  ;;  %7243 = vmatpush3.bf16.msra.mxu0 %v2707_v21 }
 0x149   : > { %v1202_v59 = vpop.f32.mrb[25].mxu0  ;;  %7219 = vmatpush3.bf16.xpose.msra.mxu1 %v2447_v58  ;;  %v1211_v63 = vadd.f32 %v7012_v57, %v8928_v34  ;;  %v1008_v58 = vadd.f32 %v6980_v49, %v8951_v62 }
 0x14a   : > { %v7013_v61 = vpop.f32.mrb[26].mxu0  ;;  %7615 = vmatprep.subr.msk.bf16.mxu1 %vm1038_vm0, %v2406_v60  ;;  %v1203_v2 = vadd.f32 %v8928_v34, %v1202_v59  ;;  %v999_v59 = vpop.f32.mrb[9].mxu1 }
 0x14b   : > { %v1214_v0 = vadd.f32 %v7013_v61, %v8928_v34  ;;  %v1205_v1 = vpop.f32.mrb[27].mxu0  ;;  %v1000_v61 = vadd.f32 %v8951_v62, %v999_v59 }
 0x14c   : > { %v1206_v3 = vadd.f32 %v8928_v34, %v1205_v1 }
 0x14d   : > { %v1408_v6 = vpack.c.bf16 %v1214_v0, %v1211_v63  ;;  %v6981_v63 = vpop.f32.mrb[10].mxu1  ;;  %v2708_v0 = vld [vmem:[#allocation3 + $0x8] sm:$0xff] }
 0x14e   : > { %v1407_v9 = vpack.c.bf16 %v1206_v3, %v1203_v2  ;;  %v1011_v2 = vadd.f32 %v6981_v63, %v8951_v62  ;;  %v1002_v3 = vpop.f32.mrb[11].mxu1  ;;  %7244 = vmatprep.subr.bf16.mxu0 %v2708_v0 }
 0x14f   : > { %1417 = vst.msk [vmem:[#allocation2 + $0x68] sm:$0xff] %vm1038_vm0, %v1408_v6  ;;  %v1003_v5 = vadd.f32 %v8951_v62, %v1002_v3  ;;  %v6984_v4 = vpop.f32.mrb[12].mxu1  ;;  %7245 = vmatpush3.bf16.msra.mxu0 %v2708_v0 }
 0x150   : > { %1416 = vst.msk [vmem:[#allocation2 + $0x60] sm:$0xff] %vm1038_vm0, %v1407_v9  ;;  %v7016_v19 = vpop.f32.mrb[28].mxu0  ;;  %v1052_v8 = vpack.c.bf16 %v1011_v2, %v1008_v58  ;;  %v1024_v9 = vadd.f32 %v6984_v4, %v8951_v62  ;;  %v1015_v12 = vpop.f32.mrb[13].mxu1 }
 0x151   : > { %v1218_v24 = vpop.f32.mrb[29].mxu0  ;;  %7221 = vmatpush3.bf16.xpose.msra.mxu1 %v2450_v20  ;;  %v1227_v31 = vadd.f32 %v7016_v19, %v8928_v34  ;;  %v1051_v17 = vpack.c.bf16 %v1003_v5, %v1000_v61  ;;  %v1016_v19 = vadd.f32 %v8951_v62, %v1015_v12  ;;  %v6985_v20 = vpop.f32.mrb[14].mxu1 }
 0x152   : > { %v7017_v29 = vpop.f32.mrb[30].mxu0  ;;  %7616 = vmatprep.subr.msk.bf16.mxu1 %vm1038_vm0, %v2407_v25  ;;  %v1219_v35 = vadd.f32 %v8928_v34, %v1218_v24  ;;  %1060 = vst.msk [vmem:[#allocation3 + $0x28] sm:$0xff] %vm1038_vm0, %v1052_v8  ;;  %v2709_v25 = vld [vmem:[#allocation3 + $0x10] sm:$0xff]  ;;  %v1027_v26 = vadd.f32 %v6985_v20, %v8951_v62 }
 0x153   : > { %v1230_v32 = vadd.f32 %v7017_v29, %v8928_v34  ;;  %v1221_v33 = vpop.f32.mrb[31].mxu0  ;;  %v1018_v29 = vpop.f32.mrb[15].mxu1  ;;  %1059 = vst.msk [vmem:[#allocation3 + $0x20] sm:$0xff] %vm1038_vm0, %v1051_v17  ;;  %7246 = vmatprep.subr.bf16.mxu0 %v2709_v25 }
 0x154   : > { %v1222_v36 = vadd.f32 %v8928_v34, %v1221_v33  ;;  %v8980_v34 = vld [vmem:[%s10793_s5 + $0x2] ss:$0 sm:$0xff]  ;;  %v7036_v39 = vpop.f32.mrb[16].mxu1  ;;  %7247 = vmatpush3.bf16.msra.mxu0 %v2709_v25  ;;  %v1054_v42 = vpack.c.bf16 %v1027_v26, %v1024_v9 }
 0x155   : > { %v1410_v41 = vpack.c.bf16 %v1230_v32, %v1227_v31  ;;  %v2710_v31 = vld [vmem:[#allocation3 + $0x18] sm:$0xff]  ;;  %v1349_v45 = vadd.f32 %v7036_v39, %v9004_v23 }
 0x156   : > { %v1409_v46 = vpack.c.bf16 %v1222_v36, %v1219_v35  ;;  %v1019_v36 = vadd.f32 %v8951_v62, %v1018_v29  ;;  %7248 = vmatprep.subr.bf16.mxu0 %v2710_v31  ;;  %1062 = vst.msk [vmem:[#allocation3 + $0x38] sm:$0xff] %vm1038_vm0, %v1054_v42 }
 0x157   : > { %1419 = vst.msk [vmem:[#allocation2 + $0x78] sm:$0xff] %vm1038_vm0, %v1410_v41 }
 0x158   : > { %1418 = vst.msk [vmem:[#allocation2 + $0x70] sm:$0xff] %vm1038_vm0, %v1409_v46  ;;  %v7068_v14 = vpop.f32.mrb[32].mxu0  ;;  %v1340_v46 = vpop.f32.mrb[17].mxu1  ;;  %v1053_v11 = vpack.c.bf16 %v1019_v36, %v1016_v19  ;;  %7249 = vmatpush3.bf16.msra.mxu0 %v2710_v31 }
 0x159   : > { %v1544_v51 = vpop.f32.mrb[33].mxu0  ;;  %7223 = vmatpush3.bf16.xpose.msra.mxu1 %v2453_v50  ;;  %v1553_v22 = vadd.f32 %v7068_v14, %v8980_v34  ;;  %v1341_v48 = vadd.f32 %v9004_v23, %v1340_v46  ;;  %v7037_v49 = vpop.f32.mrb[18].mxu1 }
 0x15a   : > { %v7069_v54 = vpop.f32.mrb[34].mxu0  ;;  %7617 = vmatprep.subr.msk.bf16.mxu1 %vm1038_vm0, %v2408_v52  ;;  %v1545_v56 = vadd.f32 %v8980_v34, %v1544_v51  ;;  %v1352_v62 = vadd.f32 %v7037_v49, %v9004_v23  ;;  %v1343_v50 = vpop.f32.mrb[19].mxu1  ;;  %1061 = vst.msk [vmem:[#allocation3 + $0x30] sm:$0xff] %vm1038_vm0, %v1053_v11 }
 0x15b   : > { %v1556_v27 = vadd.f32 %v7069_v54, %v8980_v34  ;;  %v1547_v55 = vpop.f32.mrb[35].mxu0  ;;  %v1344_v16 = vadd.f32 %v9004_v23, %v1343_v50 }
 0x15c   : > { %v1548_v57 = vadd.f32 %v8980_v34, %v1547_v55  ;;  %v1421_v52 = vpack.c.bf16 %v1352_v62, %v1349_v45  ;;  %v7040_v55 = vpop.f32.mrb[20].mxu1 }
 0x15d   : > { %v1778_v60 = vpack.c.bf16 %v1556_v27, %v1553_v22  ;;  %v1420_v54 = vpack.c.bf16 %v1344_v16, %v1341_v48  ;;  %v2711_v22 = vld [vmem:[#allocation3 + $0x20] sm:$0xff]  ;;  %v2712_v27 = vld [vmem:[#allocation3 + $0x28] sm:$0xff]  ;;  %v1365_v59 = vadd.f32 %v7040_v55, %v9004_v23  ;;  %v2714_v19 = vld [vmem:[#allocation3 + $0x38] sm:$0xff] }
 0x15e   : > { %v1777_v1 = vpack.c.bf16 %v1548_v57, %v1545_v56  ;;  %1430 = vst.msk [vmem:[#allocation3 + $0x48] sm:$0xff] %vm1038_vm0, %v1421_v52  ;;  %7250 = vmatprep.subr.bf16.mxu0 %v2711_v22 }
 0x15f   : > { %1787 = vst.msk [vmem:[#allocation2 + $0x88] sm:$0xff] %vm1038_vm0, %v1778_v60  ;;  %1429 = vst.msk [vmem:[#allocation3 + $0x40] sm:$0xff] %vm1038_vm0, %v1420_v54  ;;  %v1356_v60 = vpop.f32.mrb[21].mxu1  ;;  %7251 = vmatpush3.bf16.msra.mxu0 %v2711_v22 }
 0x160   : > { %1786 = vst.msk [vmem:[#allocation2 + $0x80] sm:$0xff] %vm1038_vm0, %v1777_v1  ;;  %v7072_v6 = vpop.f32.mrb[36].mxu0  ;;  %v1357_v0 = vadd.f32 %v9004_v23, %v1356_v60  ;;  %v7041_v1 = vpop.f32.mrb[22].mxu1  ;;  %7252 = vmatprep.subr.bf16.mxu0 %v2712_v27 }
 0x161   : > { %v1560_v13 = vpop.f32.mrb[37].mxu0  ;;  %7225 = vmatpush3.bf16.xpose.msra.mxu1 %v2456_v7  ;;  %v1569_v32 = vadd.f32 %v7072_v6, %v8980_v34  ;;  %v1368_v3 = vadd.f32 %v7041_v1, %v9004_v23  ;;  %v1359_v5 = vpop.f32.mrb[23].mxu1  ;;  %v2713_v6 = vld [vmem:[#allocation3 + $0x30] sm:$0xff] }
 0x162   : > { %v7073_v24 = vpop.f32.mrb[38].mxu0  ;;  %7618 = vmatprep.subr.msk.bf16.mxu1 %vm1038_vm0, %v8998_v15  ;;  %v1561_v40 = vadd.f32 %v8980_v34, %v1560_v13  ;;  %v1360_v7 = vadd.f32 %v9004_v23, %v1359_v5  ;;  %v7044_v20 = vpop.f32.mrb[24].mxu1 }
 0x163   : > { %v1572_v33 = vadd.f32 %v7073_v24, %v8980_v34  ;;  %v1563_v35 = vpop.f32.mrb[39].mxu0  ;;  %v1423_v8 = vpack.c.bf16 %v1368_v3, %v1365_v59  ;;  %7253 = vmatpush3.bf16.msra.mxu0 %v2712_v27  ;;  %v1381_v29 = vadd.f32 %v7044_v20, %v9004_v23  ;;  %v1372_v31 = vpop.f32.mrb[25].mxu1 }
 0x164   : > { %v1564_v41 = vadd.f32 %v8980_v34, %v1563_v35  ;;  %v1422_v12 = vpack.c.bf16 %v1360_v7, %v1357_v0  ;;  %7254 = vmatprep.subr.bf16.mxu0 %v2713_v6  ;;  %v1373_v35 = vadd.f32 %v9004_v23, %v1372_v31  ;;  %v7045_v36 = vpop.f32.mrb[26].mxu1 }
 0x165   : > { %v1780_v10 = vpack.c.bf16 %v1572_v33, %v1569_v32  ;;  %1432 = vst.msk [vmem:[#allocation3 + $0x58] sm:$0xff] %vm1038_vm0, %v1423_v8 }
 0x166   : > { %v1779_v14 = vpack.c.bf16 %v1564_v41, %v1561_v40  ;;  %1431 = vst.msk [vmem:[#allocation3 + $0x50] sm:$0xff] %vm1038_vm0, %v1422_v12  ;;  %v1384_v40 = vadd.f32 %v7045_v36, %v9004_v23  ;;  %v1375_v41 = vpop.f32.mrb[27].mxu1 }
 0x167   : > { %1789 = vst.msk [vmem:[#allocation2 + $0x98] sm:$0xff] %vm1038_vm0, %v1780_v10  ;;  %7255 = vmatpush3.bf16.msra.mxu0 %v2713_v6  ;;  %v1376_v45 = vadd.f32 %v9004_v23, %v1375_v41 }
 0x168   : > { %1788 = vst.msk [vmem:[#allocation2 + $0x90] sm:$0xff] %vm1038_vm0, %v1779_v14  ;;  %v7076_v51 = vpop.f32.mrb[40].mxu0  ;;  %7256 = vmatprep.subr.bf16.mxu0 %v2714_v19  ;;  %v1425_v46 = vpack.c.bf16 %v1384_v40, %v1381_v29  ;;  %v7048_v14 = vpop.f32.mrb[28].mxu1 }
 0x169   : > { %v1576_v53 = vpop.f32.mrb[41].mxu0  ;;  %v1585_v56 = vadd.f32 %v7076_v51, %v8980_v34  ;;  %v1424_v11 = vpack.c.bf16 %v1376_v45, %v1373_v35  ;;  %v1397_v51 = vadd.f32 %v7048_v14, %v9004_v23  ;;  %v1388_v52 = vpop.f32.mrb[29].mxu1 }
 0x16a   : > { %v7077_v21 = vpop.f32.mrb[42].mxu0  ;;  %v1577_v61 = vadd.f32 %v8980_v34, %v1576_v53  ;;  %1434 = vst.msk [vmem:[#allocation3 + $0x68] sm:$0xff] %vm1038_vm0, %v1425_v46  ;;  %v7049_v22 = vpop.f32.mrb[30].mxu1 }
 0x16b   : > { %v1588_v57 = vadd.f32 %v7077_v21, %v8980_v34  ;;  %v1579_v58 = vpop.f32.mrb[43].mxu0  ;;  %7257 = vmatpush3.bf16.msra.mxu0 %v2714_v19  ;;  %1433 = vst.msk [vmem:[#allocation3 + $0x60] sm:$0xff] %vm1038_vm0, %v1424_v11  ;;  %v1389_v21 = vadd.f32 %v9004_v23, %v1388_v52  ;;  %v1400_v55 = vadd.f32 %v7049_v22, %v9004_v23 }
 0x16c   : > { %v1580_v63 = vadd.f32 %v8980_v34, %v1579_v58 }
 0x16d   : > { %v1782_v2 = vpack.c.bf16 %v1588_v57, %v1585_v56  ;;  %v1391_v56 = vpop.f32.mrb[31].mxu1  ;;  %v1427_v59 = vpack.c.bf16 %v1400_v55, %v1397_v51 }
 0x16e   : > { %v1781_v4 = vpack.c.bf16 %v1580_v63, %v1577_v61  ;;  %v1392_v58 = vadd.f32 %v9004_v23, %v1391_v56  ;;  %v9068_v63 = vld [vmem:[%s10795_s7 + $0x2] ss:$0 sm:$0xff] }
 0x16f   : > { %1791 = vst.msk [vmem:[#allocation2 + $0xa8] sm:$0xff] %vm1038_vm0, %v1782_v2  ;;  %1436 = vst.msk [vmem:[#allocation3 + $0x78] sm:$0xff] %vm1038_vm0, %v1427_v59  ;;  %v7100_v2 = vpop.f32.mrb[32].mxu1 }
 0x170   : > { %1790 = vst.msk [vmem:[#allocation2 + $0xa0] sm:$0xff] %vm1038_vm0, %v1781_v4  ;;  %v7080_v9 = vpop.f32.mrb[44].mxu0  ;;  %v1426_v61 = vpack.c.bf16 %v1392_v58, %v1389_v21  ;;  %v1723_v4 = vadd.f32 %v7100_v2, %v9068_v63  ;;  %v1714_v6 = vpop.f32.mrb[33].mxu1 }
 0x171   : > { %v1592_v13 = vpop.f32.mrb[45].mxu0  ;;  %v1601_v24 = vadd.f32 %v7080_v9, %v8980_v34  ;;  %v1715_v9 = vadd.f32 %v9068_v63, %v1714_v6  ;;  %v7101_v12 = vpop.f32.mrb[34].mxu1 }
 0x172   : > { %v7081_v17 = vpop.f32.mrb[46].mxu0  ;;  %v1593_v32 = vadd.f32 %v8980_v34, %v1592_v13  ;;  %1435 = vst.msk [vmem:[#allocation3 + $0x70] sm:$0xff] %vm1038_vm0, %v1426_v61  ;;  %v1717_v19 = vpop.f32.mrb[35].mxu1 }
 0x173   : > { %v1604_v25 = vadd.f32 %v7081_v17, %v8980_v34  ;;  %v1595_v26 = vpop.f32.mrb[47].mxu0  ;;  %v1726_v17 = vadd.f32 %v7101_v12, %v9068_v63 }
 0x174   : > { %v1596_v33 = vadd.f32 %v8980_v34, %v1595_v26  ;;  %v9051_v34 = vld [vmem:[%s10793_s5 + $0x3] ss:$0 sm:$0xff] }
 0x175   : > { %v1784_v39 = vpack.c.bf16 %v1604_v25, %v1601_v24  ;;  %v1718_v24 = vadd.f32 %v9068_v63, %v1717_v19  ;;  %v1795_v25 = vpack.c.bf16 %v1726_v17, %v1723_v4 }
 0x176   : > { %v1783_v42 = vpack.c.bf16 %v1596_v33, %v1593_v32  ;;  %v7104_v33 = vpop.f32.mrb[36].mxu1 }
 0x177   : > { %1793 = vst.msk [vmem:[#allocation2 + $0xb8] sm:$0xff] %vm1038_vm0, %v1784_v39  ;;  %v1794_v29 = vpack.c.bf16 %v1718_v24, %v1715_v9  ;;  %1804 = vst.msk [vmem:[#allocation3 + $0x88] sm:$0xff] %vm1038_vm0, %v1795_v25  ;;  %v1739_v40 = vadd.f32 %v7104_v33, %v9068_v63  ;;  %v1730_v41 = vpop.f32.mrb[37].mxu1 }
 0x178   : > { %1792 = vst.msk [vmem:[#allocation2 + $0xb0] sm:$0xff] %vm1038_vm0, %v1783_v42  ;;  %v7132_v10 = vpop.f32.mrb[48].mxu0  ;;  %v1731_v46 = vadd.f32 %v9068_v63, %v1730_v41 }
 0x179   : > { %v1918_v48 = vpop.f32.mrb[49].mxu0  ;;  %v1927_v62 = vadd.f32 %v7132_v10, %v9051_v34  ;;  %1803 = vst.msk [vmem:[#allocation3 + $0x80] sm:$0xff] %vm1038_vm0, %v1794_v29  ;;  %v7105_v10 = vpop.f32.mrb[38].mxu1 }
 0x17a   : > { %v7133_v49 = vpop.f32.mrb[50].mxu0  ;;  %v1919_v53 = vadd.f32 %v9051_v34, %v1918_v48  ;;  %v1742_v48 = vadd.f32 %v7105_v10, %v9068_v63  ;;  %v9124_v10 = vld [vmem:[%s10795_s7 + $0x3] ss:$0 sm:$0xff] }
 0x17b   : > { %v1930_v50 = vadd.f32 %v7133_v49, %v9051_v34  ;;  %v1921_v16 = vpop.f32.mrb[51].mxu0  ;;  %v1733_v49 = vpop.f32.mrb[39].mxu1 }
 0x17c   : > { %v1922_v54 = vadd.f32 %v9051_v34, %v1921_v16 }
 0x17d   : > { %v2152_v27 = vpack.c.bf16 %v1930_v50, %v1927_v62  ;;  %v1734_v62 = vadd.f32 %v9068_v63, %v1733_v49  ;;  %v1797_v50 = vpack.c.bf16 %v1742_v48, %v1739_v40 }
 0x17e   : > { %v2151_v57 = vpack.c.bf16 %v1922_v54, %v1919_v53  ;;  %v7108_v54 = vpop.f32.mrb[40].mxu1 }
 0x17f   : > { %2161 = vst.msk [vmem:[#allocation2 + $0xc8] sm:$0xff] %vm1038_vm0, %v2152_v27  ;;  %v1796_v51 = vpack.c.bf16 %v1734_v62, %v1731_v46  ;;  %1806 = vst.msk [vmem:[#allocation3 + $0x98] sm:$0xff] %vm1038_vm0, %v1797_v50  ;;  %v1755_v55 = vadd.f32 %v7108_v54, %v9068_v63  ;;  %v1746_v56 = vpop.f32.mrb[41].mxu1 }
 0x180   : > { %2160 = vst.msk [vmem:[#allocation2 + $0xc0] sm:$0xff] %vm1038_vm0, %v2151_v57  ;;  %v7136_v60 = vpop.f32.mrb[52].mxu0  ;;  %v1747_v59 = vadd.f32 %v9068_v63, %v1746_v56 }
 0x181   : > { %v1934_v0 = vpop.f32.mrb[53].mxu0  ;;  %v1943_v23 = vadd.f32 %v7136_v60, %v9051_v34  ;;  %1805 = vst.msk [vmem:[#allocation3 + $0x90] sm:$0xff] %vm1038_vm0, %v1796_v51  ;;  %v7109_v60 = vpop.f32.mrb[42].mxu1  ;;  %v3040_v51 = vsel %vm1038_vm0, %v8998_v15, 0 }
 0x182   : > { %v7137_v1 = vpop.f32.mrb[54].mxu0  ;;  %v1935_v7 = vadd.f32 %v9051_v34, %v1934_v0  ;;  %v1758_v0 = vadd.f32 %v7109_v60, %v9068_v63 }
 0x183   : > { %v1946_v3 = vadd.f32 %v7137_v1, %v9051_v34  ;;  %v1937_v5 = vpop.f32.mrb[55].mxu0  ;;  %v1749_v1 = vpop.f32.mrb[43].mxu1 }
 0x184   : > { %v1938_v8 = vadd.f32 %v9051_v34, %v1937_v5  ;;  %v1799_v5 = vpack.c.bf16 %v1758_v0, %v1755_v55  ;;  %v7112_v12 = vpop.f32.mrb[44].mxu1 }
 0x185   : > { %v2154_v13 = vpack.c.bf16 %v1946_v3, %v1943_v23  ;;  %v9106_v23 = vld [vmem:[%s10791_s3] ss:$0 sm:$0xff]  ;;  %v1750_v3 = vadd.f32 %v9068_v63, %v1749_v1  ;;  %v1771_v19 = vadd.f32 %v7112_v12, %v9068_v63 }
 0x186   : > { %v2153_v20 = vpack.c.bf16 %v1938_v8, %v1935_v7  ;;  %1808 = vst.msk [vmem:[#allocation3 + $0xa8] sm:$0xff] %vm1038_vm0, %v1799_v5 }
 0x187   : > { %2163 = vst.msk [vmem:[#allocation2 + $0xd8] sm:$0xff] %vm1038_vm0, %v2154_v13  ;;  %v1798_v4 = vpack.c.bf16 %v1750_v3, %v1747_v59 }
 0x188   : > { %2162 = vst.msk [vmem:[#allocation2 + $0xd0] sm:$0xff] %vm1038_vm0, %v2153_v20  ;;  %v7140_v26 = vpop.f32.mrb[56].mxu0  ;;  %v1762_v20 = vpop.f32.mrb[45].mxu1 }
 0x189   : > { %v1950_v31 = vpop.f32.mrb[57].mxu0  ;;  %v1959_v35 = vadd.f32 %v7140_v26, %v9051_v34  ;;  %1807 = vst.msk [vmem:[#allocation3 + $0xa0] sm:$0xff] %vm1038_vm0, %v1798_v4  ;;  %v1763_v25 = vadd.f32 %v9068_v63, %v1762_v20  ;;  %v7113_v26 = vpop.f32.mrb[46].mxu1 }
 0x18a   : > { %v7141_v32 = vpop.f32.mrb[58].mxu0  ;;  %v1951_v42 = vadd.f32 %v9051_v34, %v1950_v31  ;;  %v1765_v33 = vpop.f32.mrb[47].mxu1 }
 0x18b   : > { %v1962_v36 = vadd.f32 %v7141_v32, %v9051_v34  ;;  %v1953_v39 = vpop.f32.mrb[59].mxu0  ;;  %v1774_v32 = vadd.f32 %v7113_v26, %v9068_v63 }
 0x18c   : > { %v1954_v45 = vadd.f32 %v9051_v34, %v1953_v39  ;;  %v1766_v39 = vadd.f32 %v9068_v63, %v1765_v33 }
 0x18d   : > { %v2156_v11 = vpack.c.bf16 %v1962_v36, %v1959_v35  ;;  %v1801_v41 = vpack.c.bf16 %v1774_v32, %v1771_v19 }
 0x18e   : > { %v2155_v14 = vpack.c.bf16 %v1954_v45, %v1951_v42  ;;  %v1800_v46 = vpack.c.bf16 %v1766_v39, %v1763_v25  ;;  %v7164_v63 = vpop.f32.mrb[48].mxu1 }
 0x18f   : > { %2165 = vst.msk [vmem:[#allocation2 + $0xe8] sm:$0xff] %vm1038_vm0, %v2156_v11  ;;  %1810 = vst.msk [vmem:[#allocation3 + $0xb8] sm:$0xff] %vm1038_vm0, %v1801_v41 }
 0x190   : > { %2164 = vst.msk [vmem:[#allocation2 + $0xe0] sm:$0xff] %vm1038_vm0, %v2155_v14  ;;  %v7144_v16 = vpop.f32.mrb[60].mxu0  ;;  %1809 = vst.msk [vmem:[#allocation3 + $0xb0] sm:$0xff] %vm1038_vm0, %v1800_v46 }
 0x191   : > { %v1966_v52 = vpop.f32.mrb[61].mxu0  ;;  %v1975_v21 = vadd.f32 %v7144_v16, %v9051_v34 }
 0x192   : > { %v7145_v53 = vpop.f32.mrb[62].mxu0  ;;  %v1967_v57 = vadd.f32 %v9051_v34, %v1966_v52  ;;  %v2097_v52 = vadd.f32 %v7164_v63, %v9124_v10 }
 0x193   : > { %v1978_v22 = vadd.f32 %v7145_v53, %v9051_v34  ;;  %v1969_v27 = vpop.f32.mrb[63].mxu0  ;;  %v2088_v53 = vpop.f32.mrb[49].mxu1 }
 0x194   : > { %v1970_v58 = vadd.f32 %v9051_v34, %v1969_v27  ;;  %v2089_v27 = vadd.f32 %v9124_v10, %v2088_v53  ;;  %v7165_v55 = vpop.f32.mrb[50].mxu1 }
 0x195   : > { %v2158_v61 = vpack.c.bf16 %v1978_v22, %v1975_v21  ;;  %v3008_v22 = vld [vmem:[#allocation2 + $0x48] sm:$0xff] }
 0x196   : > { %v2157_v2 = vpack.c.bf16 %v1970_v58, %v1967_v57  ;;  %v2100_v57 = vadd.f32 %v7165_v55, %v9124_v10  ;;  %v2091_v58 = vpop.f32.mrb[51].mxu1  ;;  %v3043_v12 = vsel %vm1038_vm0, %v3008_v22, 0 }
 0x197   : > { %2167 = vst.msk [vmem:[#allocation2 + $0xf8] sm:$0xff] %vm1038_vm0, %v2158_v61  ;;  %v2092_v15 = vadd.f32 %v9124_v10, %v2091_v58 }
 0x198   : > { %2166 = vst.msk [vmem:[#allocation2 + $0xf0] sm:$0xff] %vm1038_vm0, %v2157_v2  ;;  %v7196_v34 = vpop.f32.mrb[64].mxu0  ;;  %v2169_v61 = vpack.c.bf16 %v2100_v57, %v2097_v52 }
 0x199   : > { %v2323_v6 = vadd.f32 %v7196_v34, %v9106_v23  ;;  %v2314_v7 = vpop.f32.mrb[65].mxu0  ;;  %v2168_v2 = vpack.c.bf16 %v2092_v15, %v2089_v27 }
 0x19a   : > { %v2315_v8 = vadd.f32 %v9106_v23, %v2314_v7  ;;  %v7197_v9 = vpop.f32.mrb[66].mxu0  ;;  %2178 = vst.msk [vmem:[#allocation3 + $0xc8] sm:$0xff] %vm1038_vm0, %v2169_v61 }
 0x19b   : > { %v2326_v13 = vadd.f32 %v7197_v9, %v9106_v23  ;;  %v2317_v17 = vpop.f32.mrb[67].mxu0  ;;  %v2379_v29 = vmul.f32 0.17677669, %v2323_v6  ;;  %2177 = vst.msk [vmem:[#allocation3 + $0xc0] sm:$0xff] %vm1038_vm0, %v2168_v2  ;;  %v7168_v6 = vpop.f32.mrb[52].mxu1 }
 0x19c   : > { %v2318_v24 = vadd.f32 %v9106_v23, %v2317_v17  ;;  %v2377_v35 = vmul.f32 0.17677669, %v2315_v8  ;;  %v2104_v17 = vpop.f32.mrb[53].mxu1 }
 0x19d   : > { %v2380_v31 = vmul.f32 0.17677669, %v2326_v13  ;;  %v2113_v13 = vadd.f32 %v7168_v6, %v9124_v10  ;;  %v2105_v25 = vadd.f32 %v9124_v10, %v2104_v17  ;;  %v7169_v26 = vpop.f32.mrb[54].mxu1 }
 0x19e   : > { %v2378_v36 = vmul.f32 0.17677669, %v2318_v24  ;;  %v3009_v24 = vld [vmem:[#allocation2 + $0x50] sm:$0xff]  ;;  %v2107_v32 = vpop.f32.mrb[55].mxu1 }
 0x19f   : > { %v2394_v40 = vpack.c.bf16 %v2380_v31, %v2379_v29  ;;  %v2116_v31 = vadd.f32 %v7169_v26, %v9124_v10 }
 0x1a0   : > { %v2393_v42 = vpack.c.bf16 %v2378_v36, %v2377_v35  ;;  %v7200_v45 = vpop.f32.mrb[68].mxu0  ;;  %v2108_v35 = vadd.f32 %v9124_v10, %v2107_v32 }
 0x1a1   : > { %v2339_v11 = vadd.f32 %v7200_v45, %v9106_v23  ;;  %v2330_v48 = vpop.f32.mrb[69].mxu0  ;;  %v2171_v39 = vpack.c.bf16 %v2116_v31, %v2113_v13  ;;  %v3012_v13 = vld [vmem:[#allocation2 + $0x68] sm:$0xff] }
 0x1a2   : > { %v2331_v49 = vadd.f32 %v9106_v23, %v2330_v48  ;;  %v7201_v14 = vpop.f32.mrb[70].mxu0  ;;  %7226 = vmatprep.mubr.msk.bf16.mxu1 %vm1038_vm0, %v2393_v42  ;;  %v2170_v42 = vpack.c.bf16 %v2108_v35, %v2105_v25  ;;  %v3055_v17 = vsel %vm1038_vm0, %v3012_v13, 0  ;;  %v9188_v25 = vld [vmem:[#allocation2 + $0x80] sm:$0xff] }
 0x1a3   : > { %v2383_v62 = vmul.f32 0.17677669, %v2339_v11  ;;  %v2342_v50 = vadd.f32 %v7201_v14, %v9106_v23  ;;  %v2333_v16 = vpop.f32.mrb[71].mxu0  ;;  %7227 = vmatmul.mubr.msk.bf16.vlgmr.msra.gmra.mrb[64].mxu1 %vm1038_vm0, %v2394_v40  ;;  %2180 = vst.msk [vmem:[#allocation3 + $0xd8] sm:$0xff] %vm1038_vm0, %v2171_v39 }
 0x1a4   : > { %v2381_v54 = vmul.f32 0.17677669, %v2331_v49  ;;  %v2334_v21 = vadd.f32 %v9106_v23, %v2333_v16  ;;  %7307 = vmatpush3.bf16.xpose.msra.mxu1 %v3040_v51  ;;  %2179 = vst.msk [vmem:[#allocation3 + $0xd0] sm:$0xff] %vm1038_vm0, %v2170_v42  ;;  %v7172_v49 = vpop.f32.mrb[56].mxu1 }
 0x1a5   : > { %v2384_v56 = vmul.f32 0.17677669, %v2342_v50  ;;  %7619 = vmatprep.subr.msk.bf16.mxu1 %vm1038_vm0, %v3008_v22  ;;  %v3046_v50 = vsel %vm1038_vm0, %v3009_v24, 0  ;;  %v2129_v16 = vadd.f32 %v7172_v49, %v9124_v10  ;;  %v2120_v51 = vpop.f32.mrb[57].mxu1 }
 0x1a6   : > { %v2382_v59 = vmul.f32 0.17677669, %v2334_v21  ;;  %v2121_v21 = vadd.f32 %v9124_v10, %v2120_v51  ;;  %v7173_v22 = vpop.f32.mrb[58].mxu1 }
 0x1a7   : > { %v2396_v60 = vpack.c.bf16 %v2384_v56, %v2383_v62  ;;  %v2132_v55 = vadd.f32 %v7173_v22, %v9124_v10  ;;  %v2123_v56 = vpop.f32.mrb[59].mxu1 }
 0x1a8   : > { %v2395_v0 = vpack.c.bf16 %v2382_v59, %v2381_v54  ;;  %v7204_v1 = vpop.f32.mrb[72].mxu0  ;;  %v3010_v54 = vld [vmem:[#allocation2 + $0x58] sm:$0xff]  ;;  %v2124_v58 = vadd.f32 %v9124_v10, %v2123_v56 }
 0x1a9   : > { %v2355_v3 = vadd.f32 %v7204_v1, %v9106_v23  ;;  %v2346_v5 = vpop.f32.mrb[73].mxu0  ;;  %v2173_v15 = vpack.c.bf16 %v2132_v55, %v2129_v16 }
 0x1aa   : > { %v2347_v34 = vadd.f32 %v9106_v23, %v2346_v5  ;;  %v7205_v4 = vpop.f32.mrb[74].mxu0  ;;  %7230 = vmatprep.mubr.msk.bf16.mxu1 %vm1038_vm0, %v2395_v0  ;;  %v2172_v61 = vpack.c.bf16 %v2124_v58, %v2121_v21  ;;  %v3049_v0 = vsel %vm1038_vm0, %v3010_v54, 0 }
 0x1ab   : > { %v2387_v7 = vmul.f32 0.17677669, %v2355_v3  ;;  %v2358_v8 = vadd.f32 %v7205_v4, %v9106_v23  ;;  %v2349_v9 = vpop.f32.mrb[75].mxu0  ;;  %7231 = vmatmul.mubr.msk.bf16.gmra.mrb[68].mxu1 %vm1038_vm0, %v2396_v60  ;;  %2182 = vst.msk [vmem:[#allocation3 + $0xe8] sm:$0xff] %vm1038_vm0, %v2173_v15  ;;  %v3011_v3 = vld [vmem:[#allocation2 + $0x60] sm:$0xff] }
 0x1ac   : > { %v2385_v19 = vmul.f32 0.17677669, %v2347_v34  ;;  %v2350_v20 = vadd.f32 %v9106_v23, %v2349_v9  ;;  %7309 = vmatpush3.bf16.xpose.msra.mxu1 %v3043_v12  ;;  %2181 = vst.msk [vmem:[#allocation3 + $0xe0] sm:$0xff] %vm1038_vm0, %v2172_v61  ;;  %v3052_v12 = vsel %vm1038_vm0, %v3011_v3, 0 }
 0x1ad   : > { %v2388_v29 = vmul.f32 0.17677669, %v2358_v8  ;;  %7620 = vmatprep.subr.msk.bf16.mxu1 %vm1038_vm0, %v3009_v24 }
 0x1ae   : > { %v2386_v33 = vmul.f32 0.17677669, %v2350_v20  ;;  %v3014_v20 = vld [vmem:[#allocation2 + $0x78] sm:$0xff] }
 0x1af   : > { %v2398_v36 = vpack.c.bf16 %v2388_v29, %v2387_v7  ;;  %v3061_v24 = vsel %vm1038_vm0, %v3014_v20, 0 }
 0x1b0   : > { %v2397_v40 = vpack.c.bf16 %v2386_v33, %v2385_v19  ;;  %v7208_v41 = vpop.f32.mrb[76].mxu0  ;;  %v3013_v19 = vld [vmem:[#allocation2 + $0x70] sm:$0xff] }
 0x1b1   : > { %v2371_v45 = vadd.f32 %v7208_v41, %v9106_v23  ;;  %v2362_v46 = vpop.f32.mrb[77].mxu0 }
 0x1b2   : > { %v2363_v11 = vadd.f32 %v9106_v23, %v2362_v46  ;;  %v7209_v48 = vpop.f32.mrb[78].mxu0  ;;  %7234 = vmatprep.mubr.msk.bf16.mxu1 %vm1038_vm0, %v2397_v40 }
 0x1b3   : > { %v2391_v14 = vmul.f32 0.17677669, %v2371_v45  ;;  %v2374_v63 = vadd.f32 %v7209_v48, %v9106_v23  ;;  %v2365_v62 = vpop.f32.mrb[79].mxu0  ;;  %7235 = vmatmul.mubr.msk.bf16.gmra.mrb[72].mxu1 %vm1038_vm0, %v2398_v36 }
 0x1b4   : > { %v2389_v52 = vmul.f32 0.17677669, %v2363_v11  ;;  %v2366_v53 = vadd.f32 %v9106_v23, %v2365_v62  ;;  %7311 = vmatpush3.bf16.xpose.msra.mxu1 %v3046_v50  ;;  %v7176_v23 = vpop.f32.mrb[60].mxu1 }
 0x1b5   : > { %v2392_v27 = vmul.f32 0.17677669, %v2374_v63  ;;  %7621 = vmatprep.subr.msk.bf16.mxu1 %vm1038_vm0, %v3010_v54  ;;  %v2145_v1 = vadd.f32 %v7176_v23, %v9124_v10  ;;  %v2136_v2 = vpop.f32.mrb[61].mxu1 }
 0x1b6   : > { %v2390_v57 = vmul.f32 0.17677669, %v2366_v53  ;;  %v2137_v5 = vadd.f32 %v9124_v10, %v2136_v2  ;;  %v7177_v34 = vpop.f32.mrb[62].mxu1 }
 0x1b7   : > { %v2400_v59 = vpack.c.bf16 %v2392_v27, %v2391_v14  ;;  %v2148_v4 = vadd.f32 %v7177_v34, %v9124_v10  ;;  %v2139_v6 = vpop.f32.mrb[63].mxu1 }
 0x1b8   : > { %v2399_v60 = vpack.c.bf16 %v2390_v57, %v2389_v52  ;;  %v2140_v7 = vadd.f32 %v9124_v10, %v2139_v6  ;;  %v3058_v10 = vsel %vm1038_vm0, %v3013_v19, 0 }
 0x1b9   : > { %v2175_v8 = vpack.c.bf16 %v2148_v4, %v2145_v1 }
 0x1ba   : > { %7238 = vmatprep.mubr.msk.bf16.mxu1 %vm1038_vm0, %v2399_v60  ;;  %v2174_v9 = vpack.c.bf16 %v2140_v7, %v2137_v5 }
 0x1bb   : > { %7239 = vmatmul.mubr.msk.bf16.gmra.mrb[76].mxu1 %vm1038_vm0, %v2400_v59  ;;  %2184 = vst.msk [vmem:[#allocation3 + $0xf8] sm:$0xff] %vm1038_vm0, %v2175_v8 }
 0x1bc   : > { %7313 = vmatpush3.bf16.xpose.msra.mxu1 %v3049_v0  ;;  %2183 = vst.msk [vmem:[#allocation3 + $0xf0] sm:$0xff] %vm1038_vm0, %v2174_v9 }
 0x1bd   : > { %7622 = vmatprep.subr.msk.bf16.mxu1 %vm1038_vm0, %v3011_v3 }
 0x1c4   : > { %7315 = vmatpush3.bf16.xpose.msra.mxu1 %v3052_v12 }
 0x1c5   : > { %7623 = vmatprep.subr.msk.bf16.mxu1 %vm1038_vm0, %v3012_v13 }
 0x1cc   : > { %7317 = vmatpush3.bf16.xpose.msra.mxu1 %v3055_v17 }
 0x1cd   : > { %7624 = vmatprep.subr.msk.bf16.mxu1 %vm1038_vm0, %v3013_v19 }
 0x1d4   : > { %7319 = vmatpush3.bf16.xpose.msra.mxu1 %v3058_v10 }
 0x1d5   : > { %7625 = vmatprep.subr.msk.bf16.mxu1 %vm1038_vm0, %v3014_v20 }
 0x1dc   : > { %7321 = vmatpush3.bf16.xpose.msra.mxu1 %v3061_v24 }
 0x1dd   : > { %7626 = vmatprep.subr.msk.bf16.mxu1 %vm1038_vm0, %v9188_v25 }
 0x276   : > { %v7228_v26 = vpop.f32.mrb[64].mxu1 }
 0x277   : > { %2559 = vmax.xlane.f32.xlu1 %v7228_v26  ;;  %v2492_v29 = vpop.f32.mrb[65].mxu1 }
 0x278   : > { %2555 = vmax.xlane.f32.xlu0 %v2492_v29  ;;  %v7229_v31 = vpop.f32.mrb[66].mxu1 }
 0x279   : > { %v2495_v32 = vpop.f32.mrb[67].mxu1 }
 0x27b   : > { %2561 = vmax.xlane.f32.xlu1 %v7229_v31 }
 0x27c   : > { %2557 = vmax.xlane.f32.xlu0 %v2495_v32 }
 0x27e   : > { %v7232_v33 = vpop.f32.mrb[68].mxu1 }
 0x27f   : > { %v2508_v35 = vpop.f32.mrb[69].mxu1 }
 0x280   : > { %2563 = vmax.xlane.f32.xlu0 %v2508_v35  ;;  %v7233_v36 = vpop.f32.mrb[70].mxu1 }
 0x281   : > { %v2511_v39 = vpop.f32.mrb[71].mxu1 }
 0x282   : > { %2565 = vmax.xlane.f32.xlu1 %v2511_v39 }
 0x284   : > { %2567 = vmax.xlane.f32.xlu0 %v7232_v33 }
 0x286   : > { %2569 = vmax.xlane.f32.xlu1 %v7233_v36  ;;  %v9192_v40 = vpop.f32.mrb[72].mxu1 }
 0x287   : > { %v2524_v41 = vpop.f32.mrb[73].mxu1 }
 0x288   : > { %2571 = vmax.xlane.f32.xlu0 %v2524_v41  ;;  %v9194_v42 = vpop.f32.mrb[74].mxu1 }
 0x289   : > { %v2527_v45 = vpop.f32.mrb[75].mxu1 }
 0x28a   : > { %2573 = vmax.xlane.f32.xlu1 %v2527_v45 }
 0x28c   : > { %2575 = vmax.xlane.f32.xlu0 %v9192_v40 }
 0x28e   : > { %2577 = vmax.xlane.f32.xlu1 %v9194_v42  ;;  %v9198_v46 = vpop.f32.mrb[76].mxu1 }
 0x28f   : > { %v9200_v11 = vpop.f32.mrb[77].mxu1 }
 0x290   : > { %2579 = vmax.xlane.f32.xlu0 %v9200_v11  ;;  %v9203_v48 = vpop.f32.mrb[78].mxu1 }
 0x291   : > { %v9205_v49 = vpop.f32.mrb[79].mxu1 }
 0x292   : > { %2581 = vmax.xlane.f32.xlu1 %v9205_v49 }
 0x294   : > { %2583 = vmax.xlane.f32.xlu0 %v9198_v46 }
 0x296   : > { %2585 = vmax.xlane.f32.xlu1 %v9203_v48 }
 0x304   : > { %v2560_v14 = vpop.xlane.xlu1 %2559 }
 0x305   : > { %v2589_v63 = vsub.f32 %v7228_v26, %v2560_v14  ;;  %v2556_v62 = vpop.xlane.xlu0 %2555 }
 0x306   : > { %v2587_v50 = vsub.f32 %v2492_v29, %v2556_v62 }
 0x307   : > { %v2607_v52 = vmul.f32 1.442695, %v2589_v63 }
 0x308   : > { %v2603_v16 = vmul.f32 1.442695, %v2587_v50  ;;  %v2562_v51 = vpop.xlane.xlu1 %2561 }
 0x309   : > { %v2590_v53 = vsub.f32 %v7229_v31, %v2562_v51  ;;  %v2558_v54 = vpop.xlane.xlu0 %2557 }
 0x30a   : > { %7975 = vpow2.f32 %v2603_v16  ;;  %v2588_v21 = vsub.f32 %v2495_v32, %v2558_v54 }
 0x30b   : > { %7977 = vpow2.f32 %v2607_v52  ;;  %v2609_v27 = vmul.f32 1.442695, %v2590_v53 }
 0x30c   : > { %v2605_v22 = vmul.f32 1.442695, %v2588_v21  ;;  %v7903_v21 = vld [vmem:[%s10828_s21 + $0x40] sm:$0xff]  }
 0x30d   : > { %v2564_v55 = vpop.xlane.xlu0 %2563  ;;  %7274 = vmatprep.subr.bf16.mxu0 %v7903_v21 }
 0x30e   : > { %7979 = vpow2.f32 %v2605_v22  ;;  %v2591_v56 = vsub.f32 %v2508_v35, %v2564_v55 }
 0x30f   : > { %v2566_v57 = vpop.xlane.xlu1 %2565  ;;  %7981 = vpow2.f32 %v2609_v27 }
 0x310   : > { %v2611_v58 = vmul.f32 1.442695, %v2591_v56  ;;  %v2592_v59 = vsub.f32 %v2511_v39, %v2566_v57 }
 0x311   : > { %v2568_v15 = vpop.xlane.xlu0 %2567 }
 0x312   : > { %7983 = vpow2.f32 %v2611_v58  ;;  %v2613_v60 = vmul.f32 1.442695, %v2592_v59  ;;  %v2593_v61 = vsub.f32 %v7232_v33, %v2568_v15 }
 0x313   : > { %v2570_v23 = vpop.xlane.xlu1 %2569 }
 0x314   : > { %v9210_v0 = vpop.eup %7975  ;;  %v2615_v1 = vmul.f32 1.442695, %v2593_v61  ;;  %v2594_v2 = vsub.f32 %v7233_v36, %v2570_v23  ;;  %7985 = vpow2.f32 %v2613_v60 }
 0x315   : > { %v2572_v3 = vpop.xlane.xlu0 %2571  ;;  %2635 = vadd.xlane.f32.xlu0 %v9210_v0  ;;  %v9213_v4 = vpop.eup %7977 }
 0x316   : > { %7987 = vpow2.f32 %v2615_v1  ;;  %v2617_v5 = vmul.f32 1.442695, %v2594_v2  ;;  %v2595_v34 = vsub.f32 %v2524_v41, %v2572_v3 }
 0x317   : > { %v2574_v6 = vpop.xlane.xlu1 %2573 }
 0x318   : > { %v9215_v7 = vpop.eup %7979  ;;  %v2619_v8 = vmul.f32 1.442695, %v2595_v34  ;;  %v2596_v9 = vsub.f32 %v2527_v45, %v2574_v6  ;;  %7989 = vpow2.f32 %v2617_v5 }
 0x319   : > { %v2576_v12 = vpop.xlane.xlu0 %2575  ;;  %2639 = vadd.xlane.f32.xlu0 %v9213_v4  ;;  %2637 = vadd.xlane.f32.xlu1 %v9215_v7  ;;  %v9220_v19 = vpop.eup %7981 }
 0x31a   : > { %7991 = vpow2.f32 %v2619_v8  ;;  %v2621_v13 = vmul.f32 1.442695, %v2596_v9  ;;  %v2597_v17 = vsub.f32 %v9192_v40, %v2576_v12 }
 0x31b   : > { %v2578_v10 = vpop.xlane.xlu1 %2577 }
 0x31c   : > { %v9222_v20 = vpop.eup %7983  ;;  %v2623_v24 = vmul.f32 1.442695, %v2597_v17  ;;  %v2598_v26 = vsub.f32 %v9194_v42, %v2578_v10  ;;  %7993 = vpow2.f32 %v2621_v13 }
 0x31d   : > { %2643 = vadd.xlane.f32.xlu0 %v9222_v20  ;;  %v2580_v29 = vpop.xlane.xlu0 %2579  ;;  %2641 = vadd.xlane.f32.xlu1 %v9220_v19 }
 0x31e   : > { %7995 = vpow2.f32 %v2623_v24  ;;  %v2625_v31 = vmul.f32 1.442695, %v2598_v26  ;;  %v2599_v32 = vsub.f32 %v9200_v11, %v2580_v29  ;;  %v9228_v33 = vpop.eup %7985 }
 0x31f   : > { %v2582_v35 = vpop.xlane.xlu1 %2581 }
 0x320   : > { %v9230_v36 = vpop.eup %7987  ;;  %v2627_v39 = vmul.f32 1.442695, %v2599_v32  ;;  %v2600_v40 = vsub.f32 %v9205_v49, %v2582_v35  ;;  %7997 = vpow2.f32 %v2625_v31  ;;  %v7905_v31 = vld [vmem:[%s10828_s21 + $0x50] sm:$0xff]  }
 0x321   : > { %2647 = vadd.xlane.f32.xlu0 %v9230_v36  ;;  %v2584_v41 = vpop.xlane.xlu0 %2583  ;;  %2645 = vadd.xlane.f32.xlu1 %v9228_v33 }
 0x322   : > { %7999 = vpow2.f32 %v2627_v39  ;;  %v2629_v42 = vmul.f32 1.442695, %v2600_v40  ;;  %v2601_v45 = vsub.f32 %v9198_v46, %v2584_v41  ;;  %v9236_v14 = vpop.eup %7989 }
 0x323   : > { %v2586_v11 = vpop.xlane.xlu1 %2585 }
 0x324   : > { %v9238_v63 = vpop.eup %7991  ;;  %v2631_v62 = vmul.f32 1.442695, %v2601_v45  ;;  %v2602_v50 = vsub.f32 %v9203_v48, %v2586_v11  ;;  %8001 = vpow2.f32 %v2629_v42  ;;  %v7906_v42 = vld [vmem:[%s10828_s21 + $0x58] sm:$0xff]  }
 0x325   : > { %2651 = vadd.xlane.f32.xlu0 %v9238_v63  ;;  %2649 = vadd.xlane.f32.xlu1 %v9236_v14 }
 0x326   : > { %8003 = vpow2.f32 %v2631_v62  ;;  %v2633_v49 = vmul.f32 1.442695, %v2602_v50  ;;  %v9243_v16 = vpop.eup %7993 }
 0x328   : > { %v9245_v51 = vpop.eup %7995  ;;  %8005 = vpow2.f32 %v2633_v49  ;;  %v7907_v49 = vld [vmem:[%s10828_s21 + $0x60] sm:$0xff]  }
 0x329   : > { %2655 = vadd.xlane.f32.xlu0 %v9245_v51  ;;  %2653 = vadd.xlane.f32.xlu1 %v9243_v16 }
 0x32a   : > { %v9249_v46 = vpop.eup %7997 }
 0x32c   : > { %v9251_v52 = vpop.eup %7999 }
 0x32d   : > { %2659 = vadd.xlane.f32.xlu0 %v9251_v52  ;;  %2657 = vadd.xlane.f32.xlu1 %v9249_v46 }
 0x32e   : > { %v9255_v48 = vpop.eup %8001 }
 0x330   : > { %v9257_v53 = vpop.eup %8003 }
 0x331   : > { %2663 = vadd.xlane.f32.xlu0 %v9257_v53  ;;  %2661 = vadd.xlane.f32.xlu1 %v9255_v48 }
 0x332   : > { %v9261_v54 = vpop.eup %8005 }
 0x335   : > { %2665 = vadd.xlane.f32.xlu1 %v9261_v54 }
 0x3a2   : > { %v2636_v22 = vpop.xlane.xlu0 %2635 }
 0x3a3   : > { %8007 = vrcp.f32 %v2636_v22 }
 0x3a6   : > { %v2640_v27 = vpop.xlane.xlu0 %2639  ;;  %v2638_v55 = vpop.xlane.xlu1 %2637 }
 0x3a7   : > { %8009 = vrcp.f32 %v2638_v55 }
 0x3a8   : > { %8011 = vrcp.f32 %v2640_v27 }
 0x3aa   : > { %v2644_v56 = vpop.xlane.xlu0 %2643  ;;  %v2642_v57 = vpop.xlane.xlu1 %2641 }
 0x3ab   : > { %8013 = vrcp.f32 %v2642_v57 }
 0x3ac   : > { %8015 = vrcp.f32 %v2644_v56 }
 0x3ad   : > { %v8008_v15 = vpop.eup %8007 }
 0x3ae   : > { %v2648_v58 = vpop.xlane.xlu0 %2647  ;;  %v2646_v59 = vpop.xlane.xlu1 %2645  ;;  %v2683_v1 = vmul.f32 %v8008_v15, %v9210_v0  ;;  %v7904_v0 = vld [vmem:[%s10828_s21 + $0x48] sm:$0xff]  }
 0x3af   : > { %8017 = vrcp.f32 %v2646_v59 }
 0x3b0   : > { %8019 = vrcp.f32 %v2648_v58 }
 0x3b1   : > { %v8010_v60 = vpop.eup %8009 }
 0x3b2   : > { %v2652_v61 = vpop.xlane.xlu0 %2651  ;;  %v2650_v23 = vpop.xlane.xlu1 %2649  ;;  %v2684_v2 = vmul.f32 %v8010_v60, %v9215_v7 }
 0x3b3   : > { %v8012_v3 = vpop.eup %8011  ;;  %8021 = vrcp.f32 %v2650_v23 }
 0x3b4   : > { %v2699_v5 = vpack.c.bf16 %v2684_v2, %v2683_v1  ;;  %8023 = vrcp.f32 %v2652_v61  ;;  %v2685_v9 = vmul.f32 %v8012_v3, %v9213_v4  ;;  %v3316_v1 = vld [vmem:[#allocation3 + $0x58] sm:$0xff]  ;;  %v3317_v2 = vld [vmem:[#allocation3 + $0x60] sm:$0xff]  ;;  %v3318_v3 = vld [vmem:[#allocation3 + $0x68] sm:$0xff] }
 0x3b5   : > { %v8014_v34 = vpop.eup %8013 }
 0x3b6   : > { %v2656_v6 = vpop.xlane.xlu0 %2655  ;;  %v2654_v8 = vpop.xlane.xlu1 %2653  ;;  %v2686_v12 = vmul.f32 %v8014_v34, %v9220_v19  ;;  %7258 = vmatprep.mubr.bf16.mxu0 %v2699_v5  ;;  %v3319_v5 = vld [vmem:[#allocation3 + $0x70] sm:$0xff]  ;;  %v3320_v34 = vld [vmem:[#allocation3 + $0x78] sm:$0xff] }
 0x3b7   : > { %v8016_v13 = vpop.eup %8015  ;;  %8025 = vrcp.f32 %v2654_v8 }
 0x3b8   : > { %v2700_v17 = vpack.c.bf16 %v2686_v12, %v2685_v9  ;;  %8027 = vrcp.f32 %v2656_v6  ;;  %v2687_v26 = vmul.f32 %v8016_v13, %v9222_v20 }
 0x3b9   : > { %v8018_v7 = vpop.eup %8017 }
 0x3ba   : > { %v2660_v10 = vpop.xlane.xlu0 %2659  ;;  %v2658_v24 = vpop.xlane.xlu1 %2657  ;;  %7259 = vmatmul.mubr.bf16.vlgmr.msra.gmra.mrb[80].mxu0 %v2700_v17  ;;  %v2688_v29 = vmul.f32 %v8018_v7, %v9228_v33 }
 0x3bb   : > { %v8020_v4 = vpop.eup %8019  ;;  %7275 = vmatpush3.bf16.msra.mxu0 %v7903_v21  ;;  %8029 = vrcp.f32 %v2658_v24 }
 0x3bc   : > { %7276 = vmatprep.subr.bf16.mxu0 %v7904_v0  ;;  %v2701_v19 = vpack.c.bf16 %v2688_v29, %v2687_v26  ;;  %8031 = vrcp.f32 %v2660_v10  ;;  %v2689_v40 = vmul.f32 %v8020_v4, %v9230_v36 }
 0x3bd   : > { %v8022_v32 = vpop.eup %8021 }
 0x3be   : > { %v2664_v35 = vpop.xlane.xlu0 %2663  ;;  %v2662_v39 = vpop.xlane.xlu1 %2661  ;;  %7262 = vmatprep.mubr.bf16.mxu0 %v2701_v19  ;;  %v2690_v20 = vmul.f32 %v8022_v32, %v9236_v14 }
 0x3bf   : > { %v8024_v41 = vpop.eup %8023  ;;  %7277 = vmatpush3.bf16.msra.mxu0 %v7904_v0  ;;  %8033 = vrcp.f32 %v2662_v39 }
 0x3c0   : > { %8035 = vrcp.f32 %v2664_v35  ;;  %7278 = vmatprep.subr.bf16.mxu0 %v7905_v31  ;;  %v2702_v33 = vpack.c.bf16 %v2690_v20, %v2689_v40  ;;  %v2691_v62 = vmul.f32 %v8024_v41, %v9238_v63  ;;  %v9347_v35 = vld [vmem:[%s10791_s3 + $0x1] ss:$0 sm:$0xff] }
 0x3c1   : > { %v8026_v45 = vpop.eup %8025 }
 0x3c2   : > { %v2666_v11 = vpop.xlane.xlu1 %2665  ;;  %7263 = vmatmul.mubr.bf16.gmra.mrb[84].mxu0 %v2702_v33  ;;  %v2692_v36 = vmul.f32 %v8026_v45, %v9243_v16  ;;  %v8028_v50 = vpop.eup %8027  ;;  %v7908_v16 = vld [vmem:[%s10828_s21 + $0x68] sm:$0xff]  }
 0x3c3   : > { %8037 = vrcp.f32 %v2666_v11  ;;  %7279 = vmatpush3.bf16.msra.mxu0 %v7905_v31  ;;  %v2693_v22 = vmul.f32 %v8028_v50, %v9245_v51 }
 0x3c4   : > { %7280 = vmatprep.subr.bf16.mxu0 %v7906_v42  ;;  %v2703_v14 = vpack.c.bf16 %v2692_v36, %v2691_v62 }
 0x3c5   : > { %v8030_v21 = vpop.eup %8029 }
 0x3c6   : > { %7266 = vmatprep.mubr.bf16.mxu0 %v2703_v14  ;;  %v2694_v27 = vmul.f32 %v8030_v21, %v9249_v46  ;;  %v8032_v55 = vpop.eup %8031  ;;  %v7909_v46 = vld [vmem:[%s10828_s21 + $0x70] sm:$0xff]  }
 0x3c7   : > { %7281 = vmatpush3.bf16.msra.mxu0 %v7906_v42  ;;  %v2695_v58 = vmul.f32 %v8032_v55, %v9251_v52  ;;  %v7910_v52 = vld [vmem:[%s10828_s21 + $0x78] sm:$0xff]  }
 0x3c8   : > { %7282 = vmatprep.subr.bf16.mxu0 %v7907_v49  ;;  %v2704_v63 = vpack.c.bf16 %v2694_v27, %v2693_v22 }
 0x3c9   : > { %v8034_v56 = vpop.eup %8033 }
 0x3ca   : > { %v8036_v57 = vpop.eup %8035  ;;  %7267 = vmatmul.mubr.bf16.gmra.mrb[88].mxu0 %v2704_v63  ;;  %v2696_v59 = vmul.f32 %v8034_v56, %v9255_v48  ;;  %v3313_v48 = vld [vmem:[#allocation3 + $0x40] sm:$0xff] }
 0x3cb   : > { %7283 = vmatpush3.bf16.msra.mxu0 %v7907_v49  ;;  %v2697_v60 = vmul.f32 %v8036_v57, %v9257_v53  ;;  %v3314_v53 = vld [vmem:[#allocation3 + $0x48] sm:$0xff] }
 0x3cc   : > { %7284 = vmatprep.subr.bf16.mxu0 %v7908_v16  ;;  %v2705_v51 = vpack.c.bf16 %v2696_v59, %v2695_v58  ;;  %v3646_v58 = vsel %vm1038_vm0, %v9188_v25, 0 }
 0x3cd   : > { %v8038_v15 = vpop.eup %8037 }
 0x3ce   : > { %v2698_v61 = vmul.f32 %v8038_v15, %v9261_v54  ;;  %7270 = vmatprep.mubr.bf16.mxu0 %v2705_v51  ;;  %v3315_v54 = vld [vmem:[#allocation3 + $0x50] sm:$0xff]  ;;  %v3614_v15 = vld [vmem:[#allocation2 + $0x88] sm:$0xff] }
 0x3cf   : > { %7285 = vmatpush3.bf16.msra.mxu0 %v7908_v16 }
 0x3d0   : > { %v2706_v23 = vpack.c.bf16 %v2698_v61, %v2697_v60  ;;  %7286 = vmatprep.subr.bf16.mxu0 %v7909_v46 }
 0x3d2   : > { %7271 = vmatmul.mubr.bf16.gmra.mrb[92].mxu0 %v2706_v23 }
 0x3d3   : > { %7287 = vmatpush3.bf16.msra.mxu0 %v7909_v46  ;;  %7290 = vmatprep.mubr.bf16.mxu0 %v8847_v18 }
 0x3d4   : > { %7288 = vmatprep.subr.bf16.mxu0 %v7910_v52 }
 0x3d7   : > { %7289 = vmatpush3.bf16.msra.mxu0 %v7910_v52 }
 0x3d8   : > { %7338 = vmatprep.subr.bf16.mxu0 %v3313_v48 }
 0x3da   : > { %7291 = vmatmul.mubr.bf16.vlgmr.msra.gmra.mrb[96].mxu0 %v8863_v28 }
 0x3db   : > { %7339 = vmatpush3.bf16.msra.mxu0 %v3313_v48  ;;  %7294 = vmatprep.mubr.bf16.mxu0 %v8868_v30 }
 0x3dc   : > { %7340 = vmatprep.subr.bf16.mxu0 %v3314_v53 }
 0x3df   : > { %7341 = vmatpush3.bf16.msra.mxu0 %v3314_v53 }
 0x3e0   : > { %7342 = vmatprep.subr.bf16.mxu0 %v3315_v54 }
 0x3e2   : > { %7295 = vmatmul.mubr.bf16.gmra.mrb[100].mxu0 %v8881_v37 }
 0x3e3   : > { %7343 = vmatpush3.bf16.msra.mxu0 %v3315_v54  ;;  %7298 = vmatprep.mubr.bf16.mxu0 %v8883_v38 }
 0x3e4   : > { %7344 = vmatprep.subr.bf16.mxu0 %v3316_v1 }
 0x3e7   : > { %7345 = vmatpush3.bf16.msra.mxu0 %v3316_v1 }
 0x3e8   : > { %7346 = vmatprep.subr.bf16.mxu0 %v3317_v2 }
 0x3ea   : > { %7299 = vmatmul.mubr.bf16.gmra.mrb[104].mxu0 %v8893_v43 }
 0x3eb   : > { %7347 = vmatpush3.bf16.msra.mxu0 %v3317_v2  ;;  %7302 = vmatprep.mubr.bf16.mxu0 %v8895_v44 }
 0x3ec   : > { %7348 = vmatprep.subr.bf16.mxu0 %v3318_v3 }
 0x3ef   : > { %7349 = vmatpush3.bf16.msra.mxu0 %v3318_v3 }
 0x3f0   : > { %7350 = vmatprep.subr.bf16.mxu0 %v3319_v5 }
 0x3f2   : > { %7303 = vmatmul.mubr.bf16.gmra.mrb[108].mxu0 %v8903_v47 }
 0x3f3   : > { %7351 = vmatpush3.bf16.msra.mxu0 %v3319_v5  ;;  %v3649_v5 = vsel %vm1038_vm0, %v3614_v15, 0 }
 0x3f4   : > { %7352 = vmatprep.subr.bf16.mxu0 %v3320_v34 }
 0x3f7   : > { %7353 = vmatpush3.bf16.msra.mxu0 %v3320_v34 }
 0x48d   : > { %v9312_v6 = vpop.f32.mrb[80].mxu0 }
 0x48e   : > { %10830 = vst [vmem:[#allocation13_spill] sm:$0xff] %v9312_v6  ;;  %v9314_v8 = vpop.f32.mrb[81].mxu0 }
 0x48f   : > { %10831 = vst [vmem:[#allocation14_spill] sm:$0xff] %v9314_v8  ;;  %v9316_v9 = vpop.f32.mrb[82].mxu0 }
 0x490   : > { %10832 = vst [vmem:[#allocation15_spill] sm:$0xff] %v9316_v9  ;;  %v9318_v12 = vpop.f32.mrb[83].mxu0 }
 0x491   : > { %10833 = vst [vmem:[#allocation16_spill] sm:$0xff] %v9318_v12 }
 0x495   : > { %v9320_v13 = vpop.f32.mrb[84].mxu0 }
 0x496   : > { %10834 = vst [vmem:[#allocation17_spill] sm:$0xff] %v9320_v13  ;;  %v9322_v17 = vpop.f32.mrb[85].mxu0 }
 0x497   : > { %10835 = vst [vmem:[#allocation18_spill] sm:$0xff] %v9322_v17  ;;  %v9324_v0 = vpop.f32.mrb[86].mxu0 }
 0x498   : > { %10836 = vst [vmem:[#allocation19_spill] sm:$0xff] %v9324_v0  ;;  %v9326_v7 = vpop.f32.mrb[87].mxu0 }
 0x499   : > { %10837 = vst [vmem:[#allocation20_spill] sm:$0xff] %v9326_v7 }
 0x49d   : > { %v9328_v10 = vpop.f32.mrb[88].mxu0 }
 0x49e   : > { %10838 = vst [vmem:[#allocation21_spill] sm:$0xff] %v9328_v10  ;;  %v9330_v24 = vpop.f32.mrb[89].mxu0 }
 0x49f   : > { %10839 = vst [vmem:[#allocation22_spill] sm:$0xff] %v9330_v24  ;;  %v9332_v26 = vpop.f32.mrb[90].mxu0 }
 0x4a0   : > { %10840 = vst [vmem:[#allocation23_spill] sm:$0xff] %v9332_v26  ;;  %v9334_v29 = vpop.f32.mrb[91].mxu0 }
 0x4a1   : > { %10841 = vst [vmem:[#allocation24_spill] sm:$0xff] %v9334_v29 }
 0x4a5   : > { %v9336_v4 = vpop.f32.mrb[92].mxu0 }
 0x4a6   : > { %10842 = vst [vmem:[#allocation25_spill] sm:$0xff] %v9336_v4  ;;  %v9338_v19 = vpop.f32.mrb[93].mxu0 }
 0x4a7   : > { %10843 = vst [vmem:[#allocation26_spill] sm:$0xff] %v9338_v19  ;;  %v9340_v31 = vpop.f32.mrb[94].mxu0 }
 0x4a8   : > { %10844 = vst [vmem:[#allocation27_spill] sm:$0xff] %v9340_v31  ;;  %v9342_v32 = vpop.f32.mrb[95].mxu0 }
 0x4a9   : > { %10845 = vst [vmem:[#allocation28_spill] sm:$0xff] %v9342_v32 }
 0x4ad   : > { %v7292_v39 = vpop.f32.mrb[96].mxu0 }
 0x4ae   : > { %v2928_v40 = vadd.f32 %v7292_v39, %v9347_v35  ;;  %v2919_v20 = vpop.f32.mrb[97].mxu0  ;;  %v3615_v39 = vld [vmem:[#allocation2 + $0x90] sm:$0xff] }
 0x4af   : > { %v2920_v41 = vadd.f32 %v9347_v35, %v2919_v20  ;;  %v7293_v33 = vpop.f32.mrb[98].mxu0 }
 0x4b0   : > { %v2931_v42 = vadd.f32 %v7293_v33, %v9347_v35  ;;  %v2922_v45 = vpop.f32.mrb[99].mxu0  ;;  %v2984_v62 = vmul.f32 0.17677669, %v2928_v40 }
 0x4b1   : > { %v2923_v11 = vadd.f32 %v9347_v35, %v2922_v45  ;;  %v2982_v50 = vmul.f32 0.17677669, %v2920_v41 }
 0x4b2   : > { %v2985_v36 = vmul.f32 0.17677669, %v2931_v42 }
 0x4b3   : > { %v2983_v14 = vmul.f32 0.17677669, %v2923_v11 }
 0x4b4   : > { %v2999_v49 = vpack.c.bf16 %v2985_v36, %v2984_v62 }
 0x4b5   : > { %v2998_v21 = vpack.c.bf16 %v2983_v14, %v2982_v50  ;;  %v7296_v22 = vpop.f32.mrb[100].mxu0 }
 0x4b6   : > { %v2944_v27 = vadd.f32 %v7296_v22, %v9347_v35  ;;  %v2935_v55 = vpop.f32.mrb[101].mxu0  ;;  %v3652_v22 = vsel %vm1038_vm0, %v3615_v39, 0 }
 0x4b7   : > { %v2936_v63 = vadd.f32 %v9347_v35, %v2935_v55  ;;  %v7297_v16 = vpop.f32.mrb[102].mxu0  ;;  %7322 = vmatprep.mubr.msk.bf16.mxu1 %vm1038_vm0, %v2998_v21  ;;  %v3616_v55 = vld [vmem:[#allocation2 + $0x98] sm:$0xff] }
 0x4b8   : > { %v2947_v56 = vadd.f32 %v7297_v16, %v9347_v35  ;;  %v2938_v57 = vpop.f32.mrb[103].mxu0  ;;  %7323 = vmatmul.mubr.msk.bf16.vlgmr.msra.gmra.mrb[80].mxu1 %vm1038_vm0, %v2999_v49  ;;  %v2988_v51 = vmul.f32 0.17677669, %v2944_v27 }
 0x4b9   : > { %v2939_v59 = vadd.f32 %v9347_v35, %v2938_v57  ;;  %7403 = vmatpush3.bf16.xpose.msra.mxu1 %v3646_v58  ;;  %v2986_v60 = vmul.f32 0.17677669, %v2936_v63 }
 0x4ba   : > { %v2989_v46 = vmul.f32 0.17677669, %v2947_v56  ;;  %7627 = vmatprep.subr.msk.bf16.mxu1 %vm1038_vm0, %v3614_v15  ;;  %v3655_v15 = vsel %vm1038_vm0, %v3616_v55, 0 }
 0x4bb   : > { %v2987_v61 = vmul.f32 0.17677669, %v2939_v59 }
 0x4bc   : > { %v3001_v23 = vpack.c.bf16 %v2989_v46, %v2988_v51  ;;  %v3617_v51 = vld [vmem:[#allocation2 + $0xa0] sm:$0xff]  ;;  %v3618_v46 = vld [vmem:[#allocation2 + $0xa8] sm:$0xff] }
 0x4bd   : > { %v3000_v52 = vpack.c.bf16 %v2987_v61, %v2986_v60  ;;  %v7300_v48 = vpop.f32.mrb[104].mxu0  ;;  %v3661_v60 = vsel %vm1038_vm0, %v3618_v46, 0  ;;  %v3619_v61 = vld [vmem:[#allocation2 + $0xb0] sm:$0xff] }
 0x4be   : > { %v2960_v53 = vadd.f32 %v7300_v48, %v9347_v35  ;;  %v2951_v54 = vpop.f32.mrb[105].mxu0 }
 0x4bf   : > { %v2952_v1 = vadd.f32 %v9347_v35, %v2951_v54  ;;  %v7301_v2 = vpop.f32.mrb[106].mxu0  ;;  %7326 = vmatprep.mubr.msk.bf16.mxu1 %vm1038_vm0, %v3000_v52  ;;  %v3620_v52 = vld [vmem:[#allocation2 + $0xb8] sm:$0xff] }
 0x4c0   : > { %v2963_v25 = vadd.f32 %v7301_v2, %v9347_v35  ;;  %v2954_v3 = vpop.f32.mrb[107].mxu0  ;;  %7327 = vmatmul.mubr.msk.bf16.gmra.mrb[84].mxu1 %vm1038_vm0, %v3001_v23  ;;  %v2992_v40 = vmul.f32 0.17677669, %v2960_v53  ;;  %v3664_v23 = vsel %vm1038_vm0, %v3619_v61, 0  ;;  %v3667_v48 = vsel %vm1038_vm0, %v3620_v52, 0  ;;  %v9389_v53 = vld [vmem:[#allocation2 + $0xc0] sm:$0xff] }
 0x4c1   : > { %v2955_v34 = vadd.f32 %v9347_v35, %v2954_v3  ;;  %7405 = vmatpush3.bf16.xpose.msra.mxu1 %v3649_v5  ;;  %v2990_v41 = vmul.f32 0.17677669, %v2952_v1 }
 0x4c2   : > { %v2993_v20 = vmul.f32 0.17677669, %v2963_v25  ;;  %7628 = vmatprep.subr.msk.bf16.mxu1 %vm1038_vm0, %v3615_v39 }
 0x4c3   : > { %v2991_v33 = vmul.f32 0.17677669, %v2955_v34 }
 0x4c4   : > { %v3003_v42 = vpack.c.bf16 %v2993_v20, %v2992_v40 }
 0x4c5   : > { %v3002_v45 = vpack.c.bf16 %v2991_v33, %v2990_v41  ;;  %v7304_v11 = vpop.f32.mrb[108].mxu0 }
 0x4c6   : > { %v2976_v62 = vadd.f32 %v7304_v11, %v9347_v35  ;;  %v2967_v36 = vpop.f32.mrb[109].mxu0 }
 0x4c7   : > { %v2968_v50 = vadd.f32 %v9347_v35, %v2967_v36  ;;  %v7305_v14 = vpop.f32.mrb[110].mxu0  ;;  %7330 = vmatprep.mubr.msk.bf16.mxu1 %vm1038_vm0, %v3002_v45 }
 0x4c8   : > { %v2979_v49 = vadd.f32 %v7305_v14, %v9347_v35  ;;  %v2970_v21 = vpop.f32.mrb[111].mxu0  ;;  %7331 = vmatmul.mubr.msk.bf16.gmra.mrb[88].mxu1 %vm1038_vm0, %v3003_v42  ;;  %v2996_v63 = vmul.f32 0.17677669, %v2976_v62 }
 0x4c9   : > { %v2971_v27 = vadd.f32 %v9347_v35, %v2970_v21  ;;  %7407 = vmatpush3.bf16.xpose.msra.mxu1 %v3652_v22  ;;  %v2994_v56 = vmul.f32 0.17677669, %v2968_v50  ;;  %v3658_v35 = vsel %vm1038_vm0, %v3617_v51, 0 }
 0x4ca   : > { %v2997_v16 = vmul.f32 0.17677669, %v2979_v49  ;;  %7629 = vmatprep.subr.msk.bf16.mxu1 %vm1038_vm0, %v3616_v55 }
 0x4cb   : > { %v2995_v57 = vmul.f32 0.17677669, %v2971_v27 }
 0x4cc   : > { %v3005_v58 = vpack.c.bf16 %v2997_v16, %v2996_v63 }
 0x4cd   : > { %v3004_v59 = vpack.c.bf16 %v2995_v57, %v2994_v56 }
 0x4cf   : > { %7334 = vmatprep.mubr.msk.bf16.mxu1 %vm1038_vm0, %v3004_v59 }
 0x4d0   : > { %7335 = vmatmul.mubr.msk.bf16.gmra.mrb[92].mxu1 %vm1038_vm0, %v3005_v58 }
 0x4d1   : > { %7409 = vmatpush3.bf16.xpose.msra.mxu1 %v3655_v15 }
 0x4d2   : > { %7630 = vmatprep.subr.msk.bf16.mxu1 %vm1038_vm0, %v3617_v51 }
 0x4d9   : > { %7411 = vmatpush3.bf16.xpose.msra.mxu1 %v3658_v35 }
 0x4da   : > { %7631 = vmatprep.subr.msk.bf16.mxu1 %vm1038_vm0, %v3618_v46 }
 0x4e1   : > { %7413 = vmatpush3.bf16.xpose.msra.mxu1 %v3661_v60 }
 0x4e2   : > { %7632 = vmatprep.subr.msk.bf16.mxu1 %vm1038_vm0, %v3619_v61 }
 0x4e9   : > { %7415 = vmatpush3.bf16.xpose.msra.mxu1 %v3664_v23 }
 0x4ea   : > { %7633 = vmatprep.subr.msk.bf16.mxu1 %vm1038_vm0, %v3620_v52 }
 0x4f1   : > { %7417 = vmatpush3.bf16.xpose.msra.mxu1 %v3667_v48 }
 0x4f2   : > { %7634 = vmatprep.subr.msk.bf16.mxu1 %vm1038_vm0, %v9389_v53 }
 0x58b   : > { %v7324_v54 = vpop.f32.mrb[80].mxu1 }
 0x58c   : > { %v3097_v1 = vpop.f32.mrb[81].mxu1 }
 0x58d   : > { %3160 = vmax.xlane.f32.xlu0 %v3097_v1  ;;  %v7325_v2 = vpop.f32.mrb[82].mxu1 }
 0x58e   : > { %v3100_v25 = vpop.f32.mrb[83].mxu1 }
 0x58f   : > { %3162 = vmax.xlane.f32.xlu1 %v3100_v25 }
 0x591   : > { %3164 = vmax.xlane.f32.xlu0 %v7324_v54 }
 0x593   : > { %3166 = vmax.xlane.f32.xlu1 %v7325_v2  ;;  %v7328_v3 = vpop.f32.mrb[84].mxu1 }
 0x594   : > { %v3113_v5 = vpop.f32.mrb[85].mxu1 }
 0x595   : > { %3168 = vmax.xlane.f32.xlu0 %v3113_v5  ;;  %v7329_v34 = vpop.f32.mrb[86].mxu1 }
 0x596   : > { %v3116_v39 = vpop.f32.mrb[87].mxu1 }
 0x597   : > { %3170 = vmax.xlane.f32.xlu1 %v3116_v39 }
 0x599   : > { %3172 = vmax.xlane.f32.xlu0 %v7328_v3 }
 0x59b   : > { %3174 = vmax.xlane.f32.xlu1 %v7329_v34  ;;  %v9393_v40 = vpop.f32.mrb[88].mxu1 }
 0x59c   : > { %v3129_v20 = vpop.f32.mrb[89].mxu1 }
 0x59d   : > { %3176 = vmax.xlane.f32.xlu0 %v3129_v20  ;;  %v9395_v41 = vpop.f32.mrb[90].mxu1 }
 0x59e   : > { %v3132_v33 = vpop.f32.mrb[91].mxu1 }
 0x59f   : > { %3178 = vmax.xlane.f32.xlu1 %v3132_v33 }
 0x5a1   : > { %3180 = vmax.xlane.f32.xlu0 %v9393_v40 }
 0x5a3   : > { %3182 = vmax.xlane.f32.xlu1 %v9395_v41  ;;  %v9399_v42 = vpop.f32.mrb[92].mxu1 }
 0x5a4   : > { %v9401_v45 = vpop.f32.mrb[93].mxu1 }
 0x5a5   : > { %3184 = vmax.xlane.f32.xlu0 %v9401_v45  ;;  %v9404_v11 = vpop.f32.mrb[94].mxu1 }
 0x5a6   : > { %v9406_v62 = vpop.f32.mrb[95].mxu1 }
 0x5a7   : > { %3186 = vmax.xlane.f32.xlu1 %v9406_v62 }
 0x5a9   : > { %3188 = vmax.xlane.f32.xlu0 %v9399_v42 }
 0x5ab   : > { %3190 = vmax.xlane.f32.xlu1 %v9404_v11 }
 0x61a   : > { %v3161_v36 = vpop.xlane.xlu0 %3160 }
 0x61b   : > { %v3192_v50 = vsub.f32 %v3097_v1, %v3161_v36 }
 0x61c   : > { %v3163_v14 = vpop.xlane.xlu1 %3162 }
 0x61d   : > { %v3208_v49 = vmul.f32 1.442695, %v3192_v50  ;;  %v3193_v21 = vsub.f32 %v3100_v25, %v3163_v14 }
 0x61e   : > { %v3165_v22 = vpop.xlane.xlu0 %3164 }
 0x61f   : > { %8039 = vpow2.f32 %v3208_v49  ;;  %v3210_v27 = vmul.f32 1.442695, %v3193_v21  ;;  %v3194_v55 = vsub.f32 %v7324_v54, %v3165_v22 }
 0x620   : > { %v3167_v63 = vpop.xlane.xlu1 %3166 }
 0x621   : > { %8041 = vpow2.f32 %v3210_v27  ;;  %v3212_v16 = vmul.f32 1.442695, %v3194_v55  ;;  %v3195_v56 = vsub.f32 %v7325_v2, %v3167_v63 }
 0x622   : > { %v3169_v57 = vpop.xlane.xlu0 %3168 }
 0x623   : > { %8043 = vpow2.f32 %v3212_v16  ;;  %v3214_v58 = vmul.f32 1.442695, %v3195_v56  ;;  %v3196_v59 = vsub.f32 %v3113_v5, %v3169_v57 }
 0x624   : > { %v3171_v15 = vpop.xlane.xlu1 %3170 }
 0x625   : > { %8045 = vpow2.f32 %v3214_v58  ;;  %v3216_v51 = vmul.f32 1.442695, %v3196_v59  ;;  %v3197_v35 = vsub.f32 %v3116_v39, %v3171_v15 }
 0x626   : > { %v3173_v46 = vpop.xlane.xlu0 %3172 }
 0x627   : > { %8047 = vpow2.f32 %v3216_v51  ;;  %v3218_v60 = vmul.f32 1.442695, %v3197_v35  ;;  %v3198_v61 = vsub.f32 %v7328_v3, %v3173_v46 }
 0x628   : > { %v3175_v23 = vpop.xlane.xlu1 %3174 }
 0x629   : > { %v9411_v52 = vpop.eup %8039  ;;  %8049 = vpow2.f32 %v3218_v60  ;;  %v3220_v48 = vmul.f32 1.442695, %v3198_v61  ;;  %v3199_v54 = vsub.f32 %v7329_v34, %v3175_v23 }
 0x62a   : > { %v3177_v1 = vpop.xlane.xlu0 %3176  ;;  %3240 = vadd.xlane.f32.xlu0 %v9411_v52 }
 0x62b   : > { %v9414_v2 = vpop.eup %8041  ;;  %8051 = vpow2.f32 %v3220_v48  ;;  %v3222_v25 = vmul.f32 1.442695, %v3199_v54  ;;  %v3200_v5 = vsub.f32 %v3129_v20, %v3177_v1 }
 0x62c   : > { %v3179_v36 = vpop.xlane.xlu1 %3178  ;;  %3242 = vadd.xlane.f32.xlu1 %v9414_v2 }
 0x62d   : > { %v9417_v39 = vpop.eup %8043  ;;  %8053 = vpow2.f32 %v3222_v25  ;;  %v3224_v3 = vmul.f32 1.442695, %v3200_v5  ;;  %v3201_v50 = vsub.f32 %v3132_v33, %v3179_v36  ;;  %v7911_v5 = vld [vmem:[%s10828_s21 + $0x80] sm:$0xff]  }
 0x62e   : > { %v3181_v14 = vpop.xlane.xlu0 %3180  ;;  %3244 = vadd.xlane.f32.xlu0 %v9417_v39  ;;  %7370 = vmatprep.subr.bf16.mxu0 %v7911_v5 }
 0x62f   : > { %v9420_v34 = vpop.eup %8045  ;;  %8055 = vpow2.f32 %v3224_v3  ;;  %v3226_v49 = vmul.f32 1.442695, %v3201_v50  ;;  %v3202_v21 = vsub.f32 %v9393_v40, %v3181_v14 }
 0x630   : > { %v3183_v22 = vpop.xlane.xlu1 %3182  ;;  %3246 = vadd.xlane.f32.xlu1 %v9420_v34 }
 0x631   : > { %v9424_v20 = vpop.eup %8047  ;;  %8057 = vpow2.f32 %v3226_v49  ;;  %v3228_v27 = vmul.f32 1.442695, %v3202_v21  ;;  %v3203_v55 = vsub.f32 %v9395_v41, %v3183_v22 }
 0x632   : > { %3248 = vadd.xlane.f32.xlu0 %v9424_v20  ;;  %v3185_v33 = vpop.xlane.xlu0 %3184 }
 0x633   : > { %v9428_v63 = vpop.eup %8049  ;;  %8059 = vpow2.f32 %v3228_v27  ;;  %v3230_v16 = vmul.f32 1.442695, %v3203_v55  ;;  %v3204_v56 = vsub.f32 %v9401_v45, %v3185_v33 }
 0x634   : > { %3250 = vadd.xlane.f32.xlu1 %v9428_v63  ;;  %v3187_v40 = vpop.xlane.xlu1 %3186 }
 0x635   : > { %v9432_v57 = vpop.eup %8051  ;;  %8061 = vpow2.f32 %v3230_v16  ;;  %v3232_v58 = vmul.f32 1.442695, %v3204_v56  ;;  %v3205_v59 = vsub.f32 %v9406_v62, %v3187_v40 }
 0x636   : > { %3252 = vadd.xlane.f32.xlu0 %v9432_v57  ;;  %v3189_v41 = vpop.xlane.xlu0 %3188 }
 0x637   : > { %v9436_v15 = vpop.eup %8053  ;;  %8063 = vpow2.f32 %v3232_v58  ;;  %v3234_v51 = vmul.f32 1.442695, %v3205_v59  ;;  %v3206_v35 = vsub.f32 %v9399_v42, %v3189_v41 }
 0x638   : > { %3254 = vadd.xlane.f32.xlu1 %v9436_v15  ;;  %v3191_v45 = vpop.xlane.xlu1 %3190 }
 0x639   : > { %v9440_v46 = vpop.eup %8055  ;;  %8065 = vpow2.f32 %v3234_v51  ;;  %v3236_v60 = vmul.f32 1.442695, %v3206_v35  ;;  %v3207_v61 = vsub.f32 %v9404_v11, %v3191_v45 }
 0x63a   : > { %3256 = vadd.xlane.f32.xlu0 %v9440_v46 }
 0x63b   : > { %v9444_v62 = vpop.eup %8057  ;;  %8067 = vpow2.f32 %v3236_v60  ;;  %v3238_v23 = vmul.f32 1.442695, %v3207_v61 }
 0x63c   : > { %3258 = vadd.xlane.f32.xlu1 %v9444_v62 }
 0x63d   : > { %v9447_v48 = vpop.eup %8059  ;;  %8069 = vpow2.f32 %v3238_v23 }
 0x63e   : > { %3260 = vadd.xlane.f32.xlu0 %v9447_v48 }
 0x63f   : > { %v9450_v42 = vpop.eup %8061 }
 0x640   : > { %3262 = vadd.xlane.f32.xlu1 %v9450_v42 }
 0x641   : > { %v9453_v54 = vpop.eup %8063 }
 0x642   : > { %3264 = vadd.xlane.f32.xlu0 %v9453_v54 }
 0x643   : > { %v9456_v11 = vpop.eup %8065 }
 0x644   : > { %3266 = vadd.xlane.f32.xlu1 %v9456_v11 }
 0x645   : > { %v9459_v1 = vpop.eup %8067 }
 0x646   : > { %3268 = vadd.xlane.f32.xlu0 %v9459_v1 }
 0x647   : > { %v9462_v25 = vpop.eup %8069 }
 0x648   : > { %3270 = vadd.xlane.f32.xlu1 %v9462_v25 }
 0x6b7   : > { %v3241_v36 = vpop.xlane.xlu0 %3240 }
 0x6b8   : > { %8071 = vrcp.f32 %v3241_v36 }
 0x6b9   : > { %v3243_v3 = vpop.xlane.xlu1 %3242 }
 0x6ba   : > { %8073 = vrcp.f32 %v3243_v3 }
 0x6bb   : > { %v3245_v50 = vpop.xlane.xlu0 %3244 }
 0x6bc   : > { %8075 = vrcp.f32 %v3245_v50 }
 0x6bd   : > { %v3247_v14 = vpop.xlane.xlu1 %3246 }
 0x6be   : > { %8077 = vrcp.f32 %v3247_v14 }
 0x6bf   : > { %v3249_v49 = vpop.xlane.xlu0 %3248 }
 0x6c0   : > { %8079 = vrcp.f32 %v3249_v49  ;;  %v7913_v49 = vld [vmem:[%s10828_s21 + $0x90] sm:$0xff]  }
 0x6c1   : > { %v3251_v21 = vpop.xlane.xlu1 %3250 }
 0x6c2   : > { %v8072_v22 = vpop.eup %8071  ;;  %8081 = vrcp.f32 %v3251_v21 }
 0x6c3   : > { %v3253_v27 = vpop.xlane.xlu0 %3252  ;;  %v3288_v16 = vmul.f32 %v8072_v22, %v9411_v52  ;;  %v7912_v52 = vld [vmem:[%s10828_s21 + $0x88] sm:$0xff]  }
 0x6c4   : > { %v8074_v55 = vpop.eup %8073  ;;  %8083 = vrcp.f32 %v3253_v27 }
 0x6c5   : > { %v3255_v33 = vpop.xlane.xlu1 %3254  ;;  %v3289_v56 = vmul.f32 %v8074_v55, %v9414_v2 }
 0x6c6   : > { %v8076_v40 = vpop.eup %8075  ;;  %8085 = vrcp.f32 %v3255_v33  ;;  %v7914_v33 = vld [vmem:[%s10828_s21 + $0x98] sm:$0xff]  }
 0x6c7   : > { %v3257_v58 = vpop.xlane.xlu0 %3256  ;;  %v3304_v59 = vpack.c.bf16 %v3289_v56, %v3288_v16  ;;  %v3290_v51 = vmul.f32 %v8076_v40, %v9417_v39 }
 0x6c8   : > { %v8078_v41 = vpop.eup %8077  ;;  %8087 = vrcp.f32 %v3257_v58 }
 0x6c9   : > { %v3291_v35 = vmul.f32 %v8078_v41, %v9420_v34  ;;  %7354 = vmatprep.mubr.bf16.mxu0 %v3304_v59  ;;  %v3259_v45 = vpop.xlane.xlu1 %3258  ;;  %v7915_v59 = vld [vmem:[%s10828_s21 + $0xa0] sm:$0xff]  }
 0x6ca   : > { %v8080_v60 = vpop.eup %8079  ;;  %8089 = vrcp.f32 %v3259_v45 }
 0x6cb   : > { %v3261_v61 = vpop.xlane.xlu0 %3260  ;;  %v3305_v23 = vpack.c.bf16 %v3291_v35, %v3290_v51  ;;  %v3292_v3 = vmul.f32 %v8080_v60, %v9424_v20 }
 0x6cc   : > { %v8082_v2 = vpop.eup %8081  ;;  %8091 = vrcp.f32 %v3261_v61 }
 0x6cd   : > { %7355 = vmatmul.mubr.bf16.vlgmr.msra.gmra.mrb[112].mxu0 %v3305_v23  ;;  %v3263_v36 = vpop.xlane.xlu1 %3262  ;;  %v3293_v39 = vmul.f32 %v8082_v2, %v9428_v63 }
 0x6ce   : > { %v8084_v50 = vpop.eup %8083  ;;  %7371 = vmatpush3.bf16.msra.mxu0 %v7911_v5  ;;  %8093 = vrcp.f32 %v3263_v36 }
 0x6cf   : > { %v3265_v34 = vpop.xlane.xlu0 %3264  ;;  %7372 = vmatprep.subr.bf16.mxu0 %v7912_v52  ;;  %v3306_v14 = vpack.c.bf16 %v3293_v39, %v3292_v3  ;;  %v3294_v27 = vmul.f32 %v8084_v50, %v9432_v57  ;;  %v3922_v50 = vld [vmem:[#allocation3 + $0x98] sm:$0xff] }
 0x6d0   : > { %v8086_v21 = vpop.eup %8085  ;;  %8095 = vrcp.f32 %v3265_v34  ;;  %v3923_v34 = vld [vmem:[#allocation3 + $0xa0] sm:$0xff] }
 0x6d1   : > { %7358 = vmatprep.mubr.bf16.mxu0 %v3306_v14  ;;  %v3267_v22 = vpop.xlane.xlu1 %3266  ;;  %v3295_v20 = vmul.f32 %v8086_v21, %v9436_v15  ;;  %v3924_v14 = vld [vmem:[#allocation3 + $0xa8] sm:$0xff]  ;;  %v3926_v21 = vld [vmem:[#allocation3 + $0xb8] sm:$0xff] }
 0x6d2   : > { %v8088_v55 = vpop.eup %8087  ;;  %7373 = vmatpush3.bf16.msra.mxu0 %v7912_v52  ;;  %8097 = vrcp.f32 %v3267_v22 }
 0x6d3   : > { %v3269_v63 = vpop.xlane.xlu0 %3268  ;;  %7374 = vmatprep.subr.bf16.mxu0 %v7913_v49  ;;  %v3307_v5 = vpack.c.bf16 %v3295_v20, %v3294_v27  ;;  %v3296_v40 = vmul.f32 %v8088_v55, %v9440_v46 }
 0x6d4   : > { %v8090_v16 = vpop.eup %8089  ;;  %8099 = vrcp.f32 %v3269_v63 }
 0x6d5   : > { %7359 = vmatmul.mubr.bf16.gmra.mrb[116].mxu0 %v3307_v5  ;;  %v3271_v56 = vpop.xlane.xlu1 %3270  ;;  %v3297_v57 = vmul.f32 %v8090_v16, %v9444_v62  ;;  %v7916_v62 = vld [vmem:[%s10828_s21 + $0xa8] sm:$0xff]  }
 0x6d6   : > { %v8092_v58 = vpop.eup %8091  ;;  %7375 = vmatpush3.bf16.msra.mxu0 %v7913_v49  ;;  %8101 = vrcp.f32 %v3271_v56  ;;  %v3925_v49 = vld [vmem:[#allocation3 + $0xb0] sm:$0xff] }
 0x6d7   : > { %7376 = vmatprep.subr.bf16.mxu0 %v7914_v33  ;;  %v3308_v15 = vpack.c.bf16 %v3297_v57, %v3296_v40  ;;  %v3298_v51 = vmul.f32 %v8092_v58, %v9447_v48 }
 0x6d8   : > { %v8094_v41 = vpop.eup %8093 }
 0x6d9   : > { %7362 = vmatprep.mubr.bf16.mxu0 %v3308_v15  ;;  %v3299_v35 = vmul.f32 %v8094_v41, %v9450_v42  ;;  %v7917_v42 = vld [vmem:[%s10828_s21 + $0xb0] sm:$0xff]  }
 0x6da   : > { %v8096_v45 = vpop.eup %8095  ;;  %7377 = vmatpush3.bf16.msra.mxu0 %v7914_v33 }
 0x6db   : > { %7378 = vmatprep.subr.bf16.mxu0 %v7915_v59  ;;  %v3309_v46 = vpack.c.bf16 %v3299_v35, %v3298_v51  ;;  %v3300_v61 = vmul.f32 %v8096_v45, %v9453_v54  ;;  %v7918_v54 = vld [vmem:[%s10828_s21 + $0xb8] sm:$0xff]  }
 0x6dc   : > { %v8098_v60 = vpop.eup %8097 }
 0x6dd   : > { %7363 = vmatmul.mubr.bf16.gmra.mrb[120].mxu0 %v3309_v46  ;;  %v3301_v23 = vmul.f32 %v8098_v60, %v9456_v11  ;;  %v3919_v11 = vld [vmem:[#allocation3 + $0x80] sm:$0xff] }
 0x6de   : > { %v8100_v52 = vpop.eup %8099  ;;  %7379 = vmatpush3.bf16.msra.mxu0 %v7915_v59 }
 0x6df   : > { %7380 = vmatprep.subr.bf16.mxu0 %v7916_v62  ;;  %v3310_v48 = vpack.c.bf16 %v3301_v23, %v3300_v61  ;;  %v3302_v36 = vmul.f32 %v8100_v52, %v9459_v1  ;;  %v3920_v1 = vld [vmem:[#allocation3 + $0x88] sm:$0xff] }
 0x6e0   : > { %v8102_v2 = vpop.eup %8101 }
 0x6e1   : > { %7366 = vmatprep.mubr.bf16.mxu0 %v3310_v48  ;;  %v3303_v3 = vmul.f32 %v8102_v2, %v9462_v25  ;;  %v3921_v25 = vld [vmem:[#allocation3 + $0x90] sm:$0xff]  ;;  %v9564_v48 = vld [vmem:[%s10791_s3 + $0x2] ss:$0 sm:$0xff] }
 0x6e2   : > { %7381 = vmatpush3.bf16.msra.mxu0 %v7916_v62 }
 0x6e3   : > { %7382 = vmatprep.subr.bf16.mxu0 %v7917_v42  ;;  %v3311_v39 = vpack.c.bf16 %v3303_v3, %v3302_v36 }
 0x6e5   : > { %7367 = vmatmul.mubr.bf16.gmra.mrb[124].mxu0 %v3311_v39 }
 0x6e6   : > { %7383 = vmatpush3.bf16.msra.mxu0 %v7917_v42  ;;  %7386 = vmatprep.mubr.bf16.mxu0 %v8847_v18 }
 0x6e7   : > { %7384 = vmatprep.subr.bf16.mxu0 %v7918_v54 }
 0x6ea   : > { %7385 = vmatpush3.bf16.msra.mxu0 %v7918_v54 }
 0x6eb   : > { %7434 = vmatprep.subr.bf16.mxu0 %v3919_v11 }
 0x6ed   : > { %7387 = vmatmul.mubr.bf16.vlgmr.msra.gmra.mrb[128].mxu0 %v8863_v28 }
 0x6ee   : > { %7435 = vmatpush3.bf16.msra.mxu0 %v3919_v11  ;;  %7390 = vmatprep.mubr.bf16.mxu0 %v8868_v30 }
 0x6ef   : > { %7436 = vmatprep.subr.bf16.mxu0 %v3920_v1 }
 0x6f2   : > { %7437 = vmatpush3.bf16.msra.mxu0 %v3920_v1 }
 0x6f3   : > { %7438 = vmatprep.subr.bf16.mxu0 %v3921_v25 }
 0x6f5   : > { %7391 = vmatmul.mubr.bf16.gmra.mrb[132].mxu0 %v8881_v37 }
 0x6f6   : > { %7439 = vmatpush3.bf16.msra.mxu0 %v3921_v25  ;;  %7394 = vmatprep.mubr.bf16.mxu0 %v8883_v38 }
 0x6f7   : > { %7440 = vmatprep.subr.bf16.mxu0 %v3922_v50 }
 0x6fa   : > { %7441 = vmatpush3.bf16.msra.mxu0 %v3922_v50 }
 0x6fb   : > { %7442 = vmatprep.subr.bf16.mxu0 %v3923_v34 }
 0x6fd   : > { %7395 = vmatmul.mubr.bf16.gmra.mrb[136].mxu0 %v8893_v43 }
 0x6fe   : > { %7443 = vmatpush3.bf16.msra.mxu0 %v3923_v34  ;;  %7398 = vmatprep.mubr.bf16.mxu0 %v8895_v44 }
 0x6ff   : > { %7444 = vmatprep.subr.bf16.mxu0 %v3924_v14 }
 0x702   : > { %7445 = vmatpush3.bf16.msra.mxu0 %v3924_v14 }
 0x703   : > { %7446 = vmatprep.subr.bf16.mxu0 %v3925_v49 }
 0x705   : > { %7399 = vmatmul.mubr.bf16.gmra.mrb[140].mxu0 %v8903_v47 }
 0x706   : > { %7447 = vmatpush3.bf16.msra.mxu0 %v3925_v49 }
 0x707   : > { %7448 = vmatprep.subr.bf16.mxu0 %v3926_v21 }
 0x70a   : > { %7449 = vmatpush3.bf16.msra.mxu0 %v3926_v21 }
 0x7a0   : > { %v9513_v22 = vpop.f32.mrb[112].mxu0 }
 0x7a1   : > { %v9515_v27 = vpop.f32.mrb[113].mxu0 }
 0x7a2   : > { %v9517_v20 = vpop.f32.mrb[114].mxu0 }
 0x7a3   : > { %v9521_v63 = vpop.f32.mrb[115].mxu0 }
 0x7a8   : > { %v9525_v33 = vpop.f32.mrb[116].mxu0 }
 0x7a9   : > { %v9527_v16 = vpop.f32.mrb[117].mxu0 }
 0x7aa   : > { %v9529_v56 = vpop.f32.mrb[118].mxu0 }
 0x7ab   : > { %v9533_v57 = vpop.f32.mrb[119].mxu0 }
 0x7b0   : > { %v9537_v15 = vpop.f32.mrb[120].mxu0 }
 0x7b1   : > { %v9539_v59 = vpop.f32.mrb[121].mxu0 }
 0x7b2   : > { %v9541_v41 = vpop.f32.mrb[122].mxu0 }
 0x7b3   : > { %v9545_v35 = vpop.f32.mrb[123].mxu0 }
 0x7b8   : > { %v9549_v46 = vpop.f32.mrb[124].mxu0 }
 0x7b9   : > { %v9551_v62 = vpop.f32.mrb[125].mxu0 }
 0x7ba   : > { %v9553_v60 = vpop.f32.mrb[126].mxu0 }
 0x7bb   : > { %v9557_v23 = vpop.f32.mrb[127].mxu0 }
 0x7c0   : > { %v7388_v42 = vpop.f32.mrb[128].mxu0 }
 0x7c1   : > { %v3534_v2 = vadd.f32 %v7388_v42, %v9564_v48  ;;  %v3525_v36 = vpop.f32.mrb[129].mxu0 }
 0x7c2   : > { %v3526_v3 = vadd.f32 %v9564_v48, %v3525_v36  ;;  %v7389_v39 = vpop.f32.mrb[130].mxu0 }
 0x7c3   : > { %v3537_v54 = vadd.f32 %v7389_v39, %v9564_v48  ;;  %v3528_v11 = vpop.f32.mrb[131].mxu0  ;;  %v3590_v25 = vmul.f32 0.17677669, %v3534_v2  ;;  %v4252_v2 = vsel %vm1038_vm0, %v9389_v53, 0 }
 0x7c4   : > { %v3529_v1 = vadd.f32 %v9564_v48, %v3528_v11  ;;  %v3588_v34 = vmul.f32 0.17677669, %v3526_v3 }
 0x7c5   : > { %v3591_v50 = vmul.f32 0.17677669, %v3537_v54  ;;  %v4220_v54 = vld [vmem:[#allocation2 + $0xc8] sm:$0xff] }
 0x7c6   : > { %v3589_v14 = vmul.f32 0.17677669, %v3529_v1 }
 0x7c7   : > { %v3605_v49 = vpack.c.bf16 %v3591_v50, %v3590_v25 }
 0x7c8   : > { %v3604_v21 = vpack.c.bf16 %v3589_v14, %v3588_v34  ;;  %v7392_v52 = vpop.f32.mrb[132].mxu0 }
 0x7c9   : > { %v3550_v61 = vadd.f32 %v7392_v52, %v9564_v48  ;;  %v3541_v45 = vpop.f32.mrb[133].mxu0 }
 0x7ca   : > { %v3542_v42 = vadd.f32 %v9564_v48, %v3541_v45  ;;  %v7393_v51 = vpop.f32.mrb[134].mxu0  ;;  %7418 = vmatprep.mubr.msk.bf16.mxu1 %vm1038_vm0, %v3604_v21 }
 0x7cb   : > { %v3553_v36 = vadd.f32 %v7393_v51, %v9564_v48  ;;  %v3544_v39 = vpop.f32.mrb[135].mxu0  ;;  %7419 = vmatmul.mubr.msk.bf16.vlgmr.msra.gmra.mrb[96].mxu1 %vm1038_vm0, %v3605_v49  ;;  %v3594_v11 = vmul.f32 0.17677669, %v3550_v61  ;;  %v4255_v61 = vsel %vm1038_vm0, %v4220_v54, 0 }
 0x7cc   : > { %v3545_v3 = vadd.f32 %v9564_v48, %v3544_v39  ;;  %7499 = vmatpush3.bf16.xpose.msra.mxu1 %v4252_v2  ;;  %v3592_v45 = vmul.f32 0.17677669, %v3542_v42 }
 0x7cd   : > { %v3595_v52 = vmul.f32 0.17677669, %v3553_v36  ;;  %7635 = vmatprep.subr.msk.bf16.mxu1 %vm1038_vm0, %v4220_v54  ;;  %v4221_v36 = vld [vmem:[#allocation2 + $0xd0] sm:$0xff] }
 0x7ce   : > { %v3593_v1 = vmul.f32 0.17677669, %v3545_v3 }
 0x7cf   : > { %v3607_v25 = vpack.c.bf16 %v3595_v52, %v3594_v11 }
 0x7d0   : > { %v3606_v50 = vpack.c.bf16 %v3593_v1, %v3592_v45  ;;  %v7396_v34 = vpop.f32.mrb[136].mxu0 }
 0x7d1   : > { %v3566_v51 = vadd.f32 %v7396_v34, %v9564_v48  ;;  %v3557_v14 = vpop.f32.mrb[137].mxu0 }
 0x7d2   : > { %v3558_v49 = vadd.f32 %v9564_v48, %v3557_v14  ;;  %v7397_v21 = vpop.f32.mrb[138].mxu0  ;;  %7422 = vmatprep.mubr.msk.bf16.mxu1 %vm1038_vm0, %v3606_v50 }
 0x7d3   : > { %v3569_v53 = vadd.f32 %v7397_v21, %v9564_v48  ;;  %v3560_v39 = vpop.f32.mrb[139].mxu0  ;;  %7423 = vmatmul.mubr.msk.bf16.gmra.mrb[100].mxu1 %vm1038_vm0, %v3607_v25  ;;  %v3598_v2 = vmul.f32 0.17677669, %v3566_v51  ;;  %v4258_v51 = vsel %vm1038_vm0, %v4221_v36, 0 }
 0x7d4   : > { %v3561_v42 = vadd.f32 %v9564_v48, %v3560_v39  ;;  %7501 = vmatpush3.bf16.xpose.msra.mxu1 %v4255_v61  ;;  %v3596_v11 = vmul.f32 0.17677669, %v3558_v49 }
 0x7d5   : > { %v3599_v3 = vmul.f32 0.17677669, %v3569_v53  ;;  %7636 = vmatprep.subr.msk.bf16.mxu1 %vm1038_vm0, %v4221_v36  ;;  %v4222_v53 = vld [vmem:[#allocation2 + $0xd8] sm:$0xff]  ;;  %v4223_v36 = vld [vmem:[#allocation2 + $0xe0] sm:$0xff] }
 0x7d6   : > { %v3597_v52 = vmul.f32 0.17677669, %v3561_v42 }
 0x7d7   : > { %v3609_v45 = vpack.c.bf16 %v3599_v3, %v3598_v2 }
 0x7d8   : > { %v3608_v1 = vpack.c.bf16 %v3597_v52, %v3596_v11  ;;  %v7400_v50 = vpop.f32.mrb[140].mxu0 }
 0x7d9   : > { %v3582_v34 = vadd.f32 %v7400_v50, %v9564_v48  ;;  %v3573_v14 = vpop.f32.mrb[141].mxu0 }
 0x7da   : > { %v3574_v25 = vadd.f32 %v9564_v48, %v3573_v14  ;;  %v7401_v21 = vpop.f32.mrb[142].mxu0  ;;  %7426 = vmatprep.mubr.msk.bf16.mxu1 %vm1038_vm0, %v3608_v1  ;;  %v4224_v1 = vld [vmem:[#allocation2 + $0xe8] sm:$0xff] }
 0x7db   : > { %v3585_v54 = vadd.f32 %v7401_v21, %v9564_v48  ;;  %v3576_v39 = vpop.f32.mrb[143].mxu0  ;;  %7427 = vmatmul.mubr.msk.bf16.gmra.mrb[104].mxu1 %vm1038_vm0, %v3609_v45  ;;  %v3602_v61 = vmul.f32 0.17677669, %v3582_v34  ;;  %v4261_v45 = vsel %vm1038_vm0, %v4222_v53, 0  ;;  %v4267_v50 = vsel %vm1038_vm0, %v4224_v1, 0  ;;  %v4225_v34 = vld [vmem:[#allocation2 + $0xf0] sm:$0xff] }
 0x7dc   : > { %v3577_v49 = vadd.f32 %v9564_v48, %v3576_v39  ;;  %7503 = vmatpush3.bf16.xpose.msra.mxu1 %v4258_v51  ;;  %v3600_v2 = vmul.f32 0.17677669, %v3574_v25  ;;  %v4264_v48 = vsel %vm1038_vm0, %v4223_v36, 0  ;;  %v4270_v14 = vsel %vm1038_vm0, %v4225_v34, 0  ;;  %v4226_v25 = vld [vmem:[#allocation2 + $0xf8] sm:$0xff] }
 0x7dd   : > { %v3603_v42 = vmul.f32 0.17677669, %v3585_v54  ;;  %7637 = vmatprep.subr.msk.bf16.mxu1 %vm1038_vm0, %v4222_v53  ;;  %v4273_v21 = vsel %vm1038_vm0, %v4226_v25, 0 }
 0x7de   : > { %v3601_v3 = vmul.f32 0.17677669, %v3577_v49 }
 0x7df   : > { %v3611_v11 = vpack.c.bf16 %v3603_v42, %v3602_v61 }
 0x7e0   : > { %v3610_v52 = vpack.c.bf16 %v3601_v3, %v3600_v2 }
 0x7e2   : > { %7430 = vmatprep.mubr.msk.bf16.mxu1 %vm1038_vm0, %v3610_v52 }
 0x7e3   : > { %7431 = vmatmul.mubr.msk.bf16.gmra.mrb[108].mxu1 %vm1038_vm0, %v3611_v11 }
 0x7e4   : > { %7505 = vmatpush3.bf16.xpose.msra.mxu1 %v4261_v45 }
 0x7e5   : > { %7638 = vmatprep.subr.msk.bf16.mxu1 %vm1038_vm0, %v4223_v36 }
 0x7ec   : > { %7507 = vmatpush3.bf16.xpose.msra.mxu1 %v4264_v48 }
 0x7ed   : > { %7639 = vmatprep.subr.msk.bf16.mxu1 %vm1038_vm0, %v4224_v1 }
 0x7f4   : > { %7509 = vmatpush3.bf16.xpose.msra.mxu1 %v4267_v50 }
 0x7f5   : > { %7640 = vmatprep.subr.msk.bf16.mxu1 %vm1038_vm0, %v4225_v34 }
 0x7fc   : > { %7511 = vmatpush3.bf16.xpose.msra.mxu1 %v4270_v14 }
 0x7fd   : > { %7641 = vmatprep.subr.msk.bf16.mxu1 %vm1038_vm0, %v4226_v25 }
 0x804   : > { %7513 = vmatpush3.bf16.xpose.msra.mxu1 %v4273_v21 }
 0x89e   : > { %v7420_v54 = vpop.f32.mrb[96].mxu1 }
 0x89f   : > { %v3703_v39 = vpop.f32.mrb[97].mxu1 }
 0x8a0   : > { %3766 = vmax.xlane.f32.xlu0 %v3703_v39  ;;  %v7421_v51 = vpop.f32.mrb[98].mxu1 }
 0x8a1   : > { %v3706_v49 = vpop.f32.mrb[99].mxu1 }
 0x8a2   : > { %3768 = vmax.xlane.f32.xlu1 %v3706_v49 }
 0x8a4   : > { %3770 = vmax.xlane.f32.xlu0 %v7420_v54 }
 0x8a6   : > { %3772 = vmax.xlane.f32.xlu1 %v7421_v51  ;;  %v7424_v53 = vpop.f32.mrb[100].mxu1 }
 0x8a7   : > { %v3719_v61 = vpop.f32.mrb[101].mxu1 }
 0x8a8   : > { %3774 = vmax.xlane.f32.xlu0 %v3719_v61  ;;  %v7425_v42 = vpop.f32.mrb[102].mxu1 }
 0x8a9   : > { %v3722_v2 = vpop.f32.mrb[103].mxu1 }
 0x8aa   : > { %3776 = vmax.xlane.f32.xlu1 %v3722_v2 }
 0x8ac   : > { %3778 = vmax.xlane.f32.xlu0 %v7424_v53 }
 0x8ae   : > { %3780 = vmax.xlane.f32.xlu1 %v7425_v42  ;;  %v9606_v3 = vpop.f32.mrb[104].mxu1 }
 0x8af   : > { %v3735_v11 = vpop.f32.mrb[105].mxu1 }
 0x8b0   : > { %3782 = vmax.xlane.f32.xlu0 %v3735_v11  ;;  %v9608_v52 = vpop.f32.mrb[106].mxu1 }
 0x8b1   : > { %v3738_v45 = vpop.f32.mrb[107].mxu1 }
 0x8b2   : > { %3784 = vmax.xlane.f32.xlu1 %v3738_v45 }
 0x8b4   : > { %3786 = vmax.xlane.f32.xlu0 %v9606_v3 }
 0x8b6   : > { %3788 = vmax.xlane.f32.xlu1 %v9608_v52  ;;  %v9612_v36 = vpop.f32.mrb[108].mxu1 }
 0x8b7   : > { %v9614_v48 = vpop.f32.mrb[109].mxu1 }
 0x8b8   : > { %3790 = vmax.xlane.f32.xlu0 %v9614_v48  ;;  %v9617_v1 = vpop.f32.mrb[110].mxu1 }
 0x8b9   : > { %v9619_v50 = vpop.f32.mrb[111].mxu1 }
 0x8ba   : > { %3792 = vmax.xlane.f32.xlu1 %v9619_v50 }
 0x8bc   : > { %3794 = vmax.xlane.f32.xlu0 %v9612_v36 }
 0x8be   : > { %3796 = vmax.xlane.f32.xlu1 %v9617_v1 }
 0x92d   : > { %v3767_v34 = vpop.xlane.xlu0 %3766 }
 0x92e   : > { %v3798_v14 = vsub.f32 %v3703_v39, %v3767_v34 }
 0x92f   : > { %v3769_v25 = vpop.xlane.xlu1 %3768 }
 0x930   : > { %v3814_v21 = vmul.f32 1.442695, %v3798_v14  ;;  %v3799_v58 = vsub.f32 %v3706_v49, %v3769_v25 }
 0x931   : > { %v3771_v40 = vpop.xlane.xlu0 %3770 }
 0x932   : > { %8103 = vpow2.f32 %v3814_v21  ;;  %v3816_v5 = vmul.f32 1.442695, %v3799_v58  ;;  %v3800_v55 = vsub.f32 %v7420_v54, %v3771_v40 }
 0x933   : > { %v3773_v19 = vpop.xlane.xlu1 %3772 }
 0x934   : > { %8105 = vpow2.f32 %v3816_v5  ;;  %v3818_v32 = vmul.f32 1.442695, %v3800_v55  ;;  %v3801_v4 = vsub.f32 %v7421_v51, %v3773_v19 }
 0x935   : > { %v3775_v31 = vpop.xlane.xlu0 %3774 }
 0x936   : > { %8107 = vpow2.f32 %v3818_v32  ;;  %v3820_v24 = vmul.f32 1.442695, %v3801_v4  ;;  %v3802_v29 = vsub.f32 %v3719_v61, %v3775_v31 }
 0x937   : > { %v3777_v10 = vpop.xlane.xlu1 %3776 }
 0x938   : > { %8109 = vpow2.f32 %v3820_v24  ;;  %v3822_v26 = vmul.f32 1.442695, %v3802_v29  ;;  %v3803_v17 = vsub.f32 %v3722_v2, %v3777_v10 }
 0x939   : > { %v3779_v39 = vpop.xlane.xlu0 %3778 }
 0x93a   : > { %8111 = vpow2.f32 %v3822_v26  ;;  %v3824_v34 = vmul.f32 1.442695, %v3803_v17  ;;  %v3804_v49 = vsub.f32 %v7424_v53, %v3779_v39 }
 0x93b   : > { %v3781_v14 = vpop.xlane.xlu1 %3780 }
 0x93c   : > { %v9624_v25 = vpop.eup %8103  ;;  %8113 = vpow2.f32 %v3824_v34  ;;  %v3826_v40 = vmul.f32 1.442695, %v3804_v49  ;;  %v3805_v5 = vsub.f32 %v7425_v42, %v3781_v14 }
 0x93d   : > { %v3783_v55 = vpop.xlane.xlu0 %3782  ;;  %3846 = vadd.xlane.f32.xlu0 %v9624_v25 }
 0x93e   : > { %v9627_v19 = vpop.eup %8105  ;;  %8115 = vpow2.f32 %v3826_v40  ;;  %v3828_v4 = vmul.f32 1.442695, %v3805_v5  ;;  %v3806_v24 = vsub.f32 %v3735_v11, %v3783_v55 }
 0x93f   : > { %v3785_v29 = vpop.xlane.xlu1 %3784  ;;  %3848 = vadd.xlane.f32.xlu1 %v9627_v19 }
 0x940   : > { %v9630_v10 = vpop.eup %8107  ;;  %8117 = vpow2.f32 %v3828_v4  ;;  %v3830_v17 = vmul.f32 1.442695, %v3806_v24  ;;  %v3807_v26 = vsub.f32 %v3738_v45, %v3785_v29 }
 0x941   : > { %v3787_v31 = vpop.xlane.xlu0 %3786  ;;  %3850 = vadd.xlane.f32.xlu0 %v9630_v10 }
 0x942   : > { %v9633_v32 = vpop.eup %8109  ;;  %8119 = vpow2.f32 %v3830_v17  ;;  %v3832_v58 = vmul.f32 1.442695, %v3807_v26  ;;  %v3808_v54 = vsub.f32 %v9606_v3, %v3787_v31 }
 0x943   : > { %v3789_v51 = vpop.xlane.xlu1 %3788  ;;  %3852 = vadd.xlane.f32.xlu1 %v9633_v32 }
 0x944   : > { %v9637_v53 = vpop.eup %8111  ;;  %8121 = vpow2.f32 %v3832_v58  ;;  %v3834_v61 = vmul.f32 1.442695, %v3808_v54  ;;  %v3809_v42 = vsub.f32 %v9608_v52, %v3789_v51  ;;  %v7919_v54 = vld [vmem:[%s10828_s21 + $0xc0] sm:$0xff]  }
 0x945   : > { %3854 = vadd.xlane.f32.xlu0 %v9637_v53  ;;  %v3791_v2 = vpop.xlane.xlu0 %3790  ;;  %7466 = vmatprep.subr.bf16.mxu0 %v7919_v54 }
 0x946   : > { %v9641_v11 = vpop.eup %8113  ;;  %8123 = vpow2.f32 %v3834_v61  ;;  %v3836_v45 = vmul.f32 1.442695, %v3809_v42  ;;  %v3810_v21 = vsub.f32 %v9614_v48, %v3791_v2 }
 0x947   : > { %3856 = vadd.xlane.f32.xlu1 %v9641_v11  ;;  %v3793_v3 = vpop.xlane.xlu1 %3792 }
 0x948   : > { %v9645_v39 = vpop.eup %8115  ;;  %8125 = vpow2.f32 %v3836_v45  ;;  %v3838_v34 = vmul.f32 1.442695, %v3810_v21  ;;  %v3811_v49 = vsub.f32 %v9619_v50, %v3793_v3 }
 0x949   : > { %3858 = vadd.xlane.f32.xlu0 %v9645_v39  ;;  %v3795_v52 = vpop.xlane.xlu0 %3794 }
 0x94a   : > { %v9649_v14 = vpop.eup %8117  ;;  %8127 = vpow2.f32 %v3838_v34  ;;  %v3840_v40 = vmul.f32 1.442695, %v3811_v49  ;;  %v3812_v5 = vsub.f32 %v9612_v36, %v3795_v52 }
 0x94b   : > { %3860 = vadd.xlane.f32.xlu1 %v9649_v14  ;;  %v3797_v48 = vpop.xlane.xlu1 %3796 }
 0x94c   : > { %v9653_v55 = vpop.eup %8119  ;;  %8129 = vpow2.f32 %v3840_v40  ;;  %v3842_v4 = vmul.f32 1.442695, %v3812_v5  ;;  %v3813_v24 = vsub.f32 %v9617_v1, %v3797_v48 }
 0x94d   : > { %3862 = vadd.xlane.f32.xlu0 %v9653_v55 }
 0x94e   : > { %v9657_v50 = vpop.eup %8121  ;;  %8131 = vpow2.f32 %v3842_v4  ;;  %v3844_v29 = vmul.f32 1.442695, %v3813_v24 }
 0x94f   : > { %3864 = vadd.xlane.f32.xlu1 %v9657_v50 }
 0x950   : > { %v9660_v17 = vpop.eup %8123  ;;  %8133 = vpow2.f32 %v3844_v29 }
 0x951   : > { %3866 = vadd.xlane.f32.xlu0 %v9660_v17 }
 0x952   : > { %v9663_v36 = vpop.eup %8125 }
 0x953   : > { %3868 = vadd.xlane.f32.xlu1 %v9663_v36 }
 0x954   : > { %v9666_v26 = vpop.eup %8127 }
 0x955   : > { %3870 = vadd.xlane.f32.xlu0 %v9666_v26 }
 0x956   : > { %v9669_v1 = vpop.eup %8129 }
 0x957   : > { %3872 = vadd.xlane.f32.xlu1 %v9669_v1 }
 0x958   : > { %v9672_v31 = vpop.eup %8131 }
 0x959   : > { %3874 = vadd.xlane.f32.xlu0 %v9672_v31 }
 0x95a   : > { %v9675_v58 = vpop.eup %8133 }
 0x95b   : > { %3876 = vadd.xlane.f32.xlu1 %v9675_v58 }
 0x9ca   : > { %v3847_v51 = vpop.xlane.xlu0 %3846 }
 0x9cb   : > { %8135 = vrcp.f32 %v3847_v51 }
 0x9cc   : > { %v3849_v61 = vpop.xlane.xlu1 %3848 }
 0x9cd   : > { %8137 = vrcp.f32 %v3849_v61 }
 0x9ce   : > { %v3851_v42 = vpop.xlane.xlu0 %3850 }
 0x9cf   : > { %8139 = vrcp.f32 %v3851_v42 }
 0x9d0   : > { %v3853_v2 = vpop.xlane.xlu1 %3852 }
 0x9d1   : > { %8141 = vrcp.f32 %v3853_v2 }
 0x9d2   : > { %v3855_v45 = vpop.xlane.xlu0 %3854 }
 0x9d3   : > { %8143 = vrcp.f32 %v3855_v45 }
 0x9d4   : > { %v3857_v21 = vpop.xlane.xlu1 %3856 }
 0x9d5   : > { %v8136_v3 = vpop.eup %8135  ;;  %8145 = vrcp.f32 %v3857_v21 }
 0x9d6   : > { %v3859_v34 = vpop.xlane.xlu0 %3858  ;;  %v3894_v40 = vmul.f32 %v8136_v3, %v9624_v25  ;;  %v7920_v25 = vld [vmem:[%s10828_s21 + $0xc8] sm:$0xff]  }
 0x9d7   : > { %v8138_v49 = vpop.eup %8137  ;;  %8147 = vrcp.f32 %v3859_v34 }
 0x9d8   : > { %v3861_v52 = vpop.xlane.xlu1 %3860  ;;  %v3895_v5 = vmul.f32 %v8138_v49, %v9627_v19 }
 0x9d9   : > { %v8140_v48 = vpop.eup %8139  ;;  %8149 = vrcp.f32 %v3861_v52 }
 0x9da   : > { %v3863_v4 = vpop.xlane.xlu0 %3862  ;;  %v3910_v24 = vpack.c.bf16 %v3895_v5, %v3894_v40  ;;  %v3896_v51 = vmul.f32 %v8140_v48, %v9630_v10  ;;  %v7921_v40 = vld [vmem:[%s10828_s21 + $0xd0] sm:$0xff]  }
 0x9db   : > { %v8142_v29 = vpop.eup %8141  ;;  %8151 = vrcp.f32 %v3863_v4 }
 0x9dc   : > { %v3897_v61 = vmul.f32 %v8142_v29, %v9633_v32  ;;  %7450 = vmatprep.mubr.bf16.mxu0 %v3910_v24  ;;  %v3865_v42 = vpop.xlane.xlu1 %3864  ;;  %v7922_v29 = vld [vmem:[%s10828_s21 + $0xd8] sm:$0xff]  }
 0x9dd   : > { %v8144_v2 = vpop.eup %8143  ;;  %8153 = vrcp.f32 %v3865_v42 }
 0x9de   : > { %v3867_v45 = vpop.xlane.xlu0 %3866  ;;  %v3911_v21 = vpack.c.bf16 %v3897_v61, %v3896_v51  ;;  %v3898_v34 = vmul.f32 %v8144_v2, %v9637_v53 }
 0x9df   : > { %v8146_v19 = vpop.eup %8145  ;;  %8155 = vrcp.f32 %v3867_v45  ;;  %v7923_v45 = vld [vmem:[%s10828_s21 + $0xe0] sm:$0xff]  }
 0x9e0   : > { %7451 = vmatmul.mubr.bf16.vlgmr.msra.gmra.mrb[144].mxu0 %v3911_v21  ;;  %v3869_v3 = vpop.xlane.xlu1 %3868  ;;  %v3899_v10 = vmul.f32 %v8146_v19, %v9641_v11 }
 0x9e1   : > { %v8148_v49 = vpop.eup %8147  ;;  %7467 = vmatpush3.bf16.msra.mxu0 %v7919_v54  ;;  %8157 = vrcp.f32 %v3869_v3 }
 0x9e2   : > { %v3871_v32 = vpop.xlane.xlu0 %3870  ;;  %7468 = vmatprep.subr.bf16.mxu0 %v7920_v25  ;;  %v3912_v52 = vpack.c.bf16 %v3899_v10, %v3898_v34  ;;  %v3900_v4 = vmul.f32 %v8148_v49, %v9645_v39 }
 0x9e3   : > { %v8150_v5 = vpop.eup %8149  ;;  %8159 = vrcp.f32 %v3871_v32 }
 0x9e4   : > { %7454 = vmatprep.mubr.bf16.mxu0 %v3912_v52  ;;  %v3873_v48 = vpop.xlane.xlu1 %3872  ;;  %v3901_v53 = vmul.f32 %v8150_v5, %v9649_v14 }
 0x9e5   : > { %v8152_v24 = vpop.eup %8151  ;;  %7469 = vmatpush3.bf16.msra.mxu0 %v7920_v25  ;;  %8161 = vrcp.f32 %v3873_v48 }
 0x9e6   : > { %v3875_v11 = vpop.xlane.xlu0 %3874  ;;  %7470 = vmatprep.subr.bf16.mxu0 %v7921_v40  ;;  %v3913_v54 = vpack.c.bf16 %v3901_v53, %v3900_v4  ;;  %v3902_v42 = vmul.f32 %v8152_v24, %v9653_v55  ;;  %v4528_v4 = vld [vmem:[#allocation3 + $0xd8] sm:$0xff] }
 0x9e7   : > { %v8154_v51 = vpop.eup %8153  ;;  %8163 = vrcp.f32 %v3875_v11 }
 0x9e8   : > { %7455 = vmatmul.mubr.bf16.gmra.mrb[148].mxu0 %v3913_v54  ;;  %v3877_v61 = vpop.xlane.xlu1 %3876  ;;  %v3903_v39 = vmul.f32 %v8154_v51, %v9657_v50  ;;  %v7924_v50 = vld [vmem:[%s10828_s21 + $0xe8] sm:$0xff]  }
 0x9e9   : > { %v8156_v2 = vpop.eup %8155  ;;  %7471 = vmatpush3.bf16.msra.mxu0 %v7921_v40  ;;  %8165 = vrcp.f32 %v3877_v61 }
 0x9ea   : > { %7472 = vmatprep.subr.bf16.mxu0 %v7922_v29  ;;  %v3914_v14 = vpack.c.bf16 %v3903_v39, %v3902_v42  ;;  %v3904_v25 = vmul.f32 %v8156_v2, %v9660_v17 }
 0x9eb   : > { %v8158_v21 = vpop.eup %8157 }
 0x9ec   : > { %7458 = vmatprep.mubr.bf16.mxu0 %v3914_v14  ;;  %v3905_v19 = vmul.f32 %v8158_v21, %v9663_v36  ;;  %v7925_v36 = vld [vmem:[%s10828_s21 + $0xf0] sm:$0xff]  }
 0x9ed   : > { %v8160_v3 = vpop.eup %8159  ;;  %7473 = vmatpush3.bf16.msra.mxu0 %v7922_v29 }
 0x9ee   : > { %7474 = vmatprep.subr.bf16.mxu0 %v7923_v45  ;;  %v3915_v55 = vpack.c.bf16 %v3905_v19, %v3904_v25  ;;  %v3906_v10 = vmul.f32 %v8160_v3, %v9666_v26  ;;  %v7926_v26 = vld [vmem:[%s10828_s21 + $0xf8] sm:$0xff]  }
 0x9ef   : > { %v8162_v34 = vpop.eup %8161 }
 0x9f0   : > { %7459 = vmatmul.mubr.bf16.gmra.mrb[152].mxu0 %v3915_v55  ;;  %v3907_v49 = vmul.f32 %v8162_v34, %v9669_v1  ;;  %v4525_v1 = vld [vmem:[#allocation3 + $0xc0] sm:$0xff] }
 0x9f1   : > { %v8164_v32 = vpop.eup %8163  ;;  %7475 = vmatpush3.bf16.msra.mxu0 %v7923_v45 }
 0x9f2   : > { %7476 = vmatprep.subr.bf16.mxu0 %v7924_v50  ;;  %v3916_v17 = vpack.c.bf16 %v3907_v49, %v3906_v10  ;;  %v3908_v40 = vmul.f32 %v8164_v32, %v9672_v31  ;;  %v4526_v31 = vld [vmem:[#allocation3 + $0xc8] sm:$0xff]  ;;  %v6451_v49 = vld [vmem:[%s10791_s3 + $0x3] ss:$0 sm:$0xff] }
 0x9f3   : > { %v8166_v52 = vpop.eup %8165 }
 0x9f4   : > { %7462 = vmatprep.mubr.bf16.mxu0 %v3916_v17  ;;  %v3909_v5 = vmul.f32 %v8166_v52, %v9675_v58  ;;  %v4527_v58 = vld [vmem:[#allocation3 + $0xd0] sm:$0xff] }
 0x9f5   : > { %7477 = vmatpush3.bf16.msra.mxu0 %v7924_v50 }
 0x9f6   : > { %7478 = vmatprep.subr.bf16.mxu0 %v7925_v36  ;;  %v3917_v48 = vpack.c.bf16 %v3909_v5, %v3908_v40 }
 0x9f8   : > { %7463 = vmatmul.mubr.bf16.gmra.mrb[156].mxu0 %v3917_v48 }
 0x9f9   : > { %7479 = vmatpush3.bf16.msra.mxu0 %v7925_v36  ;;  %7482 = vmatprep.mubr.bf16.mxu0 %v8847_v18  ;;  %v4529_v18 = vld [vmem:[#allocation3 + $0xe0] sm:$0xff] }
 0x9fa   : > { %7480 = vmatprep.subr.bf16.mxu0 %v7926_v26 }
 0x9fd   : > { %7481 = vmatpush3.bf16.msra.mxu0 %v7926_v26 }
 0x9fe   : > { %7530 = vmatprep.subr.bf16.mxu0 %v4525_v1 }
 0xa00   : > { %7483 = vmatmul.mubr.bf16.vlgmr.msra.gmra.mrb[160].mxu0 %v8863_v28  ;;  %v4530_v28 = vld [vmem:[#allocation3 + $0xe8] sm:$0xff] }
 0xa01   : > { %7531 = vmatpush3.bf16.msra.mxu0 %v4525_v1  ;;  %7486 = vmatprep.mubr.bf16.mxu0 %v8868_v30  ;;  %v4531_v30 = vld [vmem:[#allocation3 + $0xf0] sm:$0xff] }
 0xa02   : > { %7532 = vmatprep.subr.bf16.mxu0 %v4526_v31 }
 0xa05   : > { %7533 = vmatpush3.bf16.msra.mxu0 %v4526_v31 }
 0xa06   : > { %7534 = vmatprep.subr.bf16.mxu0 %v4527_v58 }
 0xa08   : > { %7487 = vmatmul.mubr.bf16.gmra.mrb[164].mxu0 %v8881_v37  ;;  %v4532_v37 = vld [vmem:[#allocation3 + $0xf8] sm:$0xff] }
 0xa09   : > { %7535 = vmatpush3.bf16.msra.mxu0 %v4527_v58  ;;  %7490 = vmatprep.mubr.bf16.mxu0 %v8883_v38 }
 0xa0a   : > { %7536 = vmatprep.subr.bf16.mxu0 %v4528_v4 }
 0xa0d   : > { %7537 = vmatpush3.bf16.msra.mxu0 %v4528_v4 }
 0xa0e   : > { %7538 = vmatprep.subr.bf16.mxu0 %v4529_v18 }
 0xa10   : > { %7491 = vmatmul.mubr.bf16.gmra.mrb[168].mxu0 %v8893_v43 }
 0xa11   : > { %7539 = vmatpush3.bf16.msra.mxu0 %v4529_v18  ;;  %7494 = vmatprep.mubr.bf16.mxu0 %v8895_v44 }
 0xa12   : > { %7540 = vmatprep.subr.bf16.mxu0 %v4530_v28 }
 0xa15   : > { %7541 = vmatpush3.bf16.msra.mxu0 %v4530_v28 }
 0xa16   : > { %7542 = vmatprep.subr.bf16.mxu0 %v4531_v30 }
 0xa18   : > { %7495 = vmatmul.mubr.bf16.gmra.mrb[172].mxu0 %v8903_v47 }
 0xa19   : > { %7543 = vmatpush3.bf16.msra.mxu0 %v4531_v30 }
 0xa1a   : > { %7544 = vmatprep.subr.bf16.mxu0 %v4532_v37 }
 0xa1d   : > { %7545 = vmatpush3.bf16.msra.mxu0 %v4532_v37 }
 0xab3   : > { %v9726_v38 = vpop.f32.mrb[144].mxu0 }
 0xab4   : > { %v9728_v53 = vpop.f32.mrb[145].mxu0 }
 0xab5   : > { %v9730_v24 = vpop.f32.mrb[146].mxu0 }
 0xab6   : > { %v9734_v44 = vpop.f32.mrb[147].mxu0 }
 0xabb   : > { %v9738_v54 = vpop.f32.mrb[148].mxu0 }
 0xabc   : > { %v9740_v47 = vpop.f32.mrb[149].mxu0 }
 0xabd   : > { %v9742_v29 = vpop.f32.mrb[150].mxu0 }
 0xabe   : > { %v9746_v61 = vpop.f32.mrb[151].mxu0 }
 0xac3   : > { %v9750_v39 = vpop.f32.mrb[152].mxu0 }
 0xac4   : > { %v9752_v2 = vpop.f32.mrb[153].mxu0 }
 0xac5   : > { %v9754_v14 = vpop.f32.mrb[154].mxu0 }
 0xac6   : > { %v9758_v21 = vpop.f32.mrb[155].mxu0 }
 0xacb   : > { %v9762_v19 = vpop.f32.mrb[156].mxu0 }
 0xacc   : > { %v9764_v3 = vpop.f32.mrb[157].mxu0 }
 0xacd   : > { %10846 = vst [vmem:[#allocation29_spill] sm:$0xff] %v9764_v3  ;;  %v9766_v55 = vpop.f32.mrb[158].mxu0 }
 0xace   : > { %v9770_v34 = vpop.f32.mrb[159].mxu0 }
 0xad3   : > { %v7484_v32 = vpop.f32.mrb[160].mxu0 }
 0xad4   : > { %v4140_v17 = vadd.f32 %v7484_v32, %v6451_v49  ;;  %v4131_v36 = vpop.f32.mrb[161].mxu0 }
 0xad5   : > { %v4132_v52 = vadd.f32 %v6451_v49, %v4131_v36  ;;  %v7485_v40 = vpop.f32.mrb[162].mxu0 }
 0xad6   : > { %v4143_v5 = vadd.f32 %v7485_v40, %v6451_v49  ;;  %v4134_v48 = vpop.f32.mrb[163].mxu0  ;;  %v4196_v1 = vmul.f32 0.17677669, %v4140_v17 }
 0xad7   : > { %v4135_v26 = vadd.f32 %v6451_v49, %v4134_v48  ;;  %v4194_v58 = vmul.f32 0.17677669, %v4132_v52 }
 0xad8   : > { %v4197_v31 = vmul.f32 0.17677669, %v4143_v5 }
 0xad9   : > { %v4195_v4 = vmul.f32 0.17677669, %v4135_v26 }
 0xada   : > { %v4211_v18 = vpack.c.bf16 %v4197_v31, %v4196_v1 }
 0xadb   : > { %v4210_v28 = vpack.c.bf16 %v4195_v4, %v4194_v58  ;;  %v7488_v30 = vpop.f32.mrb[164].mxu0 }
 0xadc   : > { %v4156_v37 = vadd.f32 %v7488_v30, %v6451_v49  ;;  %v4147_v10 = vpop.f32.mrb[165].mxu0 }
 0xadd   : > { %v4148_v50 = vadd.f32 %v6451_v49, %v4147_v10  ;;  %v7489_v25 = vpop.f32.mrb[166].mxu0  ;;  %7514 = vmatprep.mubr.msk.bf16.mxu1 %vm1038_vm0, %v4210_v28 }
 0xade   : > { %v4200_v32 = vmul.f32 0.17677669, %v4156_v37  ;;  %v4159_v45 = vadd.f32 %v7489_v25, %v6451_v49  ;;  %v4150_v36 = vpop.f32.mrb[167].mxu0  ;;  %7515 = vmatmul.mubr.msk.bf16.vlgmr.msra.gmra.mrb[112].mxu1 %vm1038_vm0, %v4211_v18 }
 0xadf   : > { %v4198_v40 = vmul.f32 0.17677669, %v4148_v50  ;;  %v4151_v48 = vadd.f32 %v6451_v49, %v4150_v36 }
 0xae0   : > { %v4201_v17 = vmul.f32 0.17677669, %v4159_v45 }
 0xae1   : > { %v4199_v5 = vmul.f32 0.17677669, %v4151_v48 }
 0xae2   : > { %v4213_v52 = vpack.c.bf16 %v4201_v17, %v4200_v32 }
 0xae3   : > { %v4212_v26 = vpack.c.bf16 %v4199_v5, %v4198_v40  ;;  %v7492_v1 = vpop.f32.mrb[168].mxu0 }
 0xae4   : > { %v4172_v31 = vadd.f32 %v7492_v1, %v6451_v49  ;;  %v4163_v58 = vpop.f32.mrb[169].mxu0 }
 0xae5   : > { %v4164_v4 = vadd.f32 %v6451_v49, %v4163_v58  ;;  %v7493_v30 = vpop.f32.mrb[170].mxu0  ;;  %7518 = vmatprep.mubr.msk.bf16.mxu1 %vm1038_vm0, %v4212_v26 }
 0xae6   : > { %v4204_v10 = vmul.f32 0.17677669, %v4172_v31  ;;  %v4175_v28 = vadd.f32 %v7493_v30, %v6451_v49  ;;  %v4166_v37 = vpop.f32.mrb[171].mxu0  ;;  %7519 = vmatmul.mubr.msk.bf16.gmra.mrb[116].mxu1 %vm1038_vm0, %v4213_v52 }
 0xae7   : > { %v4202_v25 = vmul.f32 0.17677669, %v4164_v4  ;;  %v4167_v18 = vadd.f32 %v6451_v49, %v4166_v37 }
 0xae8   : > { %v4205_v50 = vmul.f32 0.17677669, %v4175_v28 }
 0xae9   : > { %v4203_v36 = vmul.f32 0.17677669, %v4167_v18 }
 0xaea   : > { %v4215_v45 = vpack.c.bf16 %v4205_v50, %v4204_v10 }
 0xaeb   : > { %v4214_v48 = vpack.c.bf16 %v4203_v36, %v4202_v25  ;;  %v7496_v32 = vpop.f32.mrb[172].mxu0 }
 0xaec   : > { %v4188_v40 = vadd.f32 %v7496_v32, %v6451_v49  ;;  %v4179_v17 = vpop.f32.mrb[173].mxu0 }
 0xaed   : > { %v4180_v5 = vadd.f32 %v6451_v49, %v4179_v17  ;;  %v7497_v1 = vpop.f32.mrb[174].mxu0  ;;  %7522 = vmatprep.mubr.msk.bf16.mxu1 %vm1038_vm0, %v4214_v48 }
 0xaee   : > { %v4208_v58 = vmul.f32 0.17677669, %v4188_v40  ;;  %v4191_v26 = vadd.f32 %v7497_v1, %v6451_v49  ;;  %v4182_v31 = vpop.f32.mrb[175].mxu0  ;;  %7523 = vmatmul.mubr.msk.bf16.gmra.mrb[120].mxu1 %vm1038_vm0, %v4215_v45 }
 0xaef   : > { %v4206_v30 = vmul.f32 0.17677669, %v4180_v5  ;;  %v4183_v52 = vadd.f32 %v6451_v49, %v4182_v31 }
 0xaf0   : > { %v4209_v4 = vmul.f32 0.17677669, %v4191_v26 }
 0xaf1   : > { %v4207_v37 = vmul.f32 0.17677669, %v4183_v52 }
 0xaf2   : > { %v4217_v28 = vpack.c.bf16 %v4209_v4, %v4208_v58 }
 0xaf3   : > { %v4216_v18 = vpack.c.bf16 %v4207_v37, %v4206_v30 }
 0xaf5   : > { %7526 = vmatprep.mubr.msk.bf16.mxu1 %vm1038_vm0, %v4216_v18 }
 0xaf6   : > { %7527 = vmatmul.mubr.msk.bf16.gmra.mrb[124].mxu1 %vm1038_vm0, %v4217_v28 }
 0xbb1   : > { %v7516_v10 = vpop.f32.mrb[112].mxu1 }
 0xbb2   : > { %v4309_v25 = vpop.f32.mrb[113].mxu1 }
 0xbb3   : > { %4372 = vmax.xlane.f32.xlu0 %v4309_v25  ;;  %v7517_v50 = vpop.f32.mrb[114].mxu1 }
 0xbb4   : > { %v4312_v36 = vpop.f32.mrb[115].mxu1 }
 0xbb5   : > { %4374 = vmax.xlane.f32.xlu1 %v4312_v36 }
 0xbb7   : > { %4376 = vmax.xlane.f32.xlu0 %v7516_v10 }
 0xbb9   : > { %4378 = vmax.xlane.f32.xlu1 %v7517_v50  ;;  %v7520_v48 = vpop.f32.mrb[116].mxu1 }
 0xbba   : > { %v4325_v45 = vpop.f32.mrb[117].mxu1 }
 0xbbb   : > { %4380 = vmax.xlane.f32.xlu0 %v4325_v45  ;;  %v7521_v49 = vpop.f32.mrb[118].mxu1 }
 0xbbc   : > { %v4328_v32 = vpop.f32.mrb[119].mxu1 }
 0xbbd   : > { %4382 = vmax.xlane.f32.xlu1 %v4328_v32 }
 0xbbf   : > { %4384 = vmax.xlane.f32.xlu0 %v7520_v48 }
 0xbc1   : > { %4386 = vmax.xlane.f32.xlu1 %v7521_v49  ;;  %v9785_v40 = vpop.f32.mrb[120].mxu1 }
 0xbc2   : > { %v4341_v17 = vpop.f32.mrb[121].mxu1 }
 0xbc3   : > { %4388 = vmax.xlane.f32.xlu0 %v4341_v17  ;;  %v9787_v5 = vpop.f32.mrb[122].mxu1 }
 0xbc4   : > { %v4344_v1 = vpop.f32.mrb[123].mxu1 }
 0xbc5   : > { %4390 = vmax.xlane.f32.xlu1 %v4344_v1 }
 0xbc7   : > { %4392 = vmax.xlane.f32.xlu0 %v9785_v40 }
 0xbc9   : > { %4394 = vmax.xlane.f32.xlu1 %v9787_v5  ;;  %v9791_v58 = vpop.f32.mrb[124].mxu1 }
 0xbca   : > { %v9793_v26 = vpop.f32.mrb[125].mxu1 }
 0xbcb   : > { %4396 = vmax.xlane.f32.xlu0 %v9793_v26  ;;  %v9796_v31 = vpop.f32.mrb[126].mxu1 }
 0xbcc   : > { %v9798_v30 = vpop.f32.mrb[127].mxu1 }
 0xbcd   : > { %4398 = vmax.xlane.f32.xlu1 %v9798_v30 }
 0xbcf   : > { %4400 = vmax.xlane.f32.xlu0 %v9791_v58 }
 0xbd1   : > { %4402 = vmax.xlane.f32.xlu1 %v9796_v31 }
 0xc40   : > { %v4373_v52 = vpop.xlane.xlu0 %4372 }
 0xc41   : > { %v4404_v4 = vsub.f32 %v4309_v25, %v4373_v52 }
 0xc42   : > { %v4375_v37 = vpop.xlane.xlu1 %4374 }
 0xc43   : > { %v4420_v28 = vmul.f32 1.442695, %v4404_v4  ;;  %v4405_v18 = vsub.f32 %v4312_v36, %v4375_v37 }
 0xc44   : > { %v4377_v42 = vpop.xlane.xlu0 %4376 }
 0xc45   : > { %8167 = vpow2.f32 %v4420_v28  ;;  %v4422_v51 = vmul.f32 1.442695, %v4405_v18  ;;  %v4406_v43 = vsub.f32 %v7516_v10, %v4377_v42 }
 0xc46   : > { %v4379_v11 = vpop.xlane.xlu1 %4378 }
 0xc47   : > { %8169 = vpow2.f32 %v4422_v51  ;;  %v4424_v7 = vmul.f32 1.442695, %v4406_v43  ;;  %v4407_v13 = vsub.f32 %v7517_v50, %v4379_v11 }
 0xc48   : > { %v4381_v0 = vpop.xlane.xlu0 %4380 }
 0xc49   : > { %8171 = vpow2.f32 %v4424_v7  ;;  %v4426_v6 = vmul.f32 1.442695, %v4407_v13  ;;  %v4408_v9 = vsub.f32 %v4325_v45, %v4381_v0 }
 0xc4a   : > { %v4383_v8 = vpop.xlane.xlu1 %4382 }
 0xc4b   : > { %8173 = vpow2.f32 %v4426_v6  ;;  %v4428_v12 = vmul.f32 1.442695, %v4408_v9  ;;  %v4409_v3 = vsub.f32 %v4328_v32, %v4383_v8 }
 0xc4c   : > { %v4385_v25 = vpop.xlane.xlu0 %4384 }
 0xc4d   : > { %8175 = vpow2.f32 %v4428_v12  ;;  %v4430_v52 = vmul.f32 1.442695, %v4409_v3  ;;  %v4410_v36 = vsub.f32 %v7520_v48, %v4385_v25 }
 0xc4e   : > { %v4387_v4 = vpop.xlane.xlu1 %4386 }
 0xc4f   : > { %v9803_v37 = vpop.eup %8167  ;;  %8177 = vpow2.f32 %v4430_v52  ;;  %v4432_v42 = vmul.f32 1.442695, %v4410_v36  ;;  %v4411_v51 = vsub.f32 %v7521_v49, %v4387_v4 }
 0xc50   : > { %v4389_v43 = vpop.xlane.xlu0 %4388  ;;  %4452 = vadd.xlane.f32.xlu0 %v9803_v37 }
 0xc51   : > { %v9806_v7 = vpop.eup %8169  ;;  %8179 = vpow2.f32 %v4432_v42  ;;  %v4434_v13 = vmul.f32 1.442695, %v4411_v51  ;;  %v4412_v6 = vsub.f32 %v4341_v17, %v4389_v43 }
 0xc52   : > { %v4391_v9 = vpop.xlane.xlu1 %4390  ;;  %4454 = vadd.xlane.f32.xlu1 %v9806_v7 }
 0xc53   : > { %v9809_v8 = vpop.eup %8171  ;;  %8181 = vpow2.f32 %v4434_v13  ;;  %v4436_v12 = vmul.f32 1.442695, %v4412_v6  ;;  %v4413_v0 = vsub.f32 %v4344_v1, %v4391_v9 }
 0xc54   : > { %v4393_v11 = vpop.xlane.xlu0 %4392  ;;  %4456 = vadd.xlane.f32.xlu0 %v9809_v8 }
 0xc55   : > { %v9812_v3 = vpop.eup %8173  ;;  %8183 = vpow2.f32 %v4436_v12  ;;  %v4438_v10 = vmul.f32 1.442695, %v4413_v0  ;;  %v4414_v50 = vsub.f32 %v9785_v40, %v4393_v11 }
 0xc56   : > { %v4395_v48 = vpop.xlane.xlu1 %4394  ;;  %4458 = vadd.xlane.f32.xlu1 %v9812_v3 }
 0xc57   : > { %v9816_v45 = vpop.eup %8175  ;;  %8185 = vpow2.f32 %v4438_v10  ;;  %v4440_v49 = vmul.f32 1.442695, %v4414_v50  ;;  %v4415_v32 = vsub.f32 %v9787_v5, %v4395_v48  ;;  %v10847_v50 = vpack.i.bf16 %v9517_v20, %v9513_v22 }
 0xc58   : > { %4460 = vadd.xlane.f32.xlu0 %v9816_v45  ;;  %v4397_v17 = vpop.xlane.xlu0 %4396  ;;  %v10848_v48 = vpack.i.bf16 %v9521_v63, %v9515_v27 }
 0xc59   : > { %v9820_v1 = vpop.eup %8177  ;;  %8187 = vpow2.f32 %v4440_v49  ;;  %v4442_v28 = vmul.f32 1.442695, %v4415_v32  ;;  %v4416_v18 = vsub.f32 %v9793_v26, %v4397_v17  ;;  %v10849_v49 = vpack.i.bf16 %v9734_v44, %v9728_v53 }
 0xc5a   : > { %4462 = vadd.xlane.f32.xlu1 %v9820_v1  ;;  %v4399_v40 = vpop.xlane.xlu1 %4398  ;;  %v10850_v32 = vpack.i.bf16 %v9730_v24, %v9726_v38 }
 0xc5b   : > { %v9824_v25 = vpop.eup %8179  ;;  %8189 = vpow2.f32 %v4442_v28  ;;  %v4444_v52 = vmul.f32 1.442695, %v4416_v18  ;;  %v4417_v36 = vsub.f32 %v9798_v30, %v4399_v40 }
 0xc5c   : > { %4464 = vadd.xlane.f32.xlu0 %v9824_v25  ;;  %v4401_v5 = vpop.xlane.xlu0 %4400 }
 0xc5d   : > { %v9828_v4 = vpop.eup %8181  ;;  %8191 = vpow2.f32 %v4444_v52  ;;  %v4446_v42 = vmul.f32 1.442695, %v4417_v36  ;;  %v4418_v51 = vsub.f32 %v9791_v58, %v4401_v5 }
 0xc5e   : > { %4466 = vadd.xlane.f32.xlu1 %v9828_v4  ;;  %v4403_v26 = vpop.xlane.xlu1 %4402 }
 0xc5f   : > { %v9832_v43 = vpop.eup %8183  ;;  %8193 = vpow2.f32 %v4446_v42  ;;  %v4448_v13 = vmul.f32 1.442695, %v4418_v51  ;;  %v4419_v6 = vsub.f32 %v9796_v31, %v4403_v26 }
 0xc60   : > { %4468 = vadd.xlane.f32.xlu0 %v9832_v43 }
 0xc61   : > { %v9836_v30 = vpop.eup %8185  ;;  %8195 = vpow2.f32 %v4448_v13  ;;  %v4450_v9 = vmul.f32 1.442695, %v4419_v6 }
 0xc62   : > { %4470 = vadd.xlane.f32.xlu1 %v9836_v30 }
 0xc63   : > { %v9839_v12 = vpop.eup %8187  ;;  %8197 = vpow2.f32 %v4450_v9 }
 0xc64   : > { %4472 = vadd.xlane.f32.xlu0 %v9839_v12 }
 0xc65   : > { %v9842_v58 = vpop.eup %8189 }
 0xc66   : > { %4474 = vadd.xlane.f32.xlu1 %v9842_v58 }
 0xc67   : > { %v9845_v0 = vpop.eup %8191 }
 0xc68   : > { %4476 = vadd.xlane.f32.xlu0 %v9845_v0 }
 0xc69   : > { %v9848_v31 = vpop.eup %8193 }
 0xc6a   : > { %4478 = vadd.xlane.f32.xlu1 %v9848_v31 }
 0xc6b   : > { %v9851_v11 = vpop.eup %8195 }
 0xc6c   : > { %4480 = vadd.xlane.f32.xlu0 %v9851_v11 }
 0xc6d   : > { %v9854_v10 = vpop.eup %8197 }
 0xc6e   : > { %4482 = vadd.xlane.f32.xlu1 %v9854_v10 }
 0xc7f   : > { %7709 = vrot.lane.b32.xlu1 %v10847_v50, %s8392_s1 }
 0xc82   : > { %7704 = vrot.lane.b32.xlu0 %v10848_v48, %s8392_s1 }
 0xc83   : > { %7714 = vrot.lane.b32.xlu1 %v10849_v49, %s8393_s20 }
 0xc87   : > { %7719 = vrot.lane.b32.xlu1 %v10850_v32, %s8393_s20 }
 0xcdd   : > { %v4453_v17 = vpop.xlane.xlu0 %4452 }
 0xcde   : > { %8199 = vrcp.f32 %v4453_v17 }
 0xcdf   : > { %v4455_v22 = vpop.xlane.xlu1 %4454 }
 0xce0   : > { %8201 = vrcp.f32 %v4455_v22 }
 0xce1   : > { %v4457_v20 = vpop.xlane.xlu0 %4456 }
 0xce2   : > { %8203 = vrcp.f32 %v4457_v20 }
 0xce3   : > { %v4459_v28 = vpop.xlane.xlu1 %4458 }
 0xce4   : > { %8205 = vrcp.f32 %v4459_v28 }
 0xce5   : > { %v4461_v27 = vpop.xlane.xlu0 %4460 }
 0xce6   : > { %8207 = vrcp.f32 %v4461_v27 }
 0xce7   : > { %v4463_v63 = vpop.xlane.xlu1 %4462 }
 0xce8   : > { %v8200_v18 = vpop.eup %8199  ;;  %8209 = vrcp.f32 %v4463_v63 }
 0xce9   : > { %v4465_v53 = vpop.xlane.xlu0 %4464  ;;  %v4500_v38 = vmul.f32 %v8200_v18, %v9803_v37 }
 0xcea   : > { %v8202_v44 = vpop.eup %8201  ;;  %8211 = vrcp.f32 %v4465_v53 }
 0xceb   : > { %v4467_v40 = vpop.xlane.xlu1 %4466  ;;  %v4501_v24 = vmul.f32 %v8202_v44, %v9806_v7 }
 0xcec   : > { %v8204_v52 = vpop.eup %8203  ;;  %8213 = vrcp.f32 %v4467_v40 }
 0xced   : > { %v4469_v36 = vpop.xlane.xlu0 %4468  ;;  %v4516_v5 = vpack.c.bf16 %v4501_v24, %v4500_v38  ;;  %v4502_v51 = vmul.f32 %v8204_v52, %v9809_v8 }
 0xcee   : > { %v8206_v42 = vpop.eup %8205  ;;  %8215 = vrcp.f32 %v4469_v36 }
 0xcef   : > { %v4503_v26 = vmul.f32 %v8206_v42, %v9812_v3  ;;  %7546 = vmatprep.mubr.bf16.mxu0 %v4516_v5  ;;  %v4471_v13 = vpop.xlane.xlu1 %4470 }
 0xcf0   : > { %v8208_v6 = vpop.eup %8207  ;;  %8217 = vrcp.f32 %v4471_v13 }
 0xcf1   : > { %v4473_v9 = vpop.xlane.xlu0 %4472  ;;  %v4517_v50 = vpack.c.bf16 %v4503_v26, %v4502_v51  ;;  %v4504_v7 = vmul.f32 %v8208_v6, %v9816_v45 }
 0xcf2   : > { %v8210_v48 = vpop.eup %8209  ;;  %8219 = vrcp.f32 %v4473_v9 }
 0xcf3   : > { %7547 = vmatmul.mubr.bf16.vlgmr.msra.gmra.mrb[176].mxu0 %v4517_v50  ;;  %v4475_v37 = vpop.xlane.xlu1 %4474  ;;  %v4505_v49 = vmul.f32 %v8210_v48, %v9820_v1  ;;  %v7933_v50 = vld [vmem:[%s10796_s8 + $0x30] sm:$0xff]   ;;  %v7934_v48 = vld [vmem:[%s10796_s8 + $0x38] sm:$0xff]  }
 0xcf4   : > { %v8212_v32 = vpop.eup %8211  ;;  %8221 = vrcp.f32 %v4475_v37 }
 0xcf5   : > { %v4477_v17 = vpop.xlane.xlu0 %4476  ;;  %v4518_v8 = vpack.c.bf16 %v4505_v49, %v4504_v7  ;;  %v4506_v20 = vmul.f32 %v8212_v32, %v9824_v25 }
 0xcf6   : > { %v8214_v22 = vpop.eup %8213  ;;  %8223 = vrcp.f32 %v4477_v17 }
 0xcf7   : > { %7550 = vmatprep.mubr.bf16.mxu0 %v4518_v8  ;;  %v4479_v3 = vpop.xlane.xlu1 %4478  ;;  %v4507_v28 = vmul.f32 %v8214_v22, %v9828_v4 }
 0xcf8   : > { %v8216_v27 = vpop.eup %8215  ;;  %8225 = vrcp.f32 %v4479_v3  ;;  %v10851_v3 = vpack.i.bf16 %v9529_v56, %v9525_v33  ;;  %v10854_v33 = vpack.i.bf16 %v9746_v61, %v9740_v47  ;;  %v10856_v47 = vpack.i.bf16 %v9545_v35, %v9539_v59 }
 0xcf9   : > { %v4481_v63 = vpop.xlane.xlu0 %4480  ;;  %v4519_v18 = vpack.c.bf16 %v4507_v28, %v4506_v20  ;;  %v4508_v1 = vmul.f32 %v8216_v27, %v9832_v43  ;;  %v10852_v28 = vpack.i.bf16 %v9533_v57, %v9527_v16  ;;  %v10857_v61 = vpack.i.bf16 %v9754_v14, %v9750_v39 }
 0xcfa   : > { %v8218_v53 = vpop.eup %8217  ;;  %8227 = vrcp.f32 %v4481_v63  ;;  %v10859_v59 = vpack.i.bf16 %v9553_v60, %v9549_v46  ;;  %v10860_v35 = vpack.i.bf16 %v9557_v23, %v9551_v62  ;;  %v10861_v39 = vpack.i.bf16 %v9766_v55, %v9762_v19 }
 0xcfb   : > { %7551 = vmatmul.mubr.bf16.gmra.mrb[180].mxu0 %v4519_v18  ;;  %v4483_v45 = vpop.xlane.xlu1 %4482  ;;  %v4509_v44 = vmul.f32 %v8218_v53, %v9836_v30 }
 0xcfc   : > { %v8220_v40 = vpop.eup %8219  ;;  %8229 = vrcp.f32 %v4483_v45  ;;  %v10853_v45 = vpack.i.bf16 %v9742_v29, %v9738_v54  ;;  %v10855_v54 = vpack.i.bf16 %v9541_v41, %v9537_v15 }
 0xcfd   : > { %v4520_v38 = vpack.c.bf16 %v4509_v44, %v4508_v1  ;;  %v4510_v25 = vmul.f32 %v8220_v40, %v9839_v12  ;;  %v7927_v12 = vld [vmem:[%s10796_s8] sm:$0xff]  }
 0xcfe   : > { %v8222_v24 = vpop.eup %8221  ;;  %7562 = vmatprep.subr.bf16.mxu0 %v7927_v12 }
 0xcff   : > { %7554 = vmatprep.mubr.bf16.mxu0 %v4520_v38  ;;  %v4511_v4 = vmul.f32 %v8222_v24, %v9842_v58  ;;  %v7928_v58 = vld [vmem:[%s10796_s8 + $0x8] sm:$0xff]   ;;  %7563 = vmatpush3.bf16.msra.mxu0 %v7927_v12  ;;  %v10858_v24 = vpack.i.bf16 %v9758_v21, %v9752_v2  ;;  %v10862_v2 = vld [vmem:[#allocation29_spill] sm:$0xff]  ;;  %v7710_v46 = vpop.permute.xlu1 %7709  ;;  %v7705_v21 = vpop.permute.xlu0 %7704 }
 0xd00   : > { %v8224_v52 = vpop.eup %8223  ;;  %7564 = vmatprep.subr.bf16.mxu0 %v7928_v58  ;;  %v10863_v14 = vpack.i.bf16 %v9770_v34, %v10862_v2  ;;  %v7707_v62 = vunpack.i.h.bf16 %v7705_v21  ;;  %v7706_v23 = vunpack.i.l.bf16 %v7705_v21  ;;  %v10867_v12 = vld [vmem:[#allocation13_spill] sm:$0xff] }
 0xd01   : > { %v4521_v36 = vpack.c.bf16 %v4511_v4, %v4510_v25  ;;  %v4512_v42 = vmul.f32 %v8224_v52, %v9845_v0  ;;  %v7929_v0 = vld [vmem:[%s10796_s8 + $0x10] sm:$0xff]  }
 0xd02   : > { %v8226_v5 = vpop.eup %8225 }
 0xd03   : > { %7555 = vmatmul.mubr.bf16.gmra.mrb[184].mxu0 %v4521_v36  ;;  %v4513_v51 = vmul.f32 %v8226_v5, %v9848_v31  ;;  %v7930_v31 = vld [vmem:[%s10796_s8 + $0x18] sm:$0xff]   ;;  %v7715_v60 = vpop.permute.xlu1 %7714  ;;  %v7712_v36 = vunpack.i.h.bf16 %v7710_v46  ;;  %v7711_v5 = vunpack.i.l.bf16 %v7710_v46 }
 0xd04   : > { %v8228_v43 = vpop.eup %8227  ;;  %7565 = vmatpush3.bf16.msra.mxu0 %v7928_v58  ;;  %v7717_v55 = vunpack.i.h.bf16 %v7715_v60 }
 0xd05   : > { %v4522_v26 = vpack.c.bf16 %v4513_v51, %v4512_v42  ;;  %v4514_v13 = vmul.f32 %v8228_v43, %v9851_v11  ;;  %7566 = vmatprep.subr.bf16.mxu0 %v7929_v0  ;;  %v7931_v11 = vld [vmem:[%s10796_s8 + $0x20] sm:$0xff]   ;;  %v7716_v51 = vunpack.i.l.bf16 %v7715_v60  ;;  %v10864_v43 = vld [vmem:[#allocation16_spill] sm:$0xff]  ;;  %v4824_v58 = vsel %vm1038_vm0, %v10867_v12, %v7711_v5 }
 0xd06   : > { %v8230_v30 = vpop.eup %8229  ;;  %v4823_v34 = vsel %vm1038_vm0, %v10864_v43, %v7707_v62 }
 0xd07   : > { %7558 = vmatprep.mubr.bf16.mxu0 %v4522_v26  ;;  %v4515_v6 = vmul.f32 %v8230_v30, %v9854_v10  ;;  %v7932_v10 = vld [vmem:[%s10796_s8 + $0x28] sm:$0xff]   ;;  %v7720_v52 = vpop.permute.xlu1 %7719 }
 0xd08   : > { %7567 = vmatpush3.bf16.msra.mxu0 %v7929_v0  ;;  %v7722_v42 = vunpack.i.h.bf16 %v7720_v52  ;;  %v7721_v19 = vunpack.i.l.bf16 %v7720_v52  ;;  %v10865_v26 = vld [vmem:[#allocation14_spill] sm:$0xff] }
 0xd09   : > { %v4523_v9 = vpack.c.bf16 %v4515_v6, %v4514_v13  ;;  %7568 = vmatprep.subr.bf16.mxu0 %v7930_v31  ;;  %v4822_v30 = vsel %vm1038_vm0, %v10865_v26, %v7706_v23  ;;  %v10866_v6 = vld [vmem:[#allocation15_spill] sm:$0xff] }
 0xd0b   : > { %7559 = vmatmul.mubr.bf16.gmra.mrb[188].mxu0 %v4523_v9  ;;  %v4825_v9 = vsel %vm1038_vm0, %v10866_v6, %v7712_v36 }
 0xd0c   : > { %7569 = vmatpush3.bf16.msra.mxu0 %v7930_v31 }
 0xd0d   : > { %7570 = vmatprep.subr.bf16.mxu0 %v7931_v11 }
 0xd10   : > { %7571 = vmatpush3.bf16.msra.mxu0 %v7931_v11 }
 0xd11   : > { %7572 = vmatprep.subr.bf16.mxu0 %v7932_v10 }
 0xd14   : > { %7573 = vmatpush3.bf16.msra.mxu0 %v7932_v10  ;;  %v4841_v10 = vsel %vm4838_vm1, %v4824_v58, %v7721_v19  ;;  %v10872_v58 = vld [vmem:[#allocation23_spill] sm:$0xff] }
 0xd15   : > { %7574 = vmatprep.subr.bf16.mxu0 %v7933_v50 }
 0xd18   : > { %7575 = vmatpush3.bf16.msra.mxu0 %v7933_v50  ;;  %v4842_v50 = vsel %vm4838_vm1, %v4825_v9, %v7722_v42 }
 0xd19   : > { %7576 = vmatprep.subr.bf16.mxu0 %v7934_v48 }
 0xd1c   : > { %7577 = vmatpush3.bf16.msra.mxu0 %v7934_v48 }
 0xdc6   : > { %v7548_v37 = vpop.f32.mrb[176].mxu0 }
 0xdc7   : > { %v4567_v7 = vpop.f32.mrb[177].mxu0 }
 0xdc8   : > { %v7549_v49 = vpop.f32.mrb[178].mxu0 }
 0xdc9   : > { %v7728_v32 = vpack.i.bf16 %v7549_v49, %v7548_v37  ;;  %v4570_v17 = vpop.f32.mrb[179].mxu0  ;;  %v4839_v49 = vsel %vm4838_vm1, %v4822_v30, %v7716_v51 }
 0xdca   : > { %v7723_v8 = vpack.i.bf16 %v4570_v17, %v4567_v7  ;;  %v4840_v7 = vsel %vm4838_vm1, %v4823_v34, %v7717_v55 }
 0xdcb   : > { %7729 = vrot.lane.b32.xlu1 %v7728_v32, %s8394_s0 }
 0xdcc   : > { %7724 = vrot.lane.b32.xlu0 %v7723_v8, %s8394_s0 }
 0xdce   : > { %v7552_v22 = vpop.f32.mrb[180].mxu0 }
 0xdcf   : > { %7739 = vrot.lane.b32.xlu1 %v10851_v3, %s8392_s1  ;;  %v4583_v20 = vpop.f32.mrb[181].mxu0 }
 0xdd0   : > { %7734 = vrot.lane.b32.xlu0 %v10852_v28, %s8392_s1  ;;  %v7553_v27 = vpop.f32.mrb[182].mxu0 }
 0xdd1   : > { %v7758_v63 = vpack.i.bf16 %v7553_v27, %v7552_v22  ;;  %v4586_v18 = vpop.f32.mrb[183].mxu0 }
 0xdd2   : > { %v7753_v53 = vpack.i.bf16 %v4586_v18, %v4583_v20 }
 0xdd3   : > { %7749 = vrot.lane.b32.xlu1 %v10853_v45, %s8393_s20 }
 0xdd4   : > { %7744 = vrot.lane.b32.xlu0 %v10854_v33, %s8393_s20 }
 0xdd6   : > { %v7556_v56 = vpop.f32.mrb[184].mxu0 }
 0xdd7   : > { %7759 = vrot.lane.b32.xlu1 %v7758_v63, %s8394_s0  ;;  %v4599_v1 = vpop.f32.mrb[185].mxu0 }
 0xdd8   : > { %7754 = vrot.lane.b32.xlu0 %v7753_v53, %s8394_s0  ;;  %v7557_v16 = vpop.f32.mrb[186].mxu0 }
 0xdd9   : > { %v7788_v57 = vpack.i.bf16 %v7557_v16, %v7556_v56  ;;  %v4602_v44 = vpop.f32.mrb[187].mxu0 }
 0xdda   : > { %v7783_v40 = vpack.i.bf16 %v4602_v44, %v4599_v1 }
 0xddb   : > { %7769 = vrot.lane.b32.xlu1 %v10855_v54, %s8392_s1 }
 0xddc   : > { %7764 = vrot.lane.b32.xlu0 %v10856_v47, %s8392_s1  ;;  %v10869_v47 = vld [vmem:[#allocation17_spill] sm:$0xff] }
 0xdde   : > { %v7560_v29 = vpop.f32.mrb[188].mxu0 }
 0xddf   : > { %7779 = vrot.lane.b32.xlu1 %v10857_v61, %s8393_s20  ;;  %v4615_v38 = vpop.f32.mrb[189].mxu0 }
 0xde0   : > { %7774 = vrot.lane.b32.xlu0 %v10858_v24, %s8393_s20  ;;  %v7561_v25 = vpop.f32.mrb[190].mxu0 }
 0xde1   : > { %v7818_v15 = vpack.i.bf16 %v7561_v25, %v7560_v29  ;;  %v4618_v41 = vpop.f32.mrb[191].mxu0  ;;  %v10871_v25 = vld [vmem:[#allocation18_spill] sm:$0xff] }
 0xde2   : > { %v7813_v4 = vpack.i.bf16 %v4618_v41, %v4615_v38  ;;  %v10870_v38 = vld [vmem:[#allocation20_spill] sm:$0xff] }
 0xde3   : > { %7789 = vrot.lane.b32.xlu1 %v7788_v57, %s8394_s0 }
 0xde4   : > { %7784 = vrot.lane.b32.xlu0 %v7783_v40, %s8394_s0  ;;  %v10868_v40 = vld [vmem:[#allocation19_spill] sm:$0xff] }
 0xde7   : > { %7799 = vrot.lane.b32.xlu1 %v10859_v59, %s8392_s1 }
 0xde8   : > { %7794 = vrot.lane.b32.xlu0 %v10860_v35, %s8392_s1 }
 0xdeb   : > { %7809 = vrot.lane.b32.xlu1 %v10861_v39, %s8393_s20 }
 0xdec   : > { %7804 = vrot.lane.b32.xlu0 %v10863_v14, %s8393_s20 }
 0xdef   : > { %7819 = vrot.lane.b32.xlu1 %v7818_v15, %s8394_s0 }
 0xdf0   : > { %7814 = vrot.lane.b32.xlu0 %v7813_v4, %s8394_s0 }
 0xe3d   : > { %v7730_v13 = vpop.permute.xlu1 %7729 }
 0xe3e   : > { %v7732_v0 = vunpack.i.h.bf16 %v7730_v13  ;;  %v7731_v31 = vunpack.i.l.bf16 %v7730_v13  ;;  %v7725_v11 = vpop.permute.xlu0 %7724 }
 0xe3f   : > { %v7727_v48 = vunpack.i.h.bf16 %v7725_v11  ;;  %v7726_v37 = vunpack.i.l.bf16 %v7725_v11 }
 0xe40   : > { %v4858_v32 = vsel %vm4855_vm2, %v4841_v10, %v7731_v31  ;;  %v4859_v17 = vsel %vm4855_vm2, %v4842_v50, %v7732_v0  ;;  %v10873_v31 = vld [vmem:[#allocation21_spill] sm:$0xff]  ;;  %v10874_v50 = vld [vmem:[#allocation24_spill] sm:$0xff] }
 0xe41   : > { %v4873_v8 = vpack.c.bf16 %v4859_v17, %v4858_v32  ;;  %v7740_v22 = vpop.permute.xlu1 %7739  ;;  %v4856_v3 = vsel %vm4855_vm2, %v4839_v49, %v7726_v37  ;;  %v4857_v20 = vsel %vm4855_vm2, %v4840_v7, %v7727_v48  ;;  %v10875_v37 = vld [vmem:[#allocation22_spill] sm:$0xff] }
 0xe42   : > { %v7735_v28 = vpop.permute.xlu0 %7734  ;;  %v4872_v27 = vpack.c.bf16 %v4857_v20, %v4856_v3  ;;  %v7742_v63 = vunpack.i.h.bf16 %v7740_v22  ;;  %v7741_v18 = vunpack.i.l.bf16 %v7740_v22 }
 0xe43   : > { %v7737_v45 = vunpack.i.h.bf16 %v7735_v28  ;;  %v7736_v33 = vunpack.i.l.bf16 %v7735_v28 }
 0xe44   : > { %7578 = vmatprep.mubr.bf16.mxu0 %v4872_v27  ;;  %v4829_v54 = vsel %vm1038_vm0, %v10868_v40, %v7742_v63  ;;  %v4828_v29 = vsel %vm1038_vm0, %v10869_v47, %v7741_v18 }
 0xe45   : > { %v7750_v53 = vpop.permute.xlu1 %7749  ;;  %7579 = vmatmul.mubr.bf16.vlgmr.msra.gmra.mrb[192].mxu0 %v4873_v8  ;;  %v4827_v24 = vsel %vm1038_vm0, %v10870_v38, %v7737_v45  ;;  %v4826_v15 = vsel %vm1038_vm0, %v10871_v25, %v7736_v33 }
 0xe46   : > { %v7745_v56 = vpop.permute.xlu0 %7744  ;;  %v7752_v1 = vunpack.i.h.bf16 %v7750_v53  ;;  %v7751_v16 = vunpack.i.l.bf16 %v7750_v53 }
 0xe47   : > { %v7747_v57 = vunpack.i.h.bf16 %v7745_v56  ;;  %v7746_v44 = vunpack.i.l.bf16 %v7745_v56 }
 0xe48   : > { %v4845_v35 = vsel %vm4838_vm1, %v4828_v29, %v7751_v16  ;;  %v4846_v39 = vsel %vm4838_vm1, %v4829_v54, %v7752_v1 }
 0xe49   : > { %v7760_v61 = vpop.permute.xlu1 %7759  ;;  %v4843_v46 = vsel %vm4838_vm1, %v4826_v15, %v7746_v44  ;;  %v4844_v60 = vsel %vm4838_vm1, %v4827_v24, %v7747_v57  ;;  %v10876_v15 = vld [vmem:[#allocation27_spill] sm:$0xff] }
 0xe4a   : > { %v7762_v41 = vunpack.i.h.bf16 %v7760_v61  ;;  %v7761_v4 = vunpack.i.l.bf16 %v7760_v61  ;;  %v7755_v59 = vpop.permute.xlu0 %7754 }
 0xe4b   : > { %v7757_v2 = vunpack.i.h.bf16 %v7755_v59  ;;  %v7756_v14 = vunpack.i.l.bf16 %v7755_v59 }
 0xe4c   : > { %v4862_v21 = vsel %vm4855_vm2, %v4845_v35, %v7761_v4  ;;  %v4863_v52 = vsel %vm4855_vm2, %v4846_v39, %v7762_v41  ;;  %v10877_v4 = vld [vmem:[#allocation25_spill] sm:$0xff]  ;;  %v10878_v39 = vld [vmem:[#allocation28_spill] sm:$0xff] }
 0xe4d   : > { %v7770_v62 = vpop.permute.xlu1 %7769  ;;  %v4860_v23 = vsel %vm4855_vm2, %v4843_v46, %v7756_v14  ;;  %v4861_v36 = vsel %vm4855_vm2, %v4844_v60, %v7757_v2  ;;  %v4875_v5 = vpack.c.bf16 %v4863_v52, %v4862_v21  ;;  %v10879_v14 = vld [vmem:[#allocation26_spill] sm:$0xff] }
 0xe4e   : > { %v7765_v42 = vpop.permute.xlu0 %7764  ;;  %v4874_v19 = vpack.c.bf16 %v4861_v36, %v4860_v23  ;;  %v7772_v55 = vunpack.i.h.bf16 %v7770_v62  ;;  %v7771_v51 = vunpack.i.l.bf16 %v7770_v62 }
 0xe4f   : > { %v7767_v34 = vunpack.i.h.bf16 %v7765_v42  ;;  %v7766_v26 = vunpack.i.l.bf16 %v7765_v42 }
 0xe50   : > { %7582 = vmatprep.mubr.bf16.mxu0 %v4874_v19  ;;  %v4833_v0 = vsel %vm1038_vm0, %v10872_v58, %v7772_v55  ;;  %v4832_v11 = vsel %vm1038_vm0, %v10873_v31, %v7771_v51 }
 0xe51   : > { %v7780_v43 = vpop.permute.xlu1 %7779  ;;  %7583 = vmatmul.mubr.bf16.gmra.mrb[196].mxu0 %v4875_v5  ;;  %v4831_v48 = vsel %vm1038_vm0, %v10874_v50, %v7767_v34  ;;  %v4830_v7 = vsel %vm1038_vm0, %v10875_v37, %v7766_v26 }
 0xe52   : > { %v7775_v30 = vpop.permute.xlu0 %7774  ;;  %v7782_v13 = vunpack.i.h.bf16 %v7780_v43  ;;  %v7781_v6 = vunpack.i.l.bf16 %v7780_v43 }
 0xe53   : > { %v7777_v9 = vunpack.i.h.bf16 %v7775_v30  ;;  %v7776_v12 = vunpack.i.l.bf16 %v7775_v30 }
 0xe54   : > { %v4849_v8 = vsel %vm4838_vm1, %v4832_v11, %v7781_v6  ;;  %v4850_v22 = vsel %vm4838_vm1, %v4833_v0, %v7782_v13  ;;  %v10036_v13 = vld [vmem:[%s10797_s9] ss:$0 sm:$0xff] }
 0xe55   : > { %v7790_v10 = vpop.permute.xlu1 %7789  ;;  %v4847_v28 = vsel %vm4838_vm1, %v4830_v7, %v7776_v12  ;;  %v4848_v27 = vsel %vm4838_vm1, %v4831_v48, %v7777_v9  ;;  %v8296_v11 = vld [vmem:[%s8830_s27] sm:$0xff]  ;;  %v8297_v48 = vld [vmem:[%s8830_s27 + $0x8] sm:$0xff]  ;;  %v8298_v7 = vld [vmem:[%s8830_s27 + $0x10] sm:$0xff] }
 0xe56   : > { %v7792_v49 = vunpack.i.h.bf16 %v7790_v10  ;;  %v7791_v32 = vunpack.i.l.bf16 %v7790_v10  ;;  %v7785_v17 = vpop.permute.xlu0 %7784 }
 0xe57   : > { %v7787_v3 = vunpack.i.h.bf16 %v7785_v17  ;;  %v7786_v20 = vunpack.i.l.bf16 %v7785_v17  ;;  %v8299_v17 = vld [vmem:[%s8830_s27 + $0x18] sm:$0xff] }
 0xe58   : > { %v4866_v63 = vsel %vm4855_vm2, %v4849_v8, %v7791_v32  ;;  %v4867_v18 = vsel %vm4855_vm2, %v4850_v22, %v7792_v49 }
 0xe59   : > { %v7800_v53 = vpop.permute.xlu1 %7799  ;;  %v4864_v45 = vsel %vm4855_vm2, %v4847_v28, %v7786_v20  ;;  %v4865_v33 = vsel %vm4855_vm2, %v4848_v27, %v7787_v3  ;;  %v4877_v56 = vpack.c.bf16 %v4867_v18, %v4866_v63  ;;  %v8300_v18 = vld [vmem:[%s8830_s27 + $0x20] sm:$0xff] }
 0xe5a   : > { %v7795_v1 = vpop.permute.xlu0 %7794  ;;  %v4876_v16 = vpack.c.bf16 %v4865_v33, %v4864_v45  ;;  %v7802_v57 = vunpack.i.h.bf16 %v7800_v53  ;;  %v7801_v44 = vunpack.i.l.bf16 %v7800_v53 }
 0xe5b   : > { %v7797_v54 = vunpack.i.h.bf16 %v7795_v1  ;;  %v7796_v47 = vunpack.i.l.bf16 %v7795_v1 }
 0xe5c   : > { %7586 = vmatprep.mubr.bf16.mxu0 %v4876_v16  ;;  %v4837_v41 = vsel %vm1038_vm0, %v10876_v15, %v7802_v57  ;;  %v4836_v59 = vsel %vm1038_vm0, %v10877_v4, %v7801_v44  ;;  %v8302_v16 = vld [vmem:[%s8830_s27 + $0x30] sm:$0xff]  ;;  %v8303_v44 = vld [vmem:[%s8830_s27 + $0x38] sm:$0xff] }
 0xe5d   : > { %v7810_v40 = vpop.permute.xlu1 %7809  ;;  %7587 = vmatmul.mubr.bf16.gmra.mrb[200].mxu0 %v4877_v56  ;;  %v4835_v2 = vsel %vm1038_vm0, %v10878_v39, %v7797_v54  ;;  %v4834_v46 = vsel %vm1038_vm0, %v10879_v14, %v7796_v47  ;;  %v8301_v56 = vld [vmem:[%s8830_s27 + $0x28] sm:$0xff]  ;;  %v8306_v39 = vld [vmem:[%s8830_s27 + $0x50] sm:$0xff]  ;;  %v8307_v14 = vld [vmem:[%s8830_s27 + $0x58] sm:$0xff] }
 0xe5e   : > { %v7805_v29 = vpop.permute.xlu0 %7804  ;;  %v7812_v61 = vunpack.i.h.bf16 %v7810_v40  ;;  %v7811_v38 = vunpack.i.l.bf16 %v7810_v40 }
 0xe5f   : > { %v7807_v24 = vunpack.i.h.bf16 %v7805_v29  ;;  %v7806_v25 = vunpack.i.l.bf16 %v7805_v29 }
 0xe60   : > { %v4853_v62 = vsel %vm4838_vm1, %v4836_v59, %v7811_v38  ;;  %v4854_v23 = vsel %vm4838_vm1, %v4837_v41, %v7812_v61  ;;  %v8305_v59 = vld [vmem:[%s8830_s27 + $0x48] sm:$0xff] }
 0xe61   : > { %v7820_v35 = vpop.permute.xlu1 %7819  ;;  %v4851_v42 = vsel %vm4838_vm1, %v4834_v46, %v7806_v25  ;;  %v4852_v19 = vsel %vm4838_vm1, %v4835_v2, %v7807_v24  ;;  %v8304_v25 = vld [vmem:[%s8830_s27 + $0x40] sm:$0xff] }
 0xe62   : > { %v7822_v60 = vunpack.i.h.bf16 %v7820_v35  ;;  %v7821_v21 = vunpack.i.l.bf16 %v7820_v35  ;;  %v7815_v52 = vpop.permute.xlu0 %7814 }
 0xe63   : > { %v7817_v36 = vunpack.i.h.bf16 %v7815_v52  ;;  %v7816_v5 = vunpack.i.l.bf16 %v7815_v52 }
 0xe64   : > { %v4870_v55 = vsel %vm4855_vm2, %v4853_v62, %v7821_v21  ;;  %v4871_v51 = vsel %vm4855_vm2, %v4854_v23, %v7822_v60 }
 0xe65   : > { %v4868_v43 = vsel %vm4855_vm2, %v4851_v42, %v7816_v5  ;;  %v4869_v34 = vsel %vm4855_vm2, %v4852_v19, %v7817_v36  ;;  %v4879_v26 = vpack.c.bf16 %v4871_v51, %v4870_v55  ;;  %v8308_v5 = vld [vmem:[%s8830_s27 + $0x60] sm:$0xff]  ;;  %v8309_v51 = vld [vmem:[%s8830_s27 + $0x68] sm:$0xff] }
 0xe66   : > { %v4878_v30 = vpack.c.bf16 %v4869_v34, %v4868_v43  ;;  %v8310_v34 = vld [vmem:[%s8830_s27 + $0x70] sm:$0xff] }
 0xe68   : > { %7590 = vmatprep.mubr.bf16.mxu0 %v4878_v30  ;;  %v8311_v30 = vld [vmem:[%s8830_s27 + $0x78] sm:$0xff]  ;;  %s606_s27 = sand.u32 1, %s8374_s28  }
 0xe69   : > { %7591 = vmatmul.mubr.bf16.gmra.mrb[204].mxu0 %v4879_v26  ;;  %s6162_s1 = sshll.u32 %s606_s27, 7  ;;  %s10742_s30 = scalar_lea.sflag [#allocation5], %s606_s27 }
 0xe6a   : > { %s10670_s29 = scalar_lea.vmem [#allocation4], %s6162_s1  ;;  %s8396_s1 = smov [#allocation4]  }
 0xe6b   : > { %s6066_s26 = sshll.u32 %s10670_s29, 4  ;;  %s8316_s20 = sshll.u32 %s8396_s1, 4  ;;  %s10735_s26 = int_to_ptr.vmem [resolvable:$true] %s6066_s26  ;;  %s8317_s20 = int_to_ptr.vmem [resolvable:$false] %s8316_s20 }
 0xe6c   : > { %s8312_s0 = scalar_lea.vmem %s10735_s26, 2048  ;;  %s8318_s23 = scalar_lea.vmem %s8317_s20, 4096 }
 0xe6d   : > { %p8313_p12 = scmp.ne.s32.totalorder %s10735_s26, %s8312_s0  ;;  %p8319_p1 = scmp.lt.s32.totalorder %s10735_s26, %s8317_s20 }
 0xe6e   : > { %p8320_p2 = scmp.lt.s32.totalorder %s8318_s23, %s8312_s0 }
 0xe6f   : > { %p8314_p13 = pnand %p8313_p12, %p8534_p4 }
 0xe70   : > { %p8321_p3 = por %p8320_p2, %p8319_p1 }
 0xe71   : > { %p8315_p0 = pneg %p8314_p13 }
 0xe73   : > { %p8322_p5 = pnand %p8321_p3, %p8315_p0 }
 0xf18   : > { %v7580_v6 = vpop.f32.mrb[192].mxu0 }
 0xf19   : > { %v4985_v9 = vpop.f32.mrb[193].mxu0  ;;  %v4994_v31 = vadd.f32 %v7580_v6, %v10036_v13 }
 0xf1a   : > { %v4986_v12 = vadd.f32 %v10036_v13, %v4985_v9  ;;  %v7581_v58 = vpop.f32.mrb[194].mxu0  ;;  %v7937_v9 = vld [vmem:[%s10800_s12 + $0x4] ss:$8 sps:$4 sm:$0xff]  }
 0xf1b   : > { %v4988_v0 = vpop.f32.mrb[195].mxu0  ;;  %v10049_v49 = vadd.f32 %v8298_v7, %v4994_v31  ;;  %v4997_v32 = vadd.f32 %v7581_v58, %v10036_v13  ;;  %5403 = vmatprep.subr.bf16.mxu1 %v7937_v9  ;;  %v7938_v58 = vld [vmem:[%s10800_s12 + $0x10] ss:$8 sps:$4 sm:$0xff]  }
 0xf1c   : > { %v10041_v10 = vadd.f32 %v8296_v11, %v4986_v12  ;;  %v4989_v50 = vadd.f32 %v10036_v13, %v4988_v0  ;;  %v7940_v12 = vld [vmem:[%s10800_s12 + $0x14] ss:$8 sps:$4 sm:$0xff]  }
 0xf1d   : > { %v10055_v8 = vadd.f32 %v8299_v17, %v4997_v32 }
 0xf1e   : > { %v10045_v37 = vadd.f32 %v8297_v48, %v4989_v50  ;;  %5066 = vadd.xlane.f32.xlu0 %v10041_v10 }
 0xf20   : > { %5068 = vadd.xlane.f32.xlu1 %v10045_v37 }
 0xf22   : > { %5070 = vadd.xlane.f32.xlu0 %v10049_v49 }
 0xf24   : > { %v7584_v22 = vpop.f32.mrb[196].mxu0 }
 0xf25   : > { %v5001_v3 = vpop.f32.mrb[197].mxu0  ;;  %v5010_v63 = vadd.f32 %v7584_v22, %v10036_v13 }
 0xf26   : > { %v5002_v20 = vadd.f32 %v10036_v13, %v5001_v3  ;;  %v7585_v28 = vpop.f32.mrb[198].mxu0  ;;  %5072 = vadd.xlane.f32.xlu0 %v10055_v8 }
 0xf27   : > { %v5004_v27 = vpop.f32.mrb[199].mxu0  ;;  %v5013_v33 = vadd.f32 %v7585_v28, %v10036_v13  ;;  %v10070_v57 = vadd.f32 %v8302_v16, %v5010_v63 }
 0xf28   : > { %v10061_v53 = vadd.f32 %v8300_v18, %v5002_v20  ;;  %v5005_v45 = vadd.f32 %v10036_v13, %v5004_v27 }
 0xf29   : > { %v10074_v40 = vadd.f32 %v8303_v44, %v5013_v33 }
 0xf2a   : > { %v10066_v1 = vadd.f32 %v8301_v56, %v5005_v45  ;;  %5074 = vadd.xlane.f32.xlu0 %v10061_v53 }
 0xf2c   : > { %5076 = vadd.xlane.f32.xlu1 %v10066_v1 }
 0xf2e   : > { %5078 = vadd.xlane.f32.xlu0 %v10070_v57 }
 0xf30   : > { %v7588_v54 = vpop.f32.mrb[200].mxu0  ;;  %5080 = vadd.xlane.f32.xlu1 %v10074_v40 }
 0xf31   : > { %v5017_v47 = vpop.f32.mrb[201].mxu0  ;;  %v5026_v24 = vadd.f32 %v7588_v54, %v10036_v13 }
 0xf32   : > { %v5018_v29 = vadd.f32 %v10036_v13, %v5017_v47  ;;  %v7589_v61 = vpop.f32.mrb[202].mxu0 }
 0xf33   : > { %v5020_v38 = vpop.f32.mrb[203].mxu0  ;;  %v5029_v4 = vadd.f32 %v7589_v61, %v10036_v13  ;;  %v10090_v2 = vadd.f32 %v8306_v39, %v5026_v24  ;;  %v7943_v24 = vld [vmem:[%s10800_s12 + $0x24] ss:$8 sps:$4 sm:$0xff]   ;;  %v7944_v39 = vld [vmem:[%s10800_s12 + $0x30] ss:$8 sps:$4 sm:$0xff]  }
 0xf34   : > { %v10081_v15 = vadd.f32 %v8304_v25, %v5018_v29  ;;  %v5021_v41 = vadd.f32 %v10036_v13, %v5020_v38 }
 0xf35   : > { %v10094_v46 = vadd.f32 %v8307_v14, %v5029_v4  ;;  %v7946_v4 = vld [vmem:[%s10800_s12 + $0x34] ss:$8 sps:$4 sm:$0xff]  }
 0xf36   : > { %v10086_v35 = vadd.f32 %v8305_v59, %v5021_v41  ;;  %5082 = vadd.xlane.f32.xlu0 %v10081_v15 }
 0xf38   : > { %5084 = vadd.xlane.f32.xlu1 %v10086_v35 }
 0xf3a   : > { %5086 = vadd.xlane.f32.xlu0 %v10090_v2 }
 0xf3c   : > { %v7592_v60 = vpop.f32.mrb[204].mxu0  ;;  %5088 = vadd.xlane.f32.xlu1 %v10094_v46 }
 0xf3d   : > { %v5033_v21 = vpop.f32.mrb[205].mxu0  ;;  %v5042_v36 = vadd.f32 %v7592_v60, %v10036_v13 }
 0xf3e   : > { %v5034_v52 = vadd.f32 %v10036_v13, %v5033_v21  ;;  %v7593_v62 = vpop.f32.mrb[206].mxu0 }
 0xf3f   : > { %v5036_v23 = vpop.f32.mrb[207].mxu0  ;;  %v5045_v55 = vadd.f32 %v7593_v62, %v10036_v13  ;;  %v10110_v26 = vadd.f32 %v8310_v34, %v5042_v36  ;;  %v7949_v36 = vld [vmem:[%s10800_s12 + $0x44] ss:$8 sps:$4 sm:$0xff]  }
 0xf40   : > { %v10101_v42 = vadd.f32 %v8308_v5, %v5034_v52  ;;  %v5037_v19 = vadd.f32 %v10036_v13, %v5036_v23  ;;  %v7935_v13 = vld [vmem:[%s10800_s12] ss:$8 sps:$4 sm:$0xff]  }
 0xf41   : > { %v10114_v6 = vadd.f32 %v8311_v30, %v5045_v55  ;;  %5404 = vmatpush1.bf16.msra.mxu1 %v7935_v13  ;;  %v7952_v30 = vld [vmem:[%s10800_s12 + $0x54] ss:$8 sps:$4 sm:$0xff]  }
 0xf42   : > { %v10106_v43 = vadd.f32 %v8309_v51, %v5037_v19  ;;  %5090 = vadd.xlane.f32.xlu0 %v10101_v42  ;;  %5405 = vmatprep.subr.bf16.mxu1 %v7940_v12  ;;  %v7955_v12 = vld [vmem:[%s10800_s12 + $0x64] ss:$8 sps:$4 sm:$0xff]  }
 0xf44   : > { %5092 = vadd.xlane.f32.xlu1 %v10106_v43 }
 0xf45   : > { %5406 = vmatpush1.bf16.msra.mxu1 %v7938_v58 }
 0xf46   : > { %5094 = vadd.xlane.f32.xlu0 %v10110_v26  ;;  %5407 = vmatprep.subr.bf16.mxu1 %v7943_v24  ;;  %v10306_v24 = vld [vmem:[%s10802_s14 + $0x68] sm:$0xff]  }
 0xf48   : > { %5096 = vadd.xlane.f32.xlu1 %v10114_v6 }
 0xfab   : > { %v5067_v0 = vpop.xlane.xlu0 %5066 }
 0xfac   : > { %v5099_v31 = vmul.f32 0.0078125, %v5067_v0  ;;  %v7953_v0 = vld [vmem:[%s10800_s12 + $0x60] ss:$8 sps:$4 sm:$0xff]  }
 0xfad   : > { %v5069_v11 = vpop.xlane.xlu1 %5068 }
 0xfae   : > { %v10131_v50 = vsub.f32 %v10041_v10, %v5099_v31  ;;  %v5100_v48 = vmul.f32 0.0078125, %v5069_v11 }
 0xfaf   : > { %v5071_v7 = vpop.xlane.xlu0 %5070 }
 0xfb0   : > { %v10134_v32 = vsub.f32 %v10045_v37, %v5100_v48  ;;  %v5101_v17 = vmul.f32 0.0078125, %v5071_v7  ;;  %v5131_v22 = vmul.f32 %v10131_v50, %v10131_v50 }
 0xfb2   : > { %v10139_v3 = vsub.f32 %v10049_v49, %v5101_v17  ;;  %5147 = vadd.xlane.f32.xlu0 %v5131_v22  ;;  %v5132_v20 = vmul.f32 %v10134_v32, %v10134_v32 }
 0xfb3   : > { %v5073_v28 = vpop.xlane.xlu0 %5072 }
 0xfb4   : > { %v5102_v27 = vmul.f32 0.0078125, %v5073_v28  ;;  %5149 = vadd.xlane.f32.xlu1 %v5132_v20  ;;  %v5133_v10 = vmul.f32 %v10139_v3, %v10139_v3  ;;  %v7958_v20 = vld [vmem:[%s10800_s12 + $0x74] ss:$8 sps:$4 sm:$0xff]  }
 0xfb6   : > { %v10146_v37 = vsub.f32 %v10055_v8, %v5102_v27  ;;  %5151 = vadd.xlane.f32.xlu0 %v5133_v10 }
 0xfb7   : > { %v5075_v63 = vpop.xlane.xlu0 %5074 }
 0xfb8   : > { %v5103_v18 = vmul.f32 0.0078125, %v5075_v63  ;;  %v5134_v49 = vmul.f32 %v10146_v37, %v10146_v37 }
 0xfb9   : > { %v5077_v45 = vpop.xlane.xlu1 %5076 }
 0xfba   : > { %v10151_v33 = vsub.f32 %v10061_v53, %v5103_v18  ;;  %v5104_v56 = vmul.f32 0.0078125, %v5077_v45  ;;  %5153 = vadd.xlane.f32.xlu1 %v5134_v49  ;;  %v8395_v49 = vmov 0   ;;  %v7959_v45 = vld [vmem:[%s10802_s14 + $0x40] sm:$0xff]  }
 0xfbb   : > { %v5079_v16 = vpop.xlane.xlu0 %5078  ;;  %5435 = vmatprep.mubr.bf16.mxu1 %v8395_v49  ;;  %6858 = vmatprep.subr.bf16.mxu0 %v7959_v45 }
 0xfbc   : > { %v10154_v44 = vsub.f32 %v10066_v1, %v5104_v56  ;;  %v5105_v54 = vmul.f32 0.0078125, %v5079_v16  ;;  %v5135_v8 = vmul.f32 %v10151_v33, %v10151_v33  ;;  %v10258_v56 = vld [vmem:[%s10802_s14 + $0x48] sm:$0xff]  }
 0xfbd   : > { %v5081_v47 = vpop.xlane.xlu1 %5080  ;;  %v10264_v16 = vld [vmem:[%s10802_s14 + $0x8] sm:$0xff]  }
 0xfbe   : > { %v10159_v29 = vsub.f32 %v10070_v57, %v5105_v54  ;;  %v5106_v61 = vmul.f32 0.0078125, %v5081_v47  ;;  %5155 = vadd.xlane.f32.xlu0 %v5135_v8  ;;  %v5136_v53 = vmul.f32 %v10154_v44, %v10154_v44  ;;  %v7941_v57 = vld [vmem:[%s10800_s12 + $0x20] ss:$8 sps:$4 sm:$0xff]   ;;  %v10270_v54 = vld [vmem:[%s10802_s14 + $0x50] sm:$0xff]   ;;  %v10282_v47 = vld [vmem:[%s10802_s14 + $0x58] sm:$0xff]  }
 0xfbf   : > { %5408 = vmatpush1.bf16.msra.mxu1 %v7941_v57  ;;  %v10276_v8 = vld [vmem:[%s10802_s14 + $0x10] sm:$0xff]  }
 0xfc0   : > { %v10164_v38 = vsub.f32 %v10074_v40, %v5106_v61  ;;  %5157 = vadd.xlane.f32.xlu1 %v5136_v53  ;;  %v5137_v1 = vmul.f32 %v10159_v29, %v10159_v29  ;;  %5409 = vmatprep.subr.bf16.mxu1 %v7946_v4  ;;  %v10288_v61 = vld [vmem:[%s10802_s14 + $0x18] sm:$0xff]   ;;  %v10294_v53 = vld [vmem:[%s10802_s14 + $0x60] sm:$0xff]  }
 0xfc2   : > { %5159 = vadd.xlane.f32.xlu0 %v5137_v1  ;;  %v5138_v25 = vmul.f32 %v10164_v38, %v10164_v38  ;;  %v10300_v1 = vld [vmem:[%s10802_s14 + $0x20] sm:$0xff]  }
 0xfc3   : > { %v5083_v41 = vpop.xlane.xlu0 %5082  ;;  %5410 = vmatpush1.bf16.msra.mxu1 %v7944_v39 }
 0xfc4   : > { %v5107_v40 = vmul.f32 0.0078125, %v5083_v41  ;;  %5161 = vadd.xlane.f32.xlu1 %v5138_v25  ;;  %5411 = vmatprep.subr.bf16.mxu1 %v7949_v36 }
 0xfc5   : > { %v5085_v59 = vpop.xlane.xlu1 %5084 }
 0xfc6   : > { %v10183_v14 = vsub.f32 %v10081_v15, %v5107_v40  ;;  %v5108_v60 = vmul.f32 0.0078125, %v5085_v59  ;;  %v7947_v15 = vld [vmem:[%s10800_s12 + $0x40] ss:$8 sps:$4 sm:$0xff]  }
 0xfc7   : > { %v5087_v21 = vpop.xlane.xlu0 %5086  ;;  %5412 = vmatpush1.bf16.msra.mxu1 %v7947_v15 }
 0xfc8   : > { %v10186_v52 = vsub.f32 %v10086_v35, %v5108_v60  ;;  %v5109_v62 = vmul.f32 0.0078125, %v5087_v21  ;;  %v5139_v23 = vmul.f32 %v10183_v14, %v10183_v14  ;;  %5413 = vmatprep.subr.bf16.mxu1 %v7952_v30 }
 0xfc9   : > { %v5089_v5 = vpop.xlane.xlu1 %5088 }
 0xfca   : > { %v10197_v19 = vsub.f32 %v10090_v2, %v5109_v62  ;;  %v5110_v55 = vmul.f32 0.0078125, %v5089_v5  ;;  %5163 = vadd.xlane.f32.xlu0 %v5139_v23  ;;  %v5140_v35 = vmul.f32 %v10186_v52, %v10186_v52  ;;  %v7950_v2 = vld [vmem:[%s10800_s12 + $0x50] ss:$8 sps:$4 sm:$0xff]  }
 0xfcb   : > { %5414 = vmatpush1.bf16.msra.mxu1 %v7950_v2 }
 0xfcc   : > { %v10202_v51 = vsub.f32 %v10094_v46, %v5110_v55  ;;  %5165 = vadd.xlane.f32.xlu1 %v5140_v35  ;;  %v5141_v34 = vmul.f32 %v10197_v19, %v10197_v19  ;;  %5415 = vmatprep.subr.bf16.mxu1 %v7955_v12 }
 0xfce   : > { %5167 = vadd.xlane.f32.xlu0 %v5141_v34  ;;  %v5142_v13 = vmul.f32 %v10202_v51, %v10202_v51  ;;  %v10313_v34 = vld [vmem:[%s10798_s10] ss:$0 sm:$0xff] }
 0xfcf   : > { %v5091_v9 = vpop.xlane.xlu0 %5090  ;;  %5416 = vmatpush1.bf16.msra.mxu1 %v7953_v0 }
 0xfd0   : > { %v5111_v46 = vmul.f32 0.0078125, %v5091_v9  ;;  %5169 = vadd.xlane.f32.xlu1 %v5142_v13  ;;  %5417 = vmatprep.subr.bf16.mxu1 %v7958_v20  ;;  %v10321_v20 = vld [vmem:[%s10799_s11] ss:$0 sm:$0xff] }
 0xfd1   : > { %v5093_v58 = vpop.xlane.xlu1 %5092 }
 0xfd2   : > { %v10221_v31 = vsub.f32 %v10101_v42, %v5111_v46  ;;  %v5112_v11 = vmul.f32 0.0078125, %v5093_v58  ;;  %v7956_v42 = vld [vmem:[%s10800_s12 + $0x70] ss:$8 sps:$4 sm:$0xff]  }
 0xfd3   : > { %v5095_v48 = vpop.xlane.xlu0 %5094  ;;  %5418 = vmatpush1.bf16.msra.mxu1 %v7956_v42 }
 0xfd4   : > { %v10224_v7 = vsub.f32 %v10106_v43, %v5112_v11  ;;  %v5113_v17 = vmul.f32 0.0078125, %v5095_v48  ;;  %v5143_v22 = vmul.f32 %v10221_v31, %v10221_v31  ;;  %7594 = vmatprep.subr.bf16.mxu1 %v7959_v45 }
 0xfd5   : > { %v5097_v28 = vpop.xlane.xlu1 %5096 }
 0xfd6   : > { %v10235_v27 = vsub.f32 %v10110_v26, %v5113_v17  ;;  %v5114_v10 = vmul.f32 0.0078125, %v5097_v28  ;;  %5171 = vadd.xlane.f32.xlu0 %v5143_v22  ;;  %v5144_v43 = vmul.f32 %v10224_v7, %v10224_v7 }
 0xfd8   : > { %v10240_v63 = vsub.f32 %v10114_v6, %v5114_v10  ;;  %5173 = vadd.xlane.f32.xlu1 %v5144_v43  ;;  %v5145_v18 = vmul.f32 %v10235_v27, %v10235_v27  ;;  %v10253_v6 = vld [vmem:[%s10802_s14] sm:$0xff]  }
 0xfd9   : > { %6859 = vmatpush3.bf16.msra.mxu0 %v10253_v6 }
 0xfda   : > { %5175 = vadd.xlane.f32.xlu0 %v5145_v18  ;;  %v5146_v26 = vmul.f32 %v10240_v63, %v10240_v63  ;;  %6860 = vmatprep.subr.bf16.mxu0 %v10258_v56 }
 0xfdc   : > { %5177 = vadd.xlane.f32.xlu1 %v5146_v26 }
 0xfdd   : > { %6861 = vmatpush3.bf16.msra.mxu0 %v10264_v16 }
 0xfde   : > { %6862 = vmatprep.subr.bf16.mxu0 %v10270_v54 }
 0xfe1   : > { %6863 = vmatpush3.bf16.msra.mxu0 %v10276_v8 }
 0xfe2   : > { %6864 = vmatprep.subr.bf16.mxu0 %v10282_v47 }
 0xfe5   : > { %6865 = vmatpush3.bf16.msra.mxu0 %v10288_v61 }
 0xfe6   : > { %6866 = vmatprep.subr.bf16.mxu0 %v10294_v53 }
 0xfe9   : > { %6867 = vmatpush3.bf16.msra.mxu0 %v10300_v1 }
 0xfea   : > { %6868 = vmatprep.subr.bf16.mxu0 %v10306_v24 }
0x103f   : > { %v5148_v57 = vpop.xlane.xlu0 %5147 }
0x1040   : > { %v5179_v25 = vmul.f32 0.0078125, %v5148_v57 }
0x1041   : > { %v5150_v41 = vpop.xlane.xlu1 %5149 }
0x1042   : > { %v5195_v40 = vadd.f32 1e-05, %v5179_v25  ;;  %v5180_v4 = vmul.f32 0.0078125, %v5150_v41 }
0x1043   : > { %v5152_v59 = vpop.xlane.xlu0 %5151 }
0x1044   : > { %8231 = vrsqrt.f32 %v5195_v40  ;;  %v5196_v39 = vadd.f32 1e-05, %v5180_v4  ;;  %v5181_v60 = vmul.f32 0.0078125, %v5152_v59 }
0x1046   : > { %8233 = vrsqrt.f32 %v5196_v39  ;;  %v5197_v21 = vadd.f32 1e-05, %v5181_v60 }
0x1047   : > { %v5154_v62 = vpop.xlane.xlu1 %5153 }
0x1048   : > { %8235 = vrsqrt.f32 %v5197_v21  ;;  %v5182_v23 = vmul.f32 0.0078125, %v5154_v62 }
0x104a   : > { %v5198_v36 = vadd.f32 1e-05, %v5182_v23 }
0x104b   : > { %v5156_v5 = vpop.xlane.xlu0 %5155 }
0x104c   : > { %8237 = vrsqrt.f32 %v5198_v36  ;;  %v5183_v15 = vmul.f32 0.0078125, %v5156_v5 }
0x104d   : > { %v5158_v55 = vpop.xlane.xlu1 %5157 }
0x104e   : > { %v8232_v35 = vpop.eup %8231  ;;  %v5199_v30 = vadd.f32 1e-05, %v5183_v15  ;;  %v5184_v2 = vmul.f32 0.0078125, %v5158_v55 }
0x104f   : > { %v5227_v13 = vmul.f32 %v8232_v35, %v10131_v50  ;;  %v5160_v9 = vpop.xlane.xlu0 %5159 }
0x1050   : > { %v8234_v46 = vpop.eup %8233  ;;  %8239 = vrsqrt.f32 %v5199_v30  ;;  %v5200_v12 = vadd.f32 1e-05, %v5184_v2  ;;  %v5185_v58 = vmul.f32 0.0078125, %v5160_v9 }
0x1051   : > { %v5249_v0 = vmul.f32 %v10313_v34, %v5227_v13  ;;  %v5228_v11 = vmul.f32 %v8234_v46, %v10134_v32  ;;  %v5162_v48 = vpop.xlane.xlu1 %5161 }
0x1052   : > { %v8236_v17 = vpop.eup %8235  ;;  %8241 = vrsqrt.f32 %v5200_v12  ;;  %v5186_v22 = vmul.f32 0.0078125, %v5162_v48  ;;  %v5201_v28 = vadd.f32 1e-05, %v5185_v58 }
0x1053   : > { %v5250_v50 = vmul.f32 %v10313_v34, %v5228_v11  ;;  %v10325_v10 = vadd.f32 %v10321_v20, %v5249_v0  ;;  %v5229_v32 = vmul.f32 %v8236_v17, %v10139_v3 }
0x1054   : > { %v5202_v42 = vadd.f32 1e-05, %v5186_v22 }
0x1055   : > { %v10328_v43 = vadd.f32 %v10321_v20, %v5250_v50  ;;  %v5251_v40 = vmul.f32 %v10313_v34, %v5229_v32 }
0x1056   : > { %v8238_v18 = vpop.eup %8237  ;;  %8243 = vrsqrt.f32 %v5202_v42 }
0x1057   : > { %v5164_v26 = vpop.xlane.xlu0 %5163  ;;  %v5287_v45 = vpack.c.bf16 %v10328_v43, %v10325_v10  ;;  %v5230_v57 = vmul.f32 %v8238_v18, %v10146_v37  ;;  %8245 = vrsqrt.f32 %v5201_v28  ;;  %v10343_v36 = vadd.f32 %v10321_v20, %v5251_v40 }
0x1058   : > { %v5187_v25 = vmul.f32 0.0078125, %v5164_v26 }
0x1059   : > { %v5166_v41 = vpop.xlane.xlu1 %5165  ;;  %5436 = vmatmul.mubr.bf16.vlgmr.msra.gmra.mrb[128].mxu1 %v5287_v45  ;;  %v5252_v4 = vmul.f32 %v10313_v34, %v5230_v57 }
0x105a   : > { %v8240_v59 = vpop.eup %8239  ;;  %v5188_v39 = vmul.f32 0.0078125, %v5166_v41  ;;  %5445 = vmatprep.mubr.bf16.mxu1 %v8395_v49  ;;  %7602 = vmatpush3.bf16.msra.mxu1 %v10253_v6  ;;  %v5203_v60 = vadd.f32 1e-05, %v5187_v25 }
0x105b   : > { %v10339_v3 = vadd.f32 %v10321_v20, %v5252_v4  ;;  %7595 = vmatprep.subr.bf16.mxu1 %v10258_v56  ;;  %v5168_v62 = vpop.xlane.xlu0 %5167  ;;  %v5231_v5 = vmul.f32 %v8240_v59, %v10151_v33 }
0x105c   : > { %v8242_v37 = vpop.eup %8241  ;;  %v5204_v21 = vadd.f32 1e-05, %v5188_v39  ;;  %v5189_v30 = vmul.f32 0.0078125, %v5168_v62 }
0x105d   : > { %v5170_v23 = vpop.xlane.xlu1 %5169  ;;  %v5232_v15 = vmul.f32 %v8242_v37, %v10154_v44  ;;  %v5288_v6 = vpack.c.bf16 %v10339_v3, %v10343_v36  ;;  %v5253_v2 = vmul.f32 %v10313_v34, %v5231_v5 }
0x105e   : > { %8247 = vrsqrt.f32 %v5204_v21  ;;  %v5190_v55 = vmul.f32 0.0078125, %v5170_v23  ;;  %7603 = vmatpush3.bf16.msra.mxu1 %v10264_v16 }
0x105f   : > { %v5254_v56 = vmul.f32 %v10313_v34, %v5232_v15  ;;  %7596 = vmatprep.subr.bf16.mxu1 %v10270_v54  ;;  %8249 = vrsqrt.f32 %v5203_v60  ;;  %v5205_v54 = vadd.f32 1e-05, %v5189_v30  ;;  %v10361_v12 = vadd.f32 %v10321_v20, %v5253_v2 }
0x1060   : > { %v8244_v35 = vpop.eup %8243  ;;  %v5206_v13 = vadd.f32 1e-05, %v5190_v55 }
0x1061   : > { %5446 = vmatmul.mubr.bf16.gmra.mrb[132].mxu1 %v5288_v6  ;;  %v8246_v33 = vpop.eup %8245  ;;  %v10356_v44 = vadd.f32 %v10321_v20, %v5254_v56  ;;  %v5234_v16 = vmul.f32 %v8244_v35, %v10164_v38 }
0x1062   : > { %5455 = vmatprep.mubr.bf16.mxu1 %v8395_v49  ;;  %7604 = vmatpush3.bf16.msra.mxu1 %v10276_v8  ;;  %v5233_v58 = vmul.f32 %v8246_v33, %v10159_v29  ;;  %8251 = vrsqrt.f32 %v5206_v13 }
0x1063   : > { %7597 = vmatprep.subr.bf16.mxu1 %v10282_v47  ;;  %v5172_v9 = vpop.xlane.xlu0 %5171  ;;  %v5289_v8 = vpack.c.bf16 %v10356_v44, %v10361_v12  ;;  %v5256_v11 = vmul.f32 %v10313_v34, %v5234_v16  ;;  %8253 = vrsqrt.f32 %v5205_v54 }
0x1064   : > { %v5191_v47 = vmul.f32 0.0078125, %v5172_v9  ;;  %v5255_v48 = vmul.f32 %v10313_v34, %v5233_v58  ;;  %v5313_v58 = vlaneseq }
0x1065   : > { %v5174_v46 = vpop.xlane.xlu1 %5173 }
0x1066   : > { %v5192_v0 = vmul.f32 0.0078125, %v5174_v46  ;;  %7605 = vmatpush3.bf16.msra.mxu1 %v10288_v61  ;;  %v10373_v61 = vadd.f32 %v10321_v20, %v5256_v11  ;;  %v10378_v42 = vadd.f32 %v10321_v20, %v5255_v48  ;;  %v7974_v46 = vld [vmem:[%s10802_s14 + $0x38] sm:$0xff]   ;;  %v5311_v11 = vld [vmem:[%s10801_s13] sm:$0x3] }
0x1067   : > { %7598 = vmatprep.subr.bf16.mxu1 %v10294_v53  ;;  %v5207_v53 = vadd.f32 1e-05, %v5191_v47  ;;  %v5176_v28 = vpop.xlane.xlu0 %5175 }
0x1068   : > { %v8248_v38 = vpop.eup %8247  ;;  %v5208_v22 = vadd.f32 1e-05, %v5192_v0  ;;  %v5193_v57 = vmul.f32 0.0078125, %v5176_v28  ;;  %v5314_v0 = vshrl.u32 %v5313_v58, 7 }
0x1069   : > { %5456 = vmatmul.mubr.bf16.gmra.mrb[136].mxu1 %v5289_v8  ;;  %v8250_v17 = vpop.eup %8249  ;;  %v5178_v29 = vpop.xlane.xlu1 %5177  ;;  %v5236_v50 = vmul.f32 %v8248_v38, %v10186_v52 }
0x106a   : > { %5465 = vmatprep.mubr.bf16.mxu1 %v8395_v49  ;;  %7606 = vmatpush3.bf16.msra.mxu1 %v10300_v1  ;;  %v5235_v32 = vmul.f32 %v8250_v17, %v10183_v14  ;;  %8255 = vrsqrt.f32 %v5208_v22  ;;  %v5194_v18 = vmul.f32 0.0078125, %v5178_v29  ;;  %v5290_v1 = vpack.c.bf16 %v10373_v61, %v10378_v42 }
0x106b   : > { %7599 = vmatprep.subr.bf16.mxu1 %v10306_v24  ;;  %v5258_v26 = vmul.f32 %v10313_v34, %v5236_v50  ;;  %8257 = vrsqrt.f32 %v5207_v53  ;;  %v5209_v40 = vadd.f32 1e-05, %v5193_v57  ;;  %v5315_v8 = vsub.s32 0, %v5314_v0 }
0x106c   : > { %v8252_v45 = vpop.eup %8251  ;;  %v5257_v52 = vmul.f32 %v10313_v34, %v5235_v32  ;;  %v5210_v25 = vadd.f32 1e-05, %v5194_v18  ;;  %v5319_v38 = vsub.s32 1, %v5314_v0 }
0x106d   : > { %v8254_v24 = vpop.eup %8253  ;;  %v10387_v41 = vadd.f32 %v10321_v20, %v5258_v26  ;;  %v5238_v14 = vmul.f32 %v8252_v45, %v10202_v51  ;;  %v10451_v47 = vrot.slane %v5311_v11, %v5315_v8 }
0x106e   : > { %v10391_v4 = vadd.f32 %v10321_v20, %v5257_v52  ;;  %v5237_v59 = vmul.f32 %v8254_v24, %v10197_v19  ;;  %8259 = vrsqrt.f32 %v5210_v25  ;;  %v10453_v48 = vrot.slane %v5311_v11, %v5319_v38 }
0x106f   : > { %v5260_v37 = vmul.f32 %v10313_v34, %v5238_v14  ;;  %8261 = vrsqrt.f32 %v5209_v40 }
0x1070   : > { %v5291_v39 = vpack.c.bf16 %v10387_v41, %v10391_v4  ;;  %v5259_v21 = vmul.f32 %v10313_v34, %v5237_v59 }
0x1071   : > { %5466 = vmatmul.mubr.bf16.gmra.mrb[140].mxu1 %v5290_v1  ;;  %v10400_v51 = vadd.f32 %v10321_v20, %v5260_v37 }
0x1072   : > { %5475 = vmatprep.mubr.bf16.mxu1 %v8395_v49  ;;  %v10404_v19 = vadd.f32 %v10321_v20, %v5259_v21 }
0x1074   : > { %v8256_v60 = vpop.eup %8255  ;;  %v5292_v15 = vpack.c.bf16 %v10400_v51, %v10404_v19 }
0x1075   : > { %v8258_v62 = vpop.eup %8257  ;;  %v5240_v23 = vmul.f32 %v8256_v60, %v10224_v7 }
0x1076   : > { %v5239_v5 = vmul.f32 %v8258_v62, %v10221_v31 }
0x1077   : > { %v5262_v55 = vmul.f32 %v10313_v34, %v5240_v23 }
0x1078   : > { %v8260_v6 = vpop.eup %8259  ;;  %v5261_v56 = vmul.f32 %v10313_v34, %v5239_v5 }
0x1079   : > { %5476 = vmatmul.mubr.bf16.gmra.mrb[144].mxu1 %v5291_v39  ;;  %v8262_v35 = vpop.eup %8261  ;;  %v10413_v30 = vadd.f32 %v10321_v20, %v5262_v55  ;;  %v5242_v7 = vmul.f32 %v8260_v6, %v10240_v63 }
0x107a   : > { %5485 = vmatprep.mubr.bf16.mxu1 %v8395_v49  ;;  %v10417_v2 = vadd.f32 %v10321_v20, %v5261_v56  ;;  %v5241_v31 = vmul.f32 %v8262_v35, %v10235_v27  ;;  %v7970_v27 = vld [vmem:[%s10802_s14 + $0x28] sm:$0xff]  }
0x107b   : > { %v5264_v13 = vmul.f32 %v10313_v34, %v5242_v7  ;;  %6869 = vmatpush3.bf16.msra.mxu0 %v7970_v27  ;;  %7607 = vmatpush3.bf16.msra.mxu1 %v7970_v27 }
0x107c   : > { %v5293_v33 = vpack.c.bf16 %v10413_v30, %v10417_v2  ;;  %v5263_v16 = vmul.f32 %v10313_v34, %v5241_v31  ;;  %v7972_v34 = vld [vmem:[%s10802_s14 + $0x30] sm:$0xff]  }
0x107d   : > { %v10426_v54 = vadd.f32 %v10321_v20, %v5264_v13 }
0x107e   : > { %v10429_v63 = vadd.f32 %v10321_v20, %v5263_v16  ;;  %v7973_v20 = vld [vmem:[%s10802_s14 + $0x78] sm:$0xff]  }
0x1080   : > { %v5294_v9 = vpack.c.bf16 %v10426_v54, %v10429_v63 }
0x1081   : > { %5486 = vmatmul.mubr.bf16.gmra.mrb[148].mxu1 %v5292_v15 }
0x1082   : > { %5495 = vmatprep.mubr.bf16.mxu1 %v8395_v49 }
0x1089   : > { %5496 = vmatmul.mubr.bf16.gmra.mrb[152].mxu1 %v5293_v33 }
0x108a   : > { %5505 = vmatprep.mubr.bf16.mxu1 %v8395_v49  ;;  %v7971_v49 = vld [vmem:[%s10802_s14 + $0x70] sm:$0xff]  }
0x108b   : > { %6870 = vmatprep.subr.bf16.mxu0 %v7971_v49  ;;  %7600 = vmatprep.subr.bf16.mxu1 %v7971_v49 }
0x108c   : > { %6871 = vmatpush3.bf16.msra.mxu0 %v7972_v34  ;;  %7608 = vmatpush3.bf16.msra.mxu1 %v7972_v34 }
0x108d   : > { %6872 = vmatprep.subr.bf16.mxu0 %v7973_v20  ;;  %7601 = vmatprep.subr.bf16.mxu1 %v7973_v20 }
0x1090   : > { %6873 = vmatpush3.bf16.msra.mxu0 %v7974_v46  ;;  %7609 = vmatpush3.bf16.msra.mxu1 %v7974_v46 }
0x1091   : > { %5506 = vmatmul.mubr.bf16.gmra.mrb[156].mxu1 %v5294_v9 }
0x112c   : > { %v5437_v17 = vpop.f32.mrb[128].mxu1 }
0x112d   : > { %v5438_v22 = vadd.f32 %v5437_v17, %v10451_v47  ;;  %v5439_v29 = vpop.f32.mrb[129].mxu1 }
0x112e   : > { %v5440_v50 = vadd.f32 %v5439_v29, %v10453_v48  ;;  %v5441_v53 = vpop.f32.mrb[130].mxu1 }
0x112f   : > { %v5442_v28 = vadd.f32 %v5441_v53, %v10451_v47  ;;  %v5443_v32 = vpop.f32.mrb[131].mxu1  ;;  %v5516_v1 = vmax.f32 %v5438_v22, 0.0 }
0x1130   : > { %v5444_v18 = vadd.f32 %v5443_v32, %v10453_v48  ;;  %v5517_v45 = vmax.f32 %v5440_v50, 0.0 }
0x1131   : > { %v5518_v26 = vmax.f32 %v5442_v28, 0.0 }
0x1132   : > { %v5519_v57 = vmax.f32 %v5444_v18, 0.0 }
0x1133   : > { %v5548_v52 = vpack.c.bf16 %v5518_v26, %v5516_v1 }
0x1134   : > { %v5549_v24 = vpack.c.bf16 %v5519_v57, %v5517_v45  ;;  %v5447_v25 = vpop.f32.mrb[132].mxu1 }
0x1135   : > { %v5448_v14 = vadd.f32 %v5447_v25, %v10451_v47  ;;  %v5449_v40 = vpop.f32.mrb[133].mxu1 }
0x1136   : > { %v5450_v59 = vadd.f32 %v5449_v40, %v10453_v48  ;;  %v5451_v39 = vpop.f32.mrb[134].mxu1  ;;  %5731 = vmatprep.mubr.bf16.mxu0 %v5549_v24 }
0x1137   : > { %v5452_v37 = vadd.f32 %v5451_v39, %v10451_v47  ;;  %v5453_v60 = vpop.f32.mrb[135].mxu1  ;;  %5732 = vmatmul.mubr.bf16.vlgmr.msra.gmra.mrb[208].mxu0 %v5548_v52  ;;  %v5520_v62 = vmax.f32 %v5448_v14, 0.0 }
0x1138   : > { %v5454_v21 = vadd.f32 %v5453_v60, %v10453_v48  ;;  %v5521_v5 = vmax.f32 %v5450_v59, 0.0 }
0x1139   : > { %v5522_v23 = vmax.f32 %v5452_v37, 0.0 }
0x113a   : > { %v5523_v15 = vmax.f32 %v5454_v21, 0.0 }
0x113b   : > { %v5550_v55 = vpack.c.bf16 %v5522_v23, %v5520_v62 }
0x113c   : > { %v5551_v6 = vpack.c.bf16 %v5523_v15, %v5521_v5  ;;  %v5457_v56 = vpop.f32.mrb[136].mxu1 }
0x113d   : > { %v5458_v35 = vadd.f32 %v5457_v56, %v10451_v47  ;;  %v5459_v7 = vpop.f32.mrb[137].mxu1 }
0x113e   : > { %v5460_v31 = vadd.f32 %v5459_v7, %v10453_v48  ;;  %v5461_v33 = vpop.f32.mrb[138].mxu1  ;;  %5739 = vmatprep.mubr.bf16.mxu0 %v5551_v6 }
0x113f   : > { %v5462_v13 = vadd.f32 %v5461_v33, %v10451_v47  ;;  %v5463_v16 = vpop.f32.mrb[139].mxu1  ;;  %5740 = vmatmul.mubr.bf16.gmra.mrb[212].mxu0 %v5550_v55  ;;  %v5524_v27 = vmax.f32 %v5458_v35, 0.0 }
0x1140   : > { %v5464_v9 = vadd.f32 %v5463_v16, %v10453_v48  ;;  %v5525_v34 = vmax.f32 %v5460_v31, 0.0 }
0x1141   : > { %v5526_v49 = vmax.f32 %v5462_v13, 0.0 }
0x1142   : > { %v5527_v20 = vmax.f32 %v5464_v9, 0.0 }
0x1143   : > { %v5552_v46 = vpack.c.bf16 %v5526_v49, %v5524_v27 }
0x1144   : > { %v5553_v58 = vpack.c.bf16 %v5527_v20, %v5525_v34  ;;  %v5467_v0 = vpop.f32.mrb[140].mxu1 }
0x1145   : > { %v5468_v8 = vadd.f32 %v5467_v0, %v10451_v47  ;;  %v5469_v11 = vpop.f32.mrb[141].mxu1 }
0x1146   : > { %v5470_v38 = vadd.f32 %v5469_v11, %v10453_v48  ;;  %v5471_v17 = vpop.f32.mrb[142].mxu1  ;;  %5747 = vmatprep.mubr.bf16.mxu0 %v5553_v58 }
0x1147   : > { %v5472_v22 = vadd.f32 %v5471_v17, %v10451_v47  ;;  %v5473_v29 = vpop.f32.mrb[143].mxu1  ;;  %5748 = vmatmul.mubr.bf16.gmra.mrb[216].mxu0 %v5552_v46  ;;  %v5528_v53 = vmax.f32 %v5468_v8, 0.0 }
0x1148   : > { %v5474_v50 = vadd.f32 %v5473_v29, %v10453_v48  ;;  %v5529_v32 = vmax.f32 %v5470_v38, 0.0 }
0x1149   : > { %v5530_v28 = vmax.f32 %v5472_v22, 0.0 }
0x114a   : > { %v5531_v18 = vmax.f32 %v5474_v50, 0.0 }
0x114b   : > { %v5554_v1 = vpack.c.bf16 %v5530_v28, %v5528_v53 }
0x114c   : > { %v5555_v26 = vpack.c.bf16 %v5531_v18, %v5529_v32  ;;  %v5477_v45 = vpop.f32.mrb[144].mxu1 }
0x114d   : > { %v5478_v57 = vadd.f32 %v5477_v45, %v10451_v47  ;;  %v5479_v52 = vpop.f32.mrb[145].mxu1 }
0x114e   : > { %v5480_v24 = vadd.f32 %v5479_v52, %v10453_v48  ;;  %v5481_v25 = vpop.f32.mrb[146].mxu1  ;;  %5755 = vmatprep.mubr.bf16.mxu0 %v5555_v26 }
0x114f   : > { %v5482_v14 = vadd.f32 %v5481_v25, %v10451_v47  ;;  %v5483_v40 = vpop.f32.mrb[147].mxu1  ;;  %5756 = vmatmul.mubr.bf16.gmra.mrb[220].mxu0 %v5554_v1  ;;  %v5532_v39 = vmax.f32 %v5478_v57, 0.0 }
0x1150   : > { %v5484_v59 = vadd.f32 %v5483_v40, %v10453_v48  ;;  %v5533_v60 = vmax.f32 %v5480_v24, 0.0 }
0x1151   : > { %v5534_v37 = vmax.f32 %v5482_v14, 0.0 }
0x1152   : > { %v5535_v21 = vmax.f32 %v5484_v59, 0.0 }
0x1153   : > { %v5556_v62 = vpack.c.bf16 %v5534_v37, %v5532_v39 }
0x1154   : > { %v5557_v23 = vpack.c.bf16 %v5535_v21, %v5533_v60  ;;  %v5487_v5 = vpop.f32.mrb[148].mxu1  ;;  %v10490_v21 = vld [vmem:[%s10803_s15] ss:$0 sm:$0xff] }
0x1155   : > { %v5488_v15 = vadd.f32 %v5487_v5, %v10451_v47  ;;  %v5489_v55 = vpop.f32.mrb[149].mxu1 }
0x1156   : > { %v5490_v6 = vadd.f32 %v5489_v55, %v10453_v48  ;;  %v5491_v56 = vpop.f32.mrb[150].mxu1  ;;  %5763 = vmatprep.mubr.bf16.mxu0 %v5557_v23 }
0x1157   : > { %v5492_v35 = vadd.f32 %v5491_v56, %v10451_v47  ;;  %v5493_v7 = vpop.f32.mrb[151].mxu1  ;;  %5764 = vmatmul.mubr.bf16.gmra.mrb[224].mxu0 %v5556_v62  ;;  %v5536_v33 = vmax.f32 %v5488_v15, 0.0 }
0x1158   : > { %v5494_v31 = vadd.f32 %v5493_v7, %v10453_v48  ;;  %v5537_v16 = vmax.f32 %v5490_v6, 0.0 }
0x1159   : > { %v5538_v13 = vmax.f32 %v5492_v35, 0.0 }
0x115a   : > { %v5539_v9 = vmax.f32 %v5494_v31, 0.0 }
0x115b   : > { %v5558_v27 = vpack.c.bf16 %v5538_v13, %v5536_v33 }
0x115c   : > { %v5559_v49 = vpack.c.bf16 %v5539_v9, %v5537_v16  ;;  %v5497_v34 = vpop.f32.mrb[152].mxu1 }
0x115d   : > { %v5498_v20 = vadd.f32 %v5497_v34, %v10451_v47  ;;  %v5499_v46 = vpop.f32.mrb[153].mxu1 }
0x115e   : > { %v5500_v58 = vadd.f32 %v5499_v46, %v10453_v48  ;;  %v5501_v0 = vpop.f32.mrb[154].mxu1  ;;  %5771 = vmatprep.mubr.bf16.mxu0 %v5559_v49 }
0x115f   : > { %v5502_v8 = vadd.f32 %v5501_v0, %v10451_v47  ;;  %v5503_v11 = vpop.f32.mrb[155].mxu1  ;;  %5772 = vmatmul.mubr.bf16.gmra.mrb[228].mxu0 %v5558_v27  ;;  %v5540_v17 = vmax.f32 %v5498_v20, 0.0 }
0x1160   : > { %v5504_v38 = vadd.f32 %v5503_v11, %v10453_v48  ;;  %v5541_v29 = vmax.f32 %v5500_v58, 0.0 }
0x1161   : > { %v5542_v22 = vmax.f32 %v5502_v8, 0.0 }
0x1162   : > { %v5543_v50 = vmax.f32 %v5504_v38, 0.0 }
0x1163   : > { %v5560_v53 = vpack.c.bf16 %v5542_v22, %v5540_v17 }
0x1164   : > { %v5561_v28 = vpack.c.bf16 %v5543_v50, %v5541_v29  ;;  %v5507_v32 = vpop.f32.mrb[156].mxu1 }
0x1165   : > { %v5508_v18 = vadd.f32 %v5507_v32, %v10451_v47  ;;  %v5509_v1 = vpop.f32.mrb[157].mxu1 }
0x1166   : > { %v5510_v26 = vadd.f32 %v5509_v1, %v10453_v48  ;;  %v5511_v45 = vpop.f32.mrb[158].mxu1  ;;  %5779 = vmatprep.mubr.bf16.mxu1 %v5561_v28 }
0x1167   : > { %v5512_v57 = vadd.f32 %v5511_v45, %v10451_v47  ;;  %v5513_v52 = vpop.f32.mrb[159].mxu1  ;;  %5780 = vmatmul.mubr.bf16.vlgmr.msra.gmra.mrb[160].mxu1 %v5560_v53  ;;  %v5544_v25 = vmax.f32 %v5508_v18, 0.0 }
0x1168   : > { %v5514_v24 = vadd.f32 %v5513_v52, %v10453_v48  ;;  %v5545_v40 = vmax.f32 %v5510_v26, 0.0 }
0x1169   : > { %v5546_v14 = vmax.f32 %v5512_v57, 0.0 }
0x116a   : > { %v5547_v59 = vmax.f32 %v5514_v24, 0.0 }
0x116b   : > { %v5562_v39 = vpack.c.bf16 %v5546_v14, %v5544_v25 }
0x116c   : > { %v5563_v37 = vpack.c.bf16 %v5547_v59, %v5545_v40 }
0x116e   : > { %5787 = vmatprep.mubr.bf16.mxu1 %v5563_v37 }
0x116f   : > { %5788 = vmatmul.mubr.bf16.gmra.mrb[164].mxu1 %v5562_v39 }
0x120a   : > { %v6874_v60 = vpop.f32.mrb[208].mxu0 }
0x120b   : > { %v6875_v62 = vpop.f32.mrb[209].mxu0 }
0x120c   : > { %v6876_v47 = vadd.f32 %v6875_v62, %v6874_v60  ;;  %v6877_v23 = vpop.f32.mrb[210].mxu0 }
0x120d   : > { %v6878_v5 = vpop.f32.mrb[211].mxu0 }
0x120e   : > { %v5734_v48 = vadd.f32 %v6876_v47, %v10490_v21  ;;  %v6879_v15 = vadd.f32 %v6878_v5, %v6877_v23 }
0x1210   : > { %v5737_v55 = vadd.f32 %v6879_v15, %v10490_v21  ;;  %v10495_v6 = vadd.f32 %v5734_v48, %v10325_v10 }
0x1212   : > { %5814 = vadd.xlane.f32.xlu0 %v10495_v6  ;;  %v6880_v56 = vpop.f32.mrb[212].mxu0  ;;  %v10499_v35 = vadd.f32 %v5737_v55, %v10328_v43 }
0x1213   : > { %v6881_v7 = vpop.f32.mrb[213].mxu0 }
0x1214   : > { %v6882_v31 = vadd.f32 %v6881_v7, %v6880_v56  ;;  %5816 = vadd.xlane.f32.xlu1 %v10499_v35  ;;  %v6883_v33 = vpop.f32.mrb[214].mxu0 }
0x1215   : > { %v6884_v13 = vpop.f32.mrb[215].mxu0 }
0x1216   : > { %v5742_v16 = vadd.f32 %v6882_v31, %v10490_v21  ;;  %v6885_v9 = vadd.f32 %v6884_v13, %v6883_v33 }
0x1218   : > { %v5745_v27 = vadd.f32 %v6885_v9, %v10490_v21  ;;  %v10505_v10 = vadd.f32 %v5742_v16, %v10343_v36 }
0x121a   : > { %5818 = vadd.xlane.f32.xlu0 %v10505_v10  ;;  %v6886_v49 = vpop.f32.mrb[216].mxu0  ;;  %v10509_v43 = vadd.f32 %v5745_v27, %v10339_v3 }
0x121b   : > { %v6887_v34 = vpop.f32.mrb[217].mxu0 }
0x121c   : > { %v6888_v20 = vadd.f32 %v6887_v34, %v6886_v49  ;;  %5820 = vadd.xlane.f32.xlu1 %v10509_v43  ;;  %v6889_v46 = vpop.f32.mrb[218].mxu0 }
0x121d   : > { %v6890_v58 = vpop.f32.mrb[219].mxu0 }
0x121e   : > { %v5750_v0 = vadd.f32 %v6888_v20, %v10490_v21  ;;  %v6891_v8 = vadd.f32 %v6890_v58, %v6889_v46 }
0x1220   : > { %v5753_v11 = vadd.f32 %v6891_v8, %v10490_v21  ;;  %v10515_v36 = vadd.f32 %v5750_v0, %v10361_v12 }
0x1222   : > { %5822 = vadd.xlane.f32.xlu0 %v10515_v36  ;;  %v6892_v38 = vpop.f32.mrb[220].mxu0  ;;  %v10519_v3 = vadd.f32 %v5753_v11, %v10356_v44 }
0x1223   : > { %v6893_v17 = vpop.f32.mrb[221].mxu0 }
0x1224   : > { %v6894_v22 = vadd.f32 %v6893_v17, %v6892_v38  ;;  %5824 = vadd.xlane.f32.xlu1 %v10519_v3  ;;  %v6895_v29 = vpop.f32.mrb[222].mxu0 }
0x1225   : > { %v6896_v50 = vpop.f32.mrb[223].mxu0 }
0x1226   : > { %v5758_v53 = vadd.f32 %v6894_v22, %v10490_v21  ;;  %v6897_v28 = vadd.f32 %v6896_v50, %v6895_v29 }
0x1228   : > { %v5761_v32 = vadd.f32 %v6897_v28, %v10490_v21  ;;  %v10525_v12 = vadd.f32 %v5758_v53, %v10378_v42 }
0x122a   : > { %5826 = vadd.xlane.f32.xlu0 %v10525_v12  ;;  %v6898_v18 = vpop.f32.mrb[224].mxu0  ;;  %v10529_v44 = vadd.f32 %v5761_v32, %v10373_v61 }
0x122b   : > { %v6899_v1 = vpop.f32.mrb[225].mxu0 }
0x122c   : > { %v6900_v26 = vadd.f32 %v6899_v1, %v6898_v18  ;;  %5828 = vadd.xlane.f32.xlu1 %v10529_v44  ;;  %v6901_v45 = vpop.f32.mrb[226].mxu0 }
0x122d   : > { %v6902_v57 = vpop.f32.mrb[227].mxu0 }
0x122e   : > { %v5766_v52 = vadd.f32 %v6900_v26, %v10490_v21  ;;  %v6903_v24 = vadd.f32 %v6902_v57, %v6901_v45 }
0x1230   : > { %v5769_v25 = vadd.f32 %v6903_v24, %v10490_v21  ;;  %v10535_v42 = vadd.f32 %v5766_v52, %v10391_v4 }
0x1232   : > { %5830 = vadd.xlane.f32.xlu0 %v10535_v42  ;;  %v6904_v14 = vpop.f32.mrb[228].mxu0  ;;  %v10539_v61 = vadd.f32 %v5769_v25, %v10387_v41 }
0x1233   : > { %v6905_v40 = vpop.f32.mrb[229].mxu0 }
0x1234   : > { %v6906_v59 = vadd.f32 %v6905_v40, %v6904_v14  ;;  %5832 = vadd.xlane.f32.xlu1 %v10539_v61  ;;  %v6907_v39 = vpop.f32.mrb[230].mxu0 }
0x1235   : > { %v6908_v37 = vpop.f32.mrb[231].mxu0 }
0x1236   : > { %v5774_v60 = vadd.f32 %v6906_v59, %v10490_v21  ;;  %v6909_v62 = vadd.f32 %v6908_v37, %v6907_v39 }
0x1238   : > { %v5777_v47 = vadd.f32 %v6909_v62, %v10490_v21  ;;  %v10545_v4 = vadd.f32 %v5774_v60, %v10404_v19 }
0x123a   : > { %5834 = vadd.xlane.f32.xlu0 %v10545_v4  ;;  %v6910_v23 = vpop.f32.mrb[160].mxu1  ;;  %v10549_v41 = vadd.f32 %v5777_v47, %v10400_v51 }
0x123b   : > { %v6911_v5 = vpop.f32.mrb[161].mxu1 }
0x123c   : > { %v6912_v48 = vadd.f32 %v6911_v5, %v6910_v23  ;;  %5836 = vadd.xlane.f32.xlu1 %v10549_v41  ;;  %v6913_v15 = vpop.f32.mrb[162].mxu1 }
0x123d   : > { %v6914_v55 = vpop.f32.mrb[163].mxu1 }
0x123e   : > { %v5782_v56 = vadd.f32 %v6912_v48, %v10490_v21  ;;  %v6915_v7 = vadd.f32 %v6914_v55, %v6913_v15 }
0x1240   : > { %v5785_v31 = vadd.f32 %v6915_v7, %v10490_v21  ;;  %v10555_v19 = vadd.f32 %v5782_v56, %v10417_v2 }
0x1242   : > { %5838 = vadd.xlane.f32.xlu0 %v10555_v19  ;;  %v6916_v33 = vpop.f32.mrb[164].mxu1  ;;  %v10559_v51 = vadd.f32 %v5785_v31, %v10413_v30 }
0x1243   : > { %v6917_v13 = vpop.f32.mrb[165].mxu1 }
0x1244   : > { %v6918_v16 = vadd.f32 %v6917_v13, %v6916_v33  ;;  %5840 = vadd.xlane.f32.xlu1 %v10559_v51  ;;  %v6919_v9 = vpop.f32.mrb[166].mxu1 }
0x1245   : > { %v6920_v27 = vpop.f32.mrb[167].mxu1 }
0x1246   : > { %v5790_v49 = vadd.f32 %v6918_v16, %v10490_v21  ;;  %v6921_v34 = vadd.f32 %v6920_v27, %v6919_v9 }
0x1248   : > { %v5793_v20 = vadd.f32 %v6921_v34, %v10490_v21  ;;  %v10565_v2 = vadd.f32 %v5790_v49, %v10429_v63 }
0x124a   : > { %5842 = vadd.xlane.f32.xlu0 %v10565_v2  ;;  %v10569_v46 = vadd.f32 %v5793_v20, %v10426_v54 }
0x124c   : > { %5844 = vadd.xlane.f32.xlu1 %v10569_v46 }
0x129f   : > { %v5815_v30 = vpop.xlane.xlu0 %5814 }
0x12a0   : > { %v5846_v58 = vmul.f32 0.0078125, %v5815_v30 }
0x12a1   : > { %v5817_v0 = vpop.xlane.xlu1 %5816 }
0x12a2   : > { %v10573_v8 = vsub.f32 %v10495_v6, %v5846_v58  ;;  %v5847_v11 = vmul.f32 0.0078125, %v5817_v0 }
0x12a4   : > { %v10576_v38 = vsub.f32 %v10499_v35, %v5847_v11  ;;  %v5878_v63 = vmul.f32 %v10573_v8, %v10573_v8 }
0x12a6   : > { %5894 = vadd.xlane.f32.xlu0 %v5878_v63  ;;  %v5879_v54 = vmul.f32 %v10576_v38, %v10576_v38 }
0x12a7   : > { %v5819_v21 = vpop.xlane.xlu0 %5818 }
0x12a8   : > { %v5848_v17 = vmul.f32 0.0078125, %v5819_v21  ;;  %5896 = vadd.xlane.f32.xlu1 %v5879_v54 }
0x12a9   : > { %v5821_v22 = vpop.xlane.xlu1 %5820 }
0x12aa   : > { %v10583_v29 = vsub.f32 %v10505_v10, %v5848_v17  ;;  %v5849_v6 = vmul.f32 0.0078125, %v5821_v22 }
0x12ac   : > { %v10586_v50 = vsub.f32 %v10509_v43, %v5849_v6  ;;  %v5880_v35 = vmul.f32 %v10583_v29, %v10583_v29 }
0x12ae   : > { %5898 = vadd.xlane.f32.xlu0 %v5880_v35  ;;  %v5881_v53 = vmul.f32 %v10586_v50, %v10586_v50 }
0x12af   : > { %v5823_v28 = vpop.xlane.xlu0 %5822 }
0x12b0   : > { %v5850_v32 = vmul.f32 0.0078125, %v5823_v28  ;;  %5900 = vadd.xlane.f32.xlu1 %v5881_v53 }
0x12b1   : > { %v5825_v18 = vpop.xlane.xlu1 %5824 }
0x12b2   : > { %v10593_v1 = vsub.f32 %v10515_v36, %v5850_v32  ;;  %v5851_v10 = vmul.f32 0.0078125, %v5825_v18  ;;  %v10656_v32 = vld [vmem:[%s10804_s16] ss:$0 sm:$0xff] }
0x12b4   : > { %v10596_v26 = vsub.f32 %v10519_v3, %v5851_v10  ;;  %v5882_v43 = vmul.f32 %v10593_v1, %v10593_v1 }
0x12b6   : > { %5902 = vadd.xlane.f32.xlu0 %v5882_v43  ;;  %v5883_v45 = vmul.f32 %v10596_v26, %v10596_v26 }
0x12b7   : > { %v5827_v57 = vpop.xlane.xlu0 %5826 }
0x12b8   : > { %v5852_v52 = vmul.f32 0.0078125, %v5827_v57  ;;  %5904 = vadd.xlane.f32.xlu1 %v5883_v45  ;;  %v10664_v45 = vld [vmem:[%s10805_s17] ss:$0 sm:$0xff] }
0x12b9   : > { %v5829_v24 = vpop.xlane.xlu1 %5828 }
0x12ba   : > { %v10603_v25 = vsub.f32 %v10525_v12, %v5852_v52  ;;  %v5853_v36 = vmul.f32 0.0078125, %v5829_v24 }
0x12bc   : > { %v10606_v14 = vsub.f32 %v10529_v44, %v5853_v36  ;;  %v5884_v3 = vmul.f32 %v10603_v25, %v10603_v25 }
0x12be   : > { %5906 = vadd.xlane.f32.xlu0 %v5884_v3  ;;  %v5885_v40 = vmul.f32 %v10606_v14, %v10606_v14 }
0x12bf   : > { %v5831_v59 = vpop.xlane.xlu0 %5830 }
0x12c0   : > { %v5854_v39 = vmul.f32 0.0078125, %v5831_v59  ;;  %5908 = vadd.xlane.f32.xlu1 %v5885_v40 }
0x12c1   : > { %v5833_v37 = vpop.xlane.xlu1 %5832 }
0x12c2   : > { %v10613_v60 = vsub.f32 %v10535_v42, %v5854_v39  ;;  %v5855_v12 = vmul.f32 0.0078125, %v5833_v37 }
0x12c4   : > { %v10616_v62 = vsub.f32 %v10539_v61, %v5855_v12  ;;  %v5886_v44 = vmul.f32 %v10613_v60, %v10613_v60 }
0x12c6   : > { %5910 = vadd.xlane.f32.xlu0 %v5886_v44  ;;  %v5887_v47 = vmul.f32 %v10616_v62, %v10616_v62 }
0x12c7   : > { %v5835_v23 = vpop.xlane.xlu0 %5834 }
0x12c8   : > { %v5856_v5 = vmul.f32 0.0078125, %v5835_v23  ;;  %5912 = vadd.xlane.f32.xlu1 %v5887_v47 }
0x12c9   : > { %v5837_v48 = vpop.xlane.xlu1 %5836 }
0x12ca   : > { %v10623_v15 = vsub.f32 %v10545_v4, %v5856_v5  ;;  %v5857_v42 = vmul.f32 0.0078125, %v5837_v48 }
0x12cc   : > { %v10626_v55 = vsub.f32 %v10549_v41, %v5857_v42  ;;  %v5888_v61 = vmul.f32 %v10623_v15, %v10623_v15 }
0x12ce   : > { %5914 = vadd.xlane.f32.xlu0 %v5888_v61  ;;  %v5889_v56 = vmul.f32 %v10626_v55, %v10626_v55 }
0x12cf   : > { %v5839_v7 = vpop.xlane.xlu0 %5838 }
0x12d0   : > { %v5858_v31 = vmul.f32 0.0078125, %v5839_v7  ;;  %5916 = vadd.xlane.f32.xlu1 %v5889_v56 }
0x12d1   : > { %v5841_v33 = vpop.xlane.xlu1 %5840 }
0x12d2   : > { %v10633_v13 = vsub.f32 %v10555_v19, %v5858_v31  ;;  %v5859_v4 = vmul.f32 0.0078125, %v5841_v33 }
0x12d4   : > { %v10636_v16 = vsub.f32 %v10559_v51, %v5859_v4  ;;  %v5890_v41 = vmul.f32 %v10633_v13, %v10633_v13 }
0x12d6   : > { %5918 = vadd.xlane.f32.xlu0 %v5890_v41  ;;  %v5891_v9 = vmul.f32 %v10636_v16, %v10636_v16 }
0x12d7   : > { %v5843_v27 = vpop.xlane.xlu0 %5842 }
0x12d8   : > { %v5860_v49 = vmul.f32 0.0078125, %v5843_v27  ;;  %5920 = vadd.xlane.f32.xlu1 %v5891_v9 }
0x12d9   : > { %v5845_v34 = vpop.xlane.xlu1 %5844 }
0x12da   : > { %v10643_v20 = vsub.f32 %v10565_v2, %v5860_v49  ;;  %v5861_v19 = vmul.f32 0.0078125, %v5845_v34 }
0x12dc   : > { %v10646_v30 = vsub.f32 %v10569_v46, %v5861_v19  ;;  %v5892_v51 = vmul.f32 %v10643_v20, %v10643_v20 }
0x12de   : > { %5922 = vadd.xlane.f32.xlu0 %v5892_v51  ;;  %v5893_v58 = vmul.f32 %v10646_v30, %v10646_v30 }
0x12e0   : > { %5924 = vadd.xlane.f32.xlu1 %v5893_v58 }
0x1333   : > { %v5895_v0 = vpop.xlane.xlu0 %5894 }
0x1334   : > { %v5926_v11 = vmul.f32 0.0078125, %v5895_v0 }
0x1335   : > { %v5897_v63 = vpop.xlane.xlu1 %5896 }
0x1336   : > { %v5942_v54 = vadd.f32 1e-05, %v5926_v11  ;;  %v5927_v2 = vmul.f32 0.0078125, %v5897_v63 }
0x1338   : > { %8263 = vrsqrt.f32 %v5942_v54  ;;  %v5943_v21 = vadd.f32 1e-05, %v5927_v2 }
0x133a   : > { %8265 = vrsqrt.f32 %v5943_v21 }
0x133b   : > { %v5899_v46 = vpop.xlane.xlu0 %5898 }
0x133c   : > { %v5928_v17 = vmul.f32 0.0078125, %v5899_v46 }
0x133d   : > { %v5901_v22 = vpop.xlane.xlu1 %5900 }
0x133e   : > { %v5944_v6 = vadd.f32 1e-05, %v5928_v17  ;;  %v5929_v35 = vmul.f32 0.0078125, %v5901_v22 }
0x1340   : > { %8267 = vrsqrt.f32 %v5944_v6  ;;  %v5945_v53 = vadd.f32 1e-05, %v5929_v35 }
0x1342   : > { %v8264_v28 = vpop.eup %8263  ;;  %8269 = vrsqrt.f32 %v5945_v53 }
0x1343   : > { %v5974_v18 = vmul.f32 %v8264_v28, %v10573_v8  ;;  %v5903_v10 = vpop.xlane.xlu0 %5902 }
0x1344   : > { %v8266_v43 = vpop.eup %8265  ;;  %v5930_v57 = vmul.f32 0.0078125, %v5903_v10 }
0x1345   : > { %v5996_v52 = vmul.f32 %v10656_v32, %v5974_v18  ;;  %v5975_v24 = vmul.f32 %v8266_v43, %v10576_v38  ;;  %v5905_v36 = vpop.xlane.xlu1 %5904 }
0x1346   : > { %v5946_v3 = vadd.f32 1e-05, %v5930_v57  ;;  %v5931_v40 = vmul.f32 0.0078125, %v5905_v36 }
0x1347   : > { %v6018_v59 = vadd.f32 %v10664_v45, %v5996_v52  ;;  %v5997_v39 = vmul.f32 %v10656_v32, %v5975_v24 }
0x1348   : > { %8271 = vrsqrt.f32 %v5946_v3  ;;  %v5947_v8 = vadd.f32 1e-05, %v5931_v40 }
0x1349   : > { %6034 = vst [vmem:[%s10670_s29] sm:$0xff] %v6018_v59  ;;  %v6019_v37 = vadd.f32 %v10664_v45, %v5997_v39 }
0x134a   : > { %v8268_v12 = vpop.eup %8267  ;;  %8273 = vrsqrt.f32 %v5947_v8 }
0x134b   : > { %6035 = vst [vmem:[%s10670_s29 + $0x8] sm:$0xff] %v6019_v37  ;;  %v5976_v38 = vmul.f32 %v8268_v12, %v10583_v29  ;;  %v5907_v44 = vpop.xlane.xlu0 %5906 }
0x134c   : > { %v8270_v47 = vpop.eup %8269  ;;  %v5932_v23 = vmul.f32 0.0078125, %v5907_v44 }
0x134d   : > { %v5998_v5 = vmul.f32 %v10656_v32, %v5976_v38  ;;  %v5977_v48 = vmul.f32 %v8270_v47, %v10586_v50  ;;  %v5909_v42 = vpop.xlane.xlu1 %5908 }
0x134e   : > { %v5948_v61 = vadd.f32 1e-05, %v5932_v23  ;;  %v5933_v56 = vmul.f32 0.0078125, %v5909_v42 }
0x134f   : > { %v6020_v7 = vadd.f32 %v10664_v45, %v5998_v5  ;;  %v5999_v31 = vmul.f32 %v10656_v32, %v5977_v48 }
0x1350   : > { %8275 = vrsqrt.f32 %v5948_v61  ;;  %v5949_v33 = vadd.f32 1e-05, %v5933_v56 }
0x1351   : > { %6036 = vst [vmem:[%s10670_s29 + $0x10] sm:$0xff] %v6020_v7  ;;  %v6021_v29 = vadd.f32 %v10664_v45, %v5999_v31 }
0x1352   : > { %v8272_v4 = vpop.eup %8271  ;;  %8277 = vrsqrt.f32 %v5949_v33 }
0x1353   : > { %6037 = vst [vmem:[%s10670_s29 + $0x18] sm:$0xff] %v6021_v29  ;;  %v5978_v41 = vmul.f32 %v8272_v4, %v10593_v1  ;;  %v5911_v9 = vpop.xlane.xlu0 %5910 }
0x1354   : > { %v8274_v50 = vpop.eup %8273  ;;  %v5934_v27 = vmul.f32 0.0078125, %v5911_v9 }
0x1355   : > { %v6000_v49 = vmul.f32 %v10656_v32, %v5978_v41  ;;  %v5979_v34 = vmul.f32 %v8274_v50, %v10596_v26  ;;  %v5913_v19 = vpop.xlane.xlu1 %5912 }
0x1356   : > { %v5950_v51 = vadd.f32 1e-05, %v5934_v27  ;;  %v5935_v58 = vmul.f32 0.0078125, %v5913_v19 }
0x1357   : > { %v6022_v0 = vadd.f32 %v10664_v45, %v6000_v49  ;;  %v6001_v11 = vmul.f32 %v10656_v32, %v5979_v34 }
0x1358   : > { %8279 = vrsqrt.f32 %v5950_v51  ;;  %v5951_v63 = vadd.f32 1e-05, %v5935_v58 }
0x1359   : > { %6038 = vst [vmem:[%s10670_s29 + $0x20] sm:$0xff] %v6022_v0  ;;  %v6023_v1 = vadd.f32 %v10664_v45, %v6001_v11 }
0x135a   : > { %v8276_v54 = vpop.eup %8275  ;;  %8281 = vrsqrt.f32 %v5951_v63 }
0x135b   : > { %6039 = vst [vmem:[%s10670_s29 + $0x28] sm:$0xff] %v6023_v1  ;;  %v5980_v2 = vmul.f32 %v8276_v54, %v10603_v25  ;;  %v5915_v21 = vpop.xlane.xlu0 %5914 }
0x135c   : > { %v8278_v26 = vpop.eup %8277  ;;  %v5936_v46 = vmul.f32 0.0078125, %v5915_v21 }
0x135d   : > { %v6002_v17 = vmul.f32 %v10656_v32, %v5980_v2  ;;  %v5981_v22 = vmul.f32 %v8278_v26, %v10606_v14  ;;  %v5917_v6 = vpop.xlane.xlu1 %5916 }
0x135e   : > { %v5952_v35 = vadd.f32 1e-05, %v5936_v46  ;;  %v5937_v53 = vmul.f32 0.0078125, %v5917_v6 }
0x135f   : > { %v6024_v28 = vadd.f32 %v10664_v45, %v6002_v17  ;;  %v6003_v18 = vmul.f32 %v10656_v32, %v5981_v22 }
0x1360   : > { %8283 = vrsqrt.f32 %v5952_v35  ;;  %v5953_v10 = vadd.f32 1e-05, %v5937_v53 }
0x1361   : > { %6040 = vst [vmem:[%s10670_s29 + $0x30] sm:$0xff] %v6024_v28  ;;  %v6025_v25 = vadd.f32 %v10664_v45, %v6003_v18 }
0x1362   : > { %v8280_v43 = vpop.eup %8279  ;;  %8285 = vrsqrt.f32 %v5953_v10 }
0x1363   : > { %6041 = vst [vmem:[%s10670_s29 + $0x38] sm:$0xff] %v6025_v25  ;;  %v5982_v57 = vmul.f32 %v8280_v43, %v10613_v60  ;;  %v5919_v52 = vpop.xlane.xlu0 %5918 }
0x1364   : > { %v8282_v14 = vpop.eup %8281  ;;  %v5938_v24 = vmul.f32 0.0078125, %v5919_v52 }
0x1365   : > { %v6004_v36 = vmul.f32 %v10656_v32, %v5982_v57  ;;  %v5983_v3 = vmul.f32 %v8282_v14, %v10616_v62  ;;  %v5921_v40 = vpop.xlane.xlu1 %5920 }
0x1366   : > { %v5954_v59 = vadd.f32 1e-05, %v5938_v24  ;;  %v5939_v39 = vmul.f32 0.0078125, %v5921_v40 }
0x1367   : > { %v6026_v8 = vadd.f32 %v10664_v45, %v6004_v36  ;;  %v6005_v37 = vmul.f32 %v10656_v32, %v5983_v3 }
0x1368   : > { %8287 = vrsqrt.f32 %v5954_v59  ;;  %v5955_v12 = vadd.f32 1e-05, %v5939_v39 }
0x1369   : > { %6042 = vst [vmem:[%s10670_s29 + $0x40] sm:$0xff] %v6026_v8  ;;  %v6027_v60 = vadd.f32 %v10664_v45, %v6005_v37 }
0x136a   : > { %v8284_v38 = vpop.eup %8283  ;;  %8289 = vrsqrt.f32 %v5955_v12 }
0x136b   : > { %6043 = vst [vmem:[%s10670_s29 + $0x48] sm:$0xff] %v6027_v60  ;;  %v5984_v44 = vmul.f32 %v8284_v38, %v10623_v15  ;;  %v5923_v47 = vpop.xlane.xlu0 %5922 }
0x136c   : > { %v8286_v62 = vpop.eup %8285  ;;  %v5940_v23 = vmul.f32 0.0078125, %v5923_v47 }
0x136d   : > { %v6006_v5 = vmul.f32 %v10656_v32, %v5984_v44  ;;  %v5985_v48 = vmul.f32 %v8286_v62, %v10626_v55  ;;  %v5925_v42 = vpop.xlane.xlu1 %5924 }
0x136e   : > { %v5956_v61 = vadd.f32 1e-05, %v5940_v23  ;;  %v5941_v56 = vmul.f32 0.0078125, %v5925_v42 }
0x136f   : > { %v6028_v7 = vadd.f32 %v10664_v45, %v6006_v5  ;;  %v6007_v31 = vmul.f32 %v10656_v32, %v5985_v48 }
0x1370   : > { %8291 = vrsqrt.f32 %v5956_v61  ;;  %v5957_v33 = vadd.f32 1e-05, %v5941_v56 }
0x1371   : > { %6044 = vst [vmem:[%s10670_s29 + $0x50] sm:$0xff] %v6028_v7  ;;  %v6029_v15 = vadd.f32 %v10664_v45, %v6007_v31 }
0x1372   : > { %v8288_v29 = vpop.eup %8287  ;;  %8293 = vrsqrt.f32 %v5957_v33 }
0x1373   : > { %6045 = vst [vmem:[%s10670_s29 + $0x58] sm:$0xff] %v6029_v15  ;;  %v5986_v55 = vmul.f32 %v8288_v29, %v10633_v13 }
0x1374   : > { %v8290_v4 = vpop.eup %8289 }
0x1375   : > { %v6008_v41 = vmul.f32 %v10656_v32, %v5986_v55  ;;  %v5987_v9 = vmul.f32 %v8290_v4, %v10636_v16 }
0x1377   : > { %v6030_v50 = vadd.f32 %v10664_v45, %v6008_v41  ;;  %v6009_v27 = vmul.f32 %v10656_v32, %v5987_v9 }
0x1379   : > { %6046 = vst [vmem:[%s10670_s29 + $0x60] sm:$0xff] %v6030_v50  ;;  %v6031_v49 = vadd.f32 %v10664_v45, %v6009_v27 }
0x137a   : > { %v8292_v34 = vpop.eup %8291 }
0x137b   : > { %6047 = vst [vmem:[%s10670_s29 + $0x68] sm:$0xff] %v6031_v49  ;;  %v5988_v19 = vmul.f32 %v8292_v34, %v10643_v20 }
0x137c   : > { %v8294_v13 = vpop.eup %8293 }
0x137d   : > { %v6010_v51 = vmul.f32 %v10656_v32, %v5988_v19  ;;  %v5989_v16 = vmul.f32 %v8294_v13, %v10646_v30 }
0x137f   : > { %v6032_v58 = vadd.f32 %v10664_v45, %v6010_v51  ;;  %v6011_v0 = vmul.f32 %v10656_v32, %v5989_v16 }
0x1381   : > { %6048 = vst [vmem:[%s10670_s29 + $0x70] sm:$0xff] %v6032_v58  ;;  %v6033_v20 = vadd.f32 %v10664_v45, %v6011_v0 }
0x1383   : > { %6049 = vst [vmem:[%s10670_s29 + $0x78] sm:$0xff] %v6033_v20 }
0x1384   : > { %8325 = shalt.err (!%p8322_p5)
}
0x1385   : > { %s8326_s27 = scalar_lea.hbm %s10733_s22, 2048  ;;  %s8330_s4 = scalar_lea.hbm %s10806_s18, 4096 }
0x1386   : > { %p8327_p6 = scmp.ne.s32.totalorder %s10733_s22, %s8326_s27  ;;  %p8331_p10 = scmp.lt.u32.totalorder %s10733_s22, %s10806_s18 }
0x1387   : > { %p8332_p11 = scmp.lt.u32.totalorder %s8330_s4, %s8326_s27  ;;  %p8334_p13 = scmp.lt.u32.totalorder %s8326_s27, %s10733_s22 }
0x1388   : > { %p8328_p7 = pnand %p8327_p6, %p8534_p4 }
0x1389   : > { %p8333_p12 = por %p8332_p11, %p8331_p10 }
0x138a   : > { %p8329_p9 = pneg %p8328_p7 }
0x138b   : > { %p8335_p0 = por %p8334_p13, %p8333_p12 }
0x138d   : > { %p8336_p1 = pnand %p8335_p0, %p8329_p9 }
0x138f   : > { %8339 = shalt.err (!%p8336_p1)
}
0x1390   : > { %s8397_s0 = smov 128   ;;  %s8398_s20 = smov 8  }
0x1391   : > { %7642 = dma.vmem_to_hbm [thread:$0]  (%p8534_p4), %s10735_s26, 2048, %s10733_s22, %s10742_s30, %s8397_s0, %s8397_s0, %s8398_s20  }
0x1392 PF: > { %s10880_s23 = sld [smem:[#allocation7_spill]]  ;;  %p7648_p2 = scmp.ge.s32.totalorder %s8390_s19, 2 }
0x1394   : > { %p7645_p3 = pnand %p7648_p2, %p8541_p8 }
0x1398   : > { %s6081_s25 = sand.u32 1, %s10880_s23  }
0x1399   : > { %s6082_s27 = scalar_lea.sflag [#allocation5], %s6081_s25 }
0x139a   : > { %8365 = dma.done.wait (!%p7645_p3), %s6082_s27, 2048  }
0x139b   : > { %8367 = vsyncadd (!%p7645_p3), %s6082_s27, 4294965248  ;;  %s31_s19 = sadd.s32 1, %s8390_s19   ;;  %s10882_s4 = sld [smem:[#allocation8_spill]] }
0x139c   : > { %p28_p5 = scmp.ge.s32.totalorder %s31_s19, 4   ;;  %s10883_s29 = sld [smem:[#allocation12_spill]] }
0x139d   : > { %s10884_s30 = sld [smem:[#allocation9_spill]]  ;;  %s10885_s0 = sld [smem:[#allocation10_spill]] }
0x139e   : > { %s10886_s27 = smov %s8374_s28  ;;  %30 = sbr.rel (!%p28_p5) target bundleno = 9 (0x9), region = 164 }
0x13a1   : > { %s10887_s28 = smov %s10882_s4 }
0x13a5   :  { %6087 = vsyncpa [#allocation5], 1 }
0x13a6   :  { %6089 = vsyncpa [#allocation5 + $0x1], 1 }

</bundles_post_ra>
